<compile_context>
chip_gen: v7x
topology: tpu7x:2x2x1
jax: 0.10.0
libtpu: 0.0.40
codegen_flags: <defaults>
</compile_context>

<pallas_src>
import functools

import jax
import jax.numpy as jnp
from jax.experimental import pallas as pl
from jax.experimental.pallas import tpu as pltpu


def conv_sigmoid_kernel(x_lo_ref, x_hi_ref, w_ref, b_ref, o_ref, *, KH, KW, W, tile_l):
    """49 accumulated shallow-K MXU dots -> bias -> sigmoid, all lane-dense.

    x_lo_ref: (Cin, TILE_L)        bf16  flattened input, columns [t*TILE_L, (t+1)*TILE_L)
    x_hi_ref: (Cin, TILE_L)        bf16  next tile (halo), columns [(t+1)*TILE_L, (t+2)*TILE_L)
    w_ref:    (KH*KW, Cout, Cin)   bf16  one (Cout, Cin) weight matrix per tap
    b_ref:    (Cout, 1)            f32
    o_ref:    (Cout, TILE_L)       f32   lane-dense "wide" output tile
    """
    Cout = o_ref.shape[0]

    # Contiguous 2*TILE_L lane window covering this tile plus its halo.  Both halves are
    # TILE_L wide (multiple of 128) -> vreg-aligned, cheap concat.
    xw = jnp.concatenate([x_lo_ref[...], x_hi_ref[...]], axis=1)      # (Cin, 2*TILE_L)

    # Start the accumulator from the broadcast bias (single hoisted lane-broadcast).
    acc = jnp.broadcast_to(b_ref[...], (Cout, tile_l))                # f32

    for kh in range(KH):
        # One source slab per image-row offset kh; the KW lane shifts below reuse it.
        slab = jax.lax.slice_in_dim(xw, kh * W, kh * W + tile_l + KW - 1, axis=1)
        for kw in range(KW):
            tap = kh * KW + kw
            xs = jax.lax.slice_in_dim(slab, kw, kw + tile_l, axis=1)  # (Cin, TILE_L) bf16
            # Shallow-K (Cout, Cin) @ (Cin, TILE_L) on the MXU, f32 accumulation
            # (accumulates in the MRB on v7x; pop+add on v5e/v6e).
            acc = acc + jnp.dot(w_ref[tap], xs, preferred_element_type=jnp.float32)

    o_ref[...] = jax.nn.sigmoid(acc).astype(o_ref.dtype)


def conv2d_sigmoid_pallas(x_nchw, w_oihw, bias, *, tile_l=None):
    """x_nchw: (1, Cin, H, W) f32; w_oihw: (Cout, Cin, KH, KW) f32; bias: (Cout,) f32."""
    N, Cin, H, W = x_nchw.shape
    Cout, Cin_w, KH, KW = w_oihw.shape
    assert N == 1 and Cin_w == Cin
    OH, OW = H - KH + 1, W - KW + 1
    halo = (KH - 1) * W + (KW - 1)            # max tap offset on the flattened lane axis

    rup = lambda a, b: -(-a // b) * b
    if tile_l is None:
        # Biggest 128-multiple tile that covers small cases in one shot, capped at 1024 so
        # the full 96x96 problem splits into ~9 parallel tiles (both v7x TCs, bounded VMEM,
        # well under v5e's 16 MiB default scoped VMEM).
        tile_l = min(1024, rup(OH * W, 128))
    tile_l = max(rup(tile_l, 128), rup(halo, 128))   # halo must fit inside the +1 block
    L_pad = rup(OH * W, tile_l)               # padded "wide" output length (mult. of 128)
    num_tiles = L_pad // tile_l
    Xp = (num_tiles + 1) * tile_l             # lane-padded input width (covers halo view)

    # Lane-dense bf16 MXU operands; activations stay NCHW-flattened (no transpose).
    x_flat = jnp.pad(x_nchw[0].reshape(Cin, H * W).astype(jnp.bfloat16),
                     ((0, 0), (0, Xp - H * W)))
    # (Cout, Cin, KH, KW) -> (KH*KW, Cout, Cin): one (Cout, Cin) matrix per tap.
    w_taps = (jnp.transpose(w_oihw, (2, 3, 0, 1))
              .reshape(KH * KW, Cout, Cin).astype(jnp.bfloat16))
    b_col = bias.reshape(Cout, 1).astype(jnp.float32)

    kernel = functools.partial(conv_sigmoid_kernel, KH=KH, KW=KW, W=W, tile_l=tile_l)

    out_wide = pl.pallas_call(
        kernel,
        out_shape=jax.ShapeDtypeStruct((Cout, L_pad), jnp.float32),
        grid=(num_tiles,),
        in_specs=[
            pl.BlockSpec((Cin, tile_l), lambda t: (0, t)),            # x, current tile
            pl.BlockSpec((Cin, tile_l), lambda t: (0, t + 1)),        # x, halo (next tile)
            pl.BlockSpec((KH * KW, Cout, Cin), lambda t: (0, 0, 0)),  # weights (resident)
            pl.BlockSpec((Cout, 1), lambda t: (0, 0)),                # bias (resident)
        ],
        out_specs=pl.BlockSpec((Cout, tile_l), lambda t: (0, t)),
        compiler_params=pltpu.CompilerParams(
            dimension_semantics=("parallel",)),   # independent tiles -> both v7x TCs
    )(x_flat, x_flat, w_taps, b_col)

    # (Cout, L_pad) "wide" result -> (1, Cout, OH, OW): one fused slice/reshape/slice,
    # no pad, no transpose ((Cout, OH, OW) is already NCHW for N=1).
    out = out_wide[:, :OH * W].reshape(Cout, OH, W)[:, :, :OW]
    return out[None]


def reference(x_nchw, w_oihw, bias):
    out = jax.lax.conv_general_dilated(
        x_nchw, w_oihw, window_strides=(1, 1), padding="VALID",
        dimension_numbers=("NCHW", "OIHW", "NCHW"))
    return jax.nn.sigmoid(out + bias.reshape(1, -1, 1, 1))


if __name__ == "__main__":
    # Small shapes consistent with the module: Cin/Cout/kernel fixed by conv1 (16, 16, 7),
    # spatial reduced 96x96 -> 32x32.
    N, Cin, H, W = 1, 16, 32, 32
    Cout, KH, KW = 16, 7, 7

    key = jax.random.PRNGKey(0)
    kx, kwt, kb = jax.random.split(key, 3)
    x = jax.random.normal(kx, (N, Cin, H, W), dtype=jnp.float32)

    # PyTorch-style Conv2d init: U(-1/sqrt(fan_in), 1/sqrt(fan_in)).
    fan_in = Cin * KH * KW
    bound = 1.0 / (fan_in ** 0.5)
    w = jax.random.uniform(kwt, (Cout, Cin, KH, KW), jnp.float32, -bound, bound)
    b = jax.random.uniform(kb, (Cout,), jnp.float32, -bound, bound)

    ref = jax.block_until_ready(reference(x, w, b))

    # Default tiling at this size: one 896-lane tile (grid=(1,)).
    out_1tile = jax.block_until_ready(jax.jit(conv2d_sigmoid_pallas)(x, w, b))
    # Forced smaller tile: exercises the multi-tile parallel grid + halo path used at 96x96.
    out_2tile = jax.block_until_ready(
        jax.jit(functools.partial(conv2d_sigmoid_pallas, tile_l=512))(x, w, b))

    assert out_1tile.shape == (N, Cout, H - KH + 1, W - KW + 1), out_1tile.shape
    assert out_2tile.shape == out_1tile.shape, out_2tile.shape
    for out in (out_1tile, out_2tile):
        max_err = float(jnp.max(jnp.abs(out - ref)))
        # bf16 MXU inputs -> relaxed tolerance vs the f32 reference.
        assert jnp.allclose(out, ref, atol=1e-2, rtol=1e-2), max_err

    print("KERNEL_OK")
</pallas_src>

<mosaic_0001>
module attributes {stable_mosaic.version = 11 : i64} {
  func.func @conv_sigmoid_kernel(%arg0: i32, %arg1: memref<16x896xbf16, #tpu.memory_space<vmem>>, %arg2: memref<16x896xbf16, #tpu.memory_space<vmem>>, %arg3: memref<49x16x16xbf16, #tpu.memory_space<vmem>>, %arg4: memref<16x1xf32, #tpu.memory_space<vmem>>, %arg5: memref<16x896xf32, #tpu.memory_space<vmem>>) attributes {dimension_semantics = [#tpu.dimension_semantics<parallel>], iteration_bounds = array<i64: 1>, scalar_prefetch = 0 : i64, scratch_operands = 0 : i64, tpu.core_type = #tpu.core_type<tc>, window_params = [{transform_indices = @transform_0, window_bounds = array<i64: 16, 896>}, {transform_indices = @transform_1, window_bounds = array<i64: 16, 896>}, {pipeline_mode = #tpu.pipeline_mode<synchronous>, transform_indices = @transform_2, window_bounds = array<i64: 49, 16, 16>}, {pipeline_mode = #tpu.pipeline_mode<synchronous>, transform_indices = @transform_3, window_bounds = array<i64: 16, 1>}, {transform_indices = @transform_4, window_bounds = array<i64: 16, 896>}]} {
    %c0 = arith.constant 0 : index
    %c0_0 = arith.constant 0 : index
    %0 = vector.load %arg1[%c0, %c0_0] : memref<16x896xbf16, #tpu.memory_space<vmem>>, vector<16x896xbf16>
    %c0_1 = arith.constant 0 : index
    %c0_2 = arith.constant 0 : index
    %1 = vector.load %arg2[%c0_1, %c0_2] : memref<16x896xbf16, #tpu.memory_space<vmem>>, vector<16x896xbf16>
    %2 = tpu.concatenate %0, %1 in 1 : vector<16x896xbf16>, vector<16x896xbf16> -> vector<16x1792xbf16>
    %c0_3 = arith.constant 0 : index
    %c0_4 = arith.constant 0 : index
    %3 = vector.load %arg4[%c0_3, %c0_4] : memref<16x1xf32, #tpu.memory_space<vmem>>, vector<16x1xf32>
    %4 = vector.shape_cast %3 : vector<16x1xf32> to vector<16x1xf32>
    %5 = vector.broadcast %4 : vector<16x1xf32> to vector<16x896xf32>
    %6 = vector.extract_strided_slice %2 {offsets = [0, 0], sizes = [16, 902], strides = [1, 1]} : vector<16x1792xbf16> to vector<16x902xbf16>
    %7 = vector.extract_strided_slice %6 {offsets = [0, 0], sizes = [16, 896], strides = [1, 1]} : vector<16x902xbf16> to vector<16x896xbf16>
    %c0_5 = arith.constant 0 : index
    %c0_6 = arith.constant 0 : index
    %c0_7 = arith.constant 0 : index
    %8 = vector.load %arg3[%c0_5, %c0_6, %c0_7] : memref<49x16x16xbf16, #tpu.memory_space<vmem>>, vector<1x16x16xbf16>
    %9 = vector.shape_cast %8 : vector<1x16x16xbf16> to vector<16x16xbf16>
    %cst = arith.constant dense<0.000000e+00> : vector<16x896xf32>
    %10 = tpu.matmul %9, %7, %cst {dimension_numbers = #tpu.dot_dimension_numbers<[1], [0], [0], [1], [0, 0, 1, 1], [], []>} : vector<16x16xbf16>, vector<16x896xbf16>, vector<16x896xf32> -> vector<16x896xf32>
    %11 = arith.addf %5, %10 : vector<16x896xf32>
    %12 = vector.extract_strided_slice %6 {offsets = [0, 1], sizes = [16, 896], strides = [1, 1]} : vector<16x902xbf16> to vector<16x896xbf16>
    %c1 = arith.constant 1 : index
    %c0_8 = arith.constant 0 : index
    %c0_9 = arith.constant 0 : index
    %13 = vector.load %arg3[%c1, %c0_8, %c0_9] : memref<49x16x16xbf16, #tpu.memory_space<vmem>>, vector<1x16x16xbf16>
    %14 = vector.shape_cast %13 : vector<1x16x16xbf16> to vector<16x16xbf16>
    %cst_10 = arith.constant dense<0.000000e+00> : vector<16x896xf32>
    %15 = tpu.matmul %14, %12, %cst_10 {dimension_numbers = #tpu.dot_dimension_numbers<[1], [0], [0], [1], [0, 0, 1, 1], [], []>} : vector<16x16xbf16>, vector<16x896xbf16>, vector<16x896xf32> -> vector<16x896xf32>
    %16 = arith.addf %11, %15 : vector<16x896xf32>
    %17 = vector.extract_strided_slice %6 {offsets = [0, 2], sizes = [16, 896], strides = [1, 1]} : vector<16x902xbf16> to vector<16x896xbf16>
    %c2 = arith.constant 2 : index
    %c0_11 = arith.constant 0 : index
    %c0_12 = arith.constant 0 : index
    %18 = vector.load %arg3[%c2, %c0_11, %c0_12] : memref<49x16x16xbf16, #tpu.memory_space<vmem>>, vector<1x16x16xbf16>
    %19 = vector.shape_cast %18 : vector<1x16x16xbf16> to vector<16x16xbf16>
    %cst_13 = arith.constant dense<0.000000e+00> : vector<16x896xf32>
    %20 = tpu.matmul %19, %17, %cst_13 {dimension_numbers = #tpu.dot_dimension_numbers<[1], [0], [0], [1], [0, 0, 1, 1], [], []>} : vector<16x16xbf16>, vector<16x896xbf16>, vector<16x896xf32> -> vector<16x896xf32>
    %21 = arith.addf %16, %20 : vector<16x896xf32>
    %22 = vector.extract_strided_slice %6 {offsets = [0, 3], sizes = [16, 896], strides = [1, 1]} : vector<16x902xbf16> to vector<16x896xbf16>
    %c3 = arith.constant 3 : index
    %c0_14 = arith.constant 0 : index
    %c0_15 = arith.constant 0 : index
    %23 = vector.load %arg3[%c3, %c0_14, %c0_15] : memref<49x16x16xbf16, #tpu.memory_space<vmem>>, vector<1x16x16xbf16>
    %24 = vector.shape_cast %23 : vector<1x16x16xbf16> to vector<16x16xbf16>
    %cst_16 = arith.constant dense<0.000000e+00> : vector<16x896xf32>
    %25 = tpu.matmul %24, %22, %cst_16 {dimension_numbers = #tpu.dot_dimension_numbers<[1], [0], [0], [1], [0, 0, 1, 1], [], []>} : vector<16x16xbf16>, vector<16x896xbf16>, vector<16x896xf32> -> vector<16x896xf32>
    %26 = arith.addf %21, %25 : vector<16x896xf32>
    %27 = vector.extract_strided_slice %6 {offsets = [0, 4], sizes = [16, 896], strides = [1, 1]} : vector<16x902xbf16> to vector<16x896xbf16>
    %c4 = arith.constant 4 : index
    %c0_17 = arith.constant 0 : index
    %c0_18 = arith.constant 0 : index
    %28 = vector.load %arg3[%c4, %c0_17, %c0_18] : memref<49x16x16xbf16, #tpu.memory_space<vmem>>, vector<1x16x16xbf16>
    %29 = vector.shape_cast %28 : vector<1x16x16xbf16> to vector<16x16xbf16>
    %cst_19 = arith.constant dense<0.000000e+00> : vector<16x896xf32>
    %30 = tpu.matmul %29, %27, %cst_19 {dimension_numbers = #tpu.dot_dimension_numbers<[1], [0], [0], [1], [0, 0, 1, 1], [], []>} : vector<16x16xbf16>, vector<16x896xbf16>, vector<16x896xf32> -> vector<16x896xf32>
    %31 = arith.addf %26, %30 : vector<16x896xf32>
    %32 = vector.extract_strided_slice %6 {offsets = [0, 5], sizes = [16, 896], strides = [1, 1]} : vector<16x902xbf16> to vector<16x896xbf16>
    %c5 = arith.constant 5 : index
    %c0_20 = arith.constant 0 : index
    %c0_21 = arith.constant 0 : index
    %33 = vector.load %arg3[%c5, %c0_20, %c0_21] : memref<49x16x16xbf16, #tpu.memory_space<vmem>>, vector<1x16x16xbf16>
    %34 = vector.shape_cast %33 : vector<1x16x16xbf16> to vector<16x16xbf16>
    %cst_22 = arith.constant dense<0.000000e+00> : vector<16x896xf32>
    %35 = tpu.matmul %34, %32, %cst_22 {dimension_numbers = #tpu.dot_dimension_numbers<[1], [0], [0], [1], [0, 0, 1, 1], [], []>} : vector<16x16xbf16>, vector<16x896xbf16>, vector<16x896xf32> -> vector<16x896xf32>
    %36 = arith.addf %31, %35 : vector<16x896xf32>
    %37 = vector.extract_strided_slice %6 {offsets = [0, 6], sizes = [16, 896], strides = [1, 1]} : vector<16x902xbf16> to vector<16x896xbf16>
    %c6 = arith.constant 6 : index
    %c0_23 = arith.constant 0 : index
    %c0_24 = arith.constant 0 : index
    %38 = vector.load %arg3[%c6, %c0_23, %c0_24] : memref<49x16x16xbf16, #tpu.memory_space<vmem>>, vector<1x16x16xbf16>
    %39 = vector.shape_cast %38 : vector<1x16x16xbf16> to vector<16x16xbf16>
    %cst_25 = arith.constant dense<0.000000e+00> : vector<16x896xf32>
    %40 = tpu.matmul %39, %37, %cst_25 {dimension_numbers = #tpu.dot_dimension_numbers<[1], [0], [0], [1], [0, 0, 1, 1], [], []>} : vector<16x16xbf16>, vector<16x896xbf16>, vector<16x896xf32> -> vector<16x896xf32>
    %41 = arith.addf %36, %40 : vector<16x896xf32>
    %42 = vector.extract_strided_slice %2 {offsets = [0, 32], sizes = [16, 902], strides = [1, 1]} : vector<16x1792xbf16> to vector<16x902xbf16>
    %43 = vector.extract_strided_slice %42 {offsets = [0, 0], sizes = [16, 896], strides = [1, 1]} : vector<16x902xbf16> to vector<16x896xbf16>
    %c7 = arith.constant 7 : index
    %c0_26 = arith.constant 0 : index
    %c0_27 = arith.constant 0 : index
    %44 = vector.load %arg3[%c7, %c0_26, %c0_27] : memref<49x16x16xbf16, #tpu.memory_space<vmem>>, vector<1x16x16xbf16>
    %45 = vector.shape_cast %44 : vector<1x16x16xbf16> to vector<16x16xbf16>
    %cst_28 = arith.constant dense<0.000000e+00> : vector<16x896xf32>
    %46 = tpu.matmul %45, %43, %cst_28 {dimension_numbers = #tpu.dot_dimension_numbers<[1], [0], [0], [1], [0, 0, 1, 1], [], []>} : vector<16x16xbf16>, vector<16x896xbf16>, vector<16x896xf32> -> vector<16x896xf32>
    %47 = arith.addf %41, %46 : vector<16x896xf32>
    %48 = vector.extract_strided_slice %42 {offsets = [0, 1], sizes = [16, 896], strides = [1, 1]} : vector<16x902xbf16> to vector<16x896xbf16>
    %c8 = arith.constant 8 : index
    %c0_29 = arith.constant 0 : index
    %c0_30 = arith.constant 0 : index
    %49 = vector.load %arg3[%c8, %c0_29, %c0_30] : memref<49x16x16xbf16, #tpu.memory_space<vmem>>, vector<1x16x16xbf16>
    %50 = vector.shape_cast %49 : vector<1x16x16xbf16> to vector<16x16xbf16>
    %cst_31 = arith.constant dense<0.000000e+00> : vector<16x896xf32>
    %51 = tpu.matmul %50, %48, %cst_31 {dimension_numbers = #tpu.dot_dimension_numbers<[1], [0], [0], [1], [0, 0, 1, 1], [], []>} : vector<16x16xbf16>, vector<16x896xbf16>, vector<16x896xf32> -> vector<16x896xf32>
    %52 = arith.addf %47, %51 : vector<16x896xf32>
    %53 = vector.extract_strided_slice %42 {offsets = [0, 2], sizes = [16, 896], strides = [1, 1]} : vector<16x902xbf16> to vector<16x896xbf16>
    %c9 = arith.constant 9 : index
    %c0_32 = arith.constant 0 : index
    %c0_33 = arith.constant 0 : index
    %54 = vector.load %arg3[%c9, %c0_32, %c0_33] : memref<49x16x16xbf16, #tpu.memory_space<vmem>>, vector<1x16x16xbf16>
    %55 = vector.shape_cast %54 : vector<1x16x16xbf16> to vector<16x16xbf16>
    %cst_34 = arith.constant dense<0.000000e+00> : vector<16x896xf32>
    %56 = tpu.matmul %55, %53, %cst_34 {dimension_numbers = #tpu.dot_dimension_numbers<[1], [0], [0], [1], [0, 0, 1, 1], [], []>} : vector<16x16xbf16>, vector<16x896xbf16>, vector<16x896xf32> -> vector<16x896xf32>
    %57 = arith.addf %52, %56 : vector<16x896xf32>
    %58 = vector.extract_strided_slice %42 {offsets = [0, 3], sizes = [16, 896], strides = [1, 1]} : vector<16x902xbf16> to vector<16x896xbf16>
    %c10 = arith.constant 10 : index
    %c0_35 = arith.constant 0 : index
    %c0_36 = arith.constant 0 : index
    %59 = vector.load %arg3[%c10, %c0_35, %c0_36] : memref<49x16x16xbf16, #tpu.memory_space<vmem>>, vector<1x16x16xbf16>
    %60 = vector.shape_cast %59 : vector<1x16x16xbf16> to vector<16x16xbf16>
    %cst_37 = arith.constant dense<0.000000e+00> : vector<16x896xf32>
    %61 = tpu.matmul %60, %58, %cst_37 {dimension_numbers = #tpu.dot_dimension_numbers<[1], [0], [0], [1], [0, 0, 1, 1], [], []>} : vector<16x16xbf16>, vector<16x896xbf16>, vector<16x896xf32> -> vector<16x896xf32>
    %62 = arith.addf %57, %61 : vector<16x896xf32>
    %63 = vector.extract_strided_slice %42 {offsets = [0, 4], sizes = [16, 896], strides = [1, 1]} : vector<16x902xbf16> to vector<16x896xbf16>
    %c11 = arith.constant 11 : index
    %c0_38 = arith.constant 0 : index
    %c0_39 = arith.constant 0 : index
    %64 = vector.load %arg3[%c11, %c0_38, %c0_39] : memref<49x16x16xbf16, #tpu.memory_space<vmem>>, vector<1x16x16xbf16>
    %65 = vector.shape_cast %64 : vector<1x16x16xbf16> to vector<16x16xbf16>
    %cst_40 = arith.constant dense<0.000000e+00> : vector<16x896xf32>
    %66 = tpu.matmul %65, %63, %cst_40 {dimension_numbers = #tpu.dot_dimension_numbers<[1], [0], [0], [1], [0, 0, 1, 1], [], []>} : vector<16x16xbf16>, vector<16x896xbf16>, vector<16x896xf32> -> vector<16x896xf32>
    %67 = arith.addf %62, %66 : vector<16x896xf32>
    %68 = vector.extract_strided_slice %42 {offsets = [0, 5], sizes = [16, 896], strides = [1, 1]} : vector<16x902xbf16> to vector<16x896xbf16>
    %c12 = arith.constant 12 : index
    %c0_41 = arith.constant 0 : index
    %c0_42 = arith.constant 0 : index
    %69 = vector.load %arg3[%c12, %c0_41, %c0_42] : memref<49x16x16xbf16, #tpu.memory_space<vmem>>, vector<1x16x16xbf16>
    %70 = vector.shape_cast %69 : vector<1x16x16xbf16> to vector<16x16xbf16>
    %cst_43 = arith.constant dense<0.000000e+00> : vector<16x896xf32>
    %71 = tpu.matmul %70, %68, %cst_43 {dimension_numbers = #tpu.dot_dimension_numbers<[1], [0], [0], [1], [0, 0, 1, 1], [], []>} : vector<16x16xbf16>, vector<16x896xbf16>, vector<16x896xf32> -> vector<16x896xf32>
    %72 = arith.addf %67, %71 : vector<16x896xf32>
    %73 = vector.extract_strided_slice %42 {offsets = [0, 6], sizes = [16, 896], strides = [1, 1]} : vector<16x902xbf16> to vector<16x896xbf16>
    %c13 = arith.constant 13 : index
    %c0_44 = arith.constant 0 : index
    %c0_45 = arith.constant 0 : index
    %74 = vector.load %arg3[%c13, %c0_44, %c0_45] : memref<49x16x16xbf16, #tpu.memory_space<vmem>>, vector<1x16x16xbf16>
    %75 = vector.shape_cast %74 : vector<1x16x16xbf16> to vector<16x16xbf16>
    %cst_46 = arith.constant dense<0.000000e+00> : vector<16x896xf32>
    %76 = tpu.matmul %75, %73, %cst_46 {dimension_numbers = #tpu.dot_dimension_numbers<[1], [0], [0], [1], [0, 0, 1, 1], [], []>} : vector<16x16xbf16>, vector<16x896xbf16>, vector<16x896xf32> -> vector<16x896xf32>
    %77 = arith.addf %72, %76 : vector<16x896xf32>
    %78 = vector.extract_strided_slice %2 {offsets = [0, 64], sizes = [16, 902], strides = [1, 1]} : vector<16x1792xbf16> to vector<16x902xbf16>
    %79 = vector.extract_strided_slice %78 {offsets = [0, 0], sizes = [16, 896], strides = [1, 1]} : vector<16x902xbf16> to vector<16x896xbf16>
    %c14 = arith.constant 14 : index
    %c0_47 = arith.constant 0 : index
    %c0_48 = arith.constant 0 : index
    %80 = vector.load %arg3[%c14, %c0_47, %c0_48] : memref<49x16x16xbf16, #tpu.memory_space<vmem>>, vector<1x16x16xbf16>
    %81 = vector.shape_cast %80 : vector<1x16x16xbf16> to vector<16x16xbf16>
    %cst_49 = arith.constant dense<0.000000e+00> : vector<16x896xf32>
    %82 = tpu.matmul %81, %79, %cst_49 {dimension_numbers = #tpu.dot_dimension_numbers<[1], [0], [0], [1], [0, 0, 1, 1], [], []>} : vector<16x16xbf16>, vector<16x896xbf16>, vector<16x896xf32> -> vector<16x896xf32>
    %83 = arith.addf %77, %82 : vector<16x896xf32>
    %84 = vector.extract_strided_slice %78 {offsets = [0, 1], sizes = [16, 896], strides = [1, 1]} : vector<16x902xbf16> to vector<16x896xbf16>
    %c15 = arith.constant 15 : index
    %c0_50 = arith.constant 0 : index
    %c0_51 = arith.constant 0 : index
    %85 = vector.load %arg3[%c15, %c0_50, %c0_51] : memref<49x16x16xbf16, #tpu.memory_space<vmem>>, vector<1x16x16xbf16>
    %86 = vector.shape_cast %85 : vector<1x16x16xbf16> to vector<16x16xbf16>
    %cst_52 = arith.constant dense<0.000000e+00> : vector<16x896xf32>
    %87 = tpu.matmul %86, %84, %cst_52 {dimension_numbers = #tpu.dot_dimension_numbers<[1], [0], [0], [1], [0, 0, 1, 1], [], []>} : vector<16x16xbf16>, vector<16x896xbf16>, vector<16x896xf32> -> vector<16x896xf32>
    %88 = arith.addf %83, %87 : vector<16x896xf32>
    %89 = vector.extract_strided_slice %78 {offsets = [0, 2], sizes = [16, 896], strides = [1, 1]} : vector<16x902xbf16> to vector<16x896xbf16>
    %c16 = arith.constant 16 : index
    %c0_53 = arith.constant 0 : index
    %c0_54 = arith.constant 0 : index
    %90 = vector.load %arg3[%c16, %c0_53, %c0_54] : memref<49x16x16xbf16, #tpu.memory_space<vmem>>, vector<1x16x16xbf16>
    %91 = vector.shape_cast %90 : vector<1x16x16xbf16> to vector<16x16xbf16>
    %cst_55 = arith.constant dense<0.000000e+00> : vector<16x896xf32>
    %92 = tpu.matmul %91, %89, %cst_55 {dimension_numbers = #tpu.dot_dimension_numbers<[1], [0], [0], [1], [0, 0, 1, 1], [], []>} : vector<16x16xbf16>, vector<16x896xbf16>, vector<16x896xf32> -> vector<16x896xf32>
    %93 = arith.addf %88, %92 : vector<16x896xf32>
    %94 = vector.extract_strided_slice %78 {offsets = [0, 3], sizes = [16, 896], strides = [1, 1]} : vector<16x902xbf16> to vector<16x896xbf16>
    %c17 = arith.constant 17 : index
    %c0_56 = arith.constant 0 : index
    %c0_57 = arith.constant 0 : index
    %95 = vector.load %arg3[%c17, %c0_56, %c0_57] : memref<49x16x16xbf16, #tpu.memory_space<vmem>>, vector<1x16x16xbf16>
    %96 = vector.shape_cast %95 : vector<1x16x16xbf16> to vector<16x16xbf16>
    %cst_58 = arith.constant dense<0.000000e+00> : vector<16x896xf32>
    %97 = tpu.matmul %96, %94, %cst_58 {dimension_numbers = #tpu.dot_dimension_numbers<[1], [0], [0], [1], [0, 0, 1, 1], [], []>} : vector<16x16xbf16>, vector<16x896xbf16>, vector<16x896xf32> -> vector<16x896xf32>
    %98 = arith.addf %93, %97 : vector<16x896xf32>
    %99 = vector.extract_strided_slice %78 {offsets = [0, 4], sizes = [16, 896], strides = [1, 1]} : vector<16x902xbf16> to vector<16x896xbf16>
    %c18 = arith.constant 18 : index
    %c0_59 = arith.constant 0 : index
    %c0_60 = arith.constant 0 : index
    %100 = vector.load %arg3[%c18, %c0_59, %c0_60] : memref<49x16x16xbf16, #tpu.memory_space<vmem>>, vector<1x16x16xbf16>
    %101 = vector.shape_cast %100 : vector<1x16x16xbf16> to vector<16x16xbf16>
    %cst_61 = arith.constant dense<0.000000e+00> : vector<16x896xf32>
    %102 = tpu.matmul %101, %99, %cst_61 {dimension_numbers = #tpu.dot_dimension_numbers<[1], [0], [0], [1], [0, 0, 1, 1], [], []>} : vector<16x16xbf16>, vector<16x896xbf16>, vector<16x896xf32> -> vector<16x896xf32>
    %103 = arith.addf %98, %102 : vector<16x896xf32>
    %104 = vector.extract_strided_slice %78 {offsets = [0, 5], sizes = [16, 896], strides = [1, 1]} : vector<16x902xbf16> to vector<16x896xbf16>
    %c19 = arith.constant 19 : index
    %c0_62 = arith.constant 0 : index
    %c0_63 = arith.constant 0 : index
    %105 = vector.load %arg3[%c19, %c0_62, %c0_63] : memref<49x16x16xbf16, #tpu.memory_space<vmem>>, vector<1x16x16xbf16>
    %106 = vector.shape_cast %105 : vector<1x16x16xbf16> to vector<16x16xbf16>
    %cst_64 = arith.constant dense<0.000000e+00> : vector<16x896xf32>
    %107 = tpu.matmul %106, %104, %cst_64 {dimension_numbers = #tpu.dot_dimension_numbers<[1], [0], [0], [1], [0, 0, 1, 1], [], []>} : vector<16x16xbf16>, vector<16x896xbf16>, vector<16x896xf32> -> vector<16x896xf32>
    %108 = arith.addf %103, %107 : vector<16x896xf32>
    %109 = vector.extract_strided_slice %78 {offsets = [0, 6], sizes = [16, 896], strides = [1, 1]} : vector<16x902xbf16> to vector<16x896xbf16>
    %c20 = arith.constant 20 : index
    %c0_65 = arith.constant 0 : index
    %c0_66 = arith.constant 0 : index
    %110 = vector.load %arg3[%c20, %c0_65, %c0_66] : memref<49x16x16xbf16, #tpu.memory_space<vmem>>, vector<1x16x16xbf16>
    %111 = vector.shape_cast %110 : vector<1x16x16xbf16> to vector<16x16xbf16>
    %cst_67 = arith.constant dense<0.000000e+00> : vector<16x896xf32>
    %112 = tpu.matmul %111, %109, %cst_67 {dimension_numbers = #tpu.dot_dimension_numbers<[1], [0], [0], [1], [0, 0, 1, 1], [], []>} : vector<16x16xbf16>, vector<16x896xbf16>, vector<16x896xf32> -> vector<16x896xf32>
    %113 = arith.addf %108, %112 : vector<16x896xf32>
    %114 = vector.extract_strided_slice %2 {offsets = [0, 96], sizes = [16, 902], strides = [1, 1]} : vector<16x1792xbf16> to vector<16x902xbf16>
    %115 = vector.extract_strided_slice %114 {offsets = [0, 0], sizes = [16, 896], strides = [1, 1]} : vector<16x902xbf16> to vector<16x896xbf16>
    %c21 = arith.constant 21 : index
    %c0_68 = arith.constant 0 : index
    %c0_69 = arith.constant 0 : index
    %116 = vector.load %arg3[%c21, %c0_68, %c0_69] : memref<49x16x16xbf16, #tpu.memory_space<vmem>>, vector<1x16x16xbf16>
    %117 = vector.shape_cast %116 : vector<1x16x16xbf16> to vector<16x16xbf16>
    %cst_70 = arith.constant dense<0.000000e+00> : vector<16x896xf32>
    %118 = tpu.matmul %117, %115, %cst_70 {dimension_numbers = #tpu.dot_dimension_numbers<[1], [0], [0], [1], [0, 0, 1, 1], [], []>} : vector<16x16xbf16>, vector<16x896xbf16>, vector<16x896xf32> -> vector<16x896xf32>
    %119 = arith.addf %113, %118 : vector<16x896xf32>
    %120 = vector.extract_strided_slice %114 {offsets = [0, 1], sizes = [16, 896], strides = [1, 1]} : vector<16x902xbf16> to vector<16x896xbf16>
    %c22 = arith.constant 22 : index
    %c0_71 = arith.constant 0 : index
    %c0_72 = arith.constant 0 : index
    %121 = vector.load %arg3[%c22, %c0_71, %c0_72] : memref<49x16x16xbf16, #tpu.memory_space<vmem>>, vector<1x16x16xbf16>
    %122 = vector.shape_cast %121 : vector<1x16x16xbf16> to vector<16x16xbf16>
    %cst_73 = arith.constant dense<0.000000e+00> : vector<16x896xf32>
    %123 = tpu.matmul %122, %120, %cst_73 {dimension_numbers = #tpu.dot_dimension_numbers<[1], [0], [0], [1], [0, 0, 1, 1], [], []>} : vector<16x16xbf16>, vector<16x896xbf16>, vector<16x896xf32> -> vector<16x896xf32>
    %124 = arith.addf %119, %123 : vector<16x896xf32>
    %125 = vector.extract_strided_slice %114 {offsets = [0, 2], sizes = [16, 896], strides = [1, 1]} : vector<16x902xbf16> to vector<16x896xbf16>
    %c23 = arith.constant 23 : index
    %c0_74 = arith.constant 0 : index
    %c0_75 = arith.constant 0 : index
    %126 = vector.load %arg3[%c23, %c0_74, %c0_75] : memref<49x16x16xbf16, #tpu.memory_space<vmem>>, vector<1x16x16xbf16>
    %127 = vector.shape_cast %126 : vector<1x16x16xbf16> to vector<16x16xbf16>
    %cst_76 = arith.constant dense<0.000000e+00> : vector<16x896xf32>
    %128 = tpu.matmul %127, %125, %cst_76 {dimension_numbers = #tpu.dot_dimension_numbers<[1], [0], [0], [1], [0, 0, 1, 1], [], []>} : vector<16x16xbf16>, vector<16x896xbf16>, vector<16x896xf32> -> vector<16x896xf32>
    %129 = arith.addf %124, %128 : vector<16x896xf32>
    %130 = vector.extract_strided_slice %114 {offsets = [0, 3], sizes = [16, 896], strides = [1, 1]} : vector<16x902xbf16> to vector<16x896xbf16>
    %c24 = arith.constant 24 : index
    %c0_77 = arith.constant 0 : index
    %c0_78 = arith.constant 0 : index
    %131 = vector.load %arg3[%c24, %c0_77, %c0_78] : memref<49x16x16xbf16, #tpu.memory_space<vmem>>, vector<1x16x16xbf16>
    %132 = vector.shape_cast %131 : vector<1x16x16xbf16> to vector<16x16xbf16>
    %cst_79 = arith.constant dense<0.000000e+00> : vector<16x896xf32>
    %133 = tpu.matmul %132, %130, %cst_79 {dimension_numbers = #tpu.dot_dimension_numbers<[1], [0], [0], [1], [0, 0, 1, 1], [], []>} : vector<16x16xbf16>, vector<16x896xbf16>, vector<16x896xf32> -> vector<16x896xf32>
    %134 = arith.addf %129, %133 : vector<16x896xf32>
    %135 = vector.extract_strided_slice %114 {offsets = [0, 4], sizes = [16, 896], strides = [1, 1]} : vector<16x902xbf16> to vector<16x896xbf16>
    %c25 = arith.constant 25 : index
    %c0_80 = arith.constant 0 : index
    %c0_81 = arith.constant 0 : index
    %136 = vector.load %arg3[%c25, %c0_80, %c0_81] : memref<49x16x16xbf16, #tpu.memory_space<vmem>>, vector<1x16x16xbf16>
    %137 = vector.shape_cast %136 : vector<1x16x16xbf16> to vector<16x16xbf16>
    %cst_82 = arith.constant dense<0.000000e+00> : vector<16x896xf32>
    %138 = tpu.matmul %137, %135, %cst_82 {dimension_numbers = #tpu.dot_dimension_numbers<[1], [0], [0], [1], [0, 0, 1, 1], [], []>} : vector<16x16xbf16>, vector<16x896xbf16>, vector<16x896xf32> -> vector<16x896xf32>
    %139 = arith.addf %134, %138 : vector<16x896xf32>
    %140 = vector.extract_strided_slice %114 {offsets = [0, 5], sizes = [16, 896], strides = [1, 1]} : vector<16x902xbf16> to vector<16x896xbf16>
    %c26 = arith.constant 26 : index
    %c0_83 = arith.constant 0 : index
    %c0_84 = arith.constant 0 : index
    %141 = vector.load %arg3[%c26, %c0_83, %c0_84] : memref<49x16x16xbf16, #tpu.memory_space<vmem>>, vector<1x16x16xbf16>
    %142 = vector.shape_cast %141 : vector<1x16x16xbf16> to vector<16x16xbf16>
    %cst_85 = arith.constant dense<0.000000e+00> : vector<16x896xf32>
    %143 = tpu.matmul %142, %140, %cst_85 {dimension_numbers = #tpu.dot_dimension_numbers<[1], [0], [0], [1], [0, 0, 1, 1], [], []>} : vector<16x16xbf16>, vector<16x896xbf16>, vector<16x896xf32> -> vector<16x896xf32>
    %144 = arith.addf %139, %143 : vector<16x896xf32>
    %145 = vector.extract_strided_slice %114 {offsets = [0, 6], sizes = [16, 896], strides = [1, 1]} : vector<16x902xbf16> to vector<16x896xbf16>
    %c27 = arith.constant 27 : index
    %c0_86 = arith.constant 0 : index
    %c0_87 = arith.constant 0 : index
    %146 = vector.load %arg3[%c27, %c0_86, %c0_87] : memref<49x16x16xbf16, #tpu.memory_space<vmem>>, vector<1x16x16xbf16>
    %147 = vector.shape_cast %146 : vector<1x16x16xbf16> to vector<16x16xbf16>
    %cst_88 = arith.constant dense<0.000000e+00> : vector<16x896xf32>
    %148 = tpu.matmul %147, %145, %cst_88 {dimension_numbers = #tpu.dot_dimension_numbers<[1], [0], [0], [1], [0, 0, 1, 1], [], []>} : vector<16x16xbf16>, vector<16x896xbf16>, vector<16x896xf32> -> vector<16x896xf32>
    %149 = arith.addf %144, %148 : vector<16x896xf32>
    %150 = vector.extract_strided_slice %2 {offsets = [0, 128], sizes = [16, 902], strides = [1, 1]} : vector<16x1792xbf16> to vector<16x902xbf16>
    %151 = vector.extract_strided_slice %150 {offsets = [0, 0], sizes = [16, 896], strides = [1, 1]} : vector<16x902xbf16> to vector<16x896xbf16>
    %c28 = arith.constant 28 : index
    %c0_89 = arith.constant 0 : index
    %c0_90 = arith.constant 0 : index
    %152 = vector.load %arg3[%c28, %c0_89, %c0_90] : memref<49x16x16xbf16, #tpu.memory_space<vmem>>, vector<1x16x16xbf16>
    %153 = vector.shape_cast %152 : vector<1x16x16xbf16> to vector<16x16xbf16>
    %cst_91 = arith.constant dense<0.000000e+00> : vector<16x896xf32>
    %154 = tpu.matmul %153, %151, %cst_91 {dimension_numbers = #tpu.dot_dimension_numbers<[1], [0], [0], [1], [0, 0, 1, 1], [], []>} : vector<16x16xbf16>, vector<16x896xbf16>, vector<16x896xf32> -> vector<16x896xf32>
    %155 = arith.addf %149, %154 : vector<16x896xf32>
    %156 = vector.extract_strided_slice %150 {offsets = [0, 1], sizes = [16, 896], strides = [1, 1]} : vector<16x902xbf16> to vector<16x896xbf16>
    %c29 = arith.constant 29 : index
    %c0_92 = arith.constant 0 : index
    %c0_93 = arith.constant 0 : index
    %157 = vector.load %arg3[%c29, %c0_92, %c0_93] : memref<49x16x16xbf16, #tpu.memory_space<vmem>>, vector<1x16x16xbf16>
    %158 = vector.shape_cast %157 : vector<1x16x16xbf16> to vector<16x16xbf16>
    %cst_94 = arith.constant dense<0.000000e+00> : vector<16x896xf32>
    %159 = tpu.matmul %158, %156, %cst_94 {dimension_numbers = #tpu.dot_dimension_numbers<[1], [0], [0], [1], [0, 0, 1, 1], [], []>} : vector<16x16xbf16>, vector<16x896xbf16>, vector<16x896xf32> -> vector<16x896xf32>
    %160 = arith.addf %155, %159 : vector<16x896xf32>
    %161 = vector.extract_strided_slice %150 {offsets = [0, 2], sizes = [16, 896], strides = [1, 1]} : vector<16x902xbf16> to vector<16x896xbf16>
    %c30 = arith.constant 30 : index
    %c0_95 = arith.constant 0 : index
    %c0_96 = arith.constant 0 : index
    %162 = vector.load %arg3[%c30, %c0_95, %c0_96] : memref<49x16x16xbf16, #tpu.memory_space<vmem>>, vector<1x16x16xbf16>
    %163 = vector.shape_cast %162 : vector<1x16x16xbf16> to vector<16x16xbf16>
    %cst_97 = arith.constant dense<0.000000e+00> : vector<16x896xf32>
    %164 = tpu.matmul %163, %161, %cst_97 {dimension_numbers = #tpu.dot_dimension_numbers<[1], [0], [0], [1], [0, 0, 1, 1], [], []>} : vector<16x16xbf16>, vector<16x896xbf16>, vector<16x896xf32> -> vector<16x896xf32>
    %165 = arith.addf %160, %164 : vector<16x896xf32>
    %166 = vector.extract_strided_slice %150 {offsets = [0, 3], sizes = [16, 896], strides = [1, 1]} : vector<16x902xbf16> to vector<16x896xbf16>
    %c31 = arith.constant 31 : index
    %c0_98 = arith.constant 0 : index
    %c0_99 = arith.constant 0 : index
    %167 = vector.load %arg3[%c31, %c0_98, %c0_99] : memref<49x16x16xbf16, #tpu.memory_space<vmem>>, vector<1x16x16xbf16>
    %168 = vector.shape_cast %167 : vector<1x16x16xbf16> to vector<16x16xbf16>
    %cst_100 = arith.constant dense<0.000000e+00> : vector<16x896xf32>
    %169 = tpu.matmul %168, %166, %cst_100 {dimension_numbers = #tpu.dot_dimension_numbers<[1], [0], [0], [1], [0, 0, 1, 1], [], []>} : vector<16x16xbf16>, vector<16x896xbf16>, vector<16x896xf32> -> vector<16x896xf32>
    %170 = arith.addf %165, %169 : vector<16x896xf32>
    %171 = vector.extract_strided_slice %150 {offsets = [0, 4], sizes = [16, 896], strides = [1, 1]} : vector<16x902xbf16> to vector<16x896xbf16>
    %c32 = arith.constant 32 : index
    %c0_101 = arith.constant 0 : index
    %c0_102 = arith.constant 0 : index
    %172 = vector.load %arg3[%c32, %c0_101, %c0_102] : memref<49x16x16xbf16, #tpu.memory_space<vmem>>, vector<1x16x16xbf16>
    %173 = vector.shape_cast %172 : vector<1x16x16xbf16> to vector<16x16xbf16>
    %cst_103 = arith.constant dense<0.000000e+00> : vector<16x896xf32>
    %174 = tpu.matmul %173, %171, %cst_103 {dimension_numbers = #tpu.dot_dimension_numbers<[1], [0], [0], [1], [0, 0, 1, 1], [], []>} : vector<16x16xbf16>, vector<16x896xbf16>, vector<16x896xf32> -> vector<16x896xf32>
    %175 = arith.addf %170, %174 : vector<16x896xf32>
    %176 = vector.extract_strided_slice %150 {offsets = [0, 5], sizes = [16, 896], strides = [1, 1]} : vector<16x902xbf16> to vector<16x896xbf16>
    %c33 = arith.constant 33 : index
    %c0_104 = arith.constant 0 : index
    %c0_105 = arith.constant 0 : index
    %177 = vector.load %arg3[%c33, %c0_104, %c0_105] : memref<49x16x16xbf16, #tpu.memory_space<vmem>>, vector<1x16x16xbf16>
    %178 = vector.shape_cast %177 : vector<1x16x16xbf16> to vector<16x16xbf16>
    %cst_106 = arith.constant dense<0.000000e+00> : vector<16x896xf32>
    %179 = tpu.matmul %178, %176, %cst_106 {dimension_numbers = #tpu.dot_dimension_numbers<[1], [0], [0], [1], [0, 0, 1, 1], [], []>} : vector<16x16xbf16>, vector<16x896xbf16>, vector<16x896xf32> -> vector<16x896xf32>
    %180 = arith.addf %175, %179 : vector<16x896xf32>
    %181 = vector.extract_strided_slice %150 {offsets = [0, 6], sizes = [16, 896], strides = [1, 1]} : vector<16x902xbf16> to vector<16x896xbf16>
    %c34 = arith.constant 34 : index
    %c0_107 = arith.constant 0 : index
    %c0_108 = arith.constant 0 : index
    %182 = vector.load %arg3[%c34, %c0_107, %c0_108] : memref<49x16x16xbf16, #tpu.memory_space<vmem>>, vector<1x16x16xbf16>
    %183 = vector.shape_cast %182 : vector<1x16x16xbf16> to vector<16x16xbf16>
    %cst_109 = arith.constant dense<0.000000e+00> : vector<16x896xf32>
    %184 = tpu.matmul %183, %181, %cst_109 {dimension_numbers = #tpu.dot_dimension_numbers<[1], [0], [0], [1], [0, 0, 1, 1], [], []>} : vector<16x16xbf16>, vector<16x896xbf16>, vector<16x896xf32> -> vector<16x896xf32>
    %185 = arith.addf %180, %184 : vector<16x896xf32>
    %186 = vector.extract_strided_slice %2 {offsets = [0, 160], sizes = [16, 902], strides = [1, 1]} : vector<16x1792xbf16> to vector<16x902xbf16>
    %187 = vector.extract_strided_slice %186 {offsets = [0, 0], sizes = [16, 896], strides = [1, 1]} : vector<16x902xbf16> to vector<16x896xbf16>
    %c35 = arith.constant 35 : index
    %c0_110 = arith.constant 0 : index
    %c0_111 = arith.constant 0 : index
    %188 = vector.load %arg3[%c35, %c0_110, %c0_111] : memref<49x16x16xbf16, #tpu.memory_space<vmem>>, vector<1x16x16xbf16>
    %189 = vector.shape_cast %188 : vector<1x16x16xbf16> to vector<16x16xbf16>
    %cst_112 = arith.constant dense<0.000000e+00> : vector<16x896xf32>
    %190 = tpu.matmul %189, %187, %cst_112 {dimension_numbers = #tpu.dot_dimension_numbers<[1], [0], [0], [1], [0, 0, 1, 1], [], []>} : vector<16x16xbf16>, vector<16x896xbf16>, vector<16x896xf32> -> vector<16x896xf32>
    %191 = arith.addf %185, %190 : vector<16x896xf32>
    %192 = vector.extract_strided_slice %186 {offsets = [0, 1], sizes = [16, 896], strides = [1, 1]} : vector<16x902xbf16> to vector<16x896xbf16>
    %c36 = arith.constant 36 : index
    %c0_113 = arith.constant 0 : index
    %c0_114 = arith.constant 0 : index
    %193 = vector.load %arg3[%c36, %c0_113, %c0_114] : memref<49x16x16xbf16, #tpu.memory_space<vmem>>, vector<1x16x16xbf16>
    %194 = vector.shape_cast %193 : vector<1x16x16xbf16> to vector<16x16xbf16>
    %cst_115 = arith.constant dense<0.000000e+00> : vector<16x896xf32>
    %195 = tpu.matmul %194, %192, %cst_115 {dimension_numbers = #tpu.dot_dimension_numbers<[1], [0], [0], [1], [0, 0, 1, 1], [], []>} : vector<16x16xbf16>, vector<16x896xbf16>, vector<16x896xf32> -> vector<16x896xf32>
    %196 = arith.addf %191, %195 : vector<16x896xf32>
    %197 = vector.extract_strided_slice %186 {offsets = [0, 2], sizes = [16, 896], strides = [1, 1]} : vector<16x902xbf16> to vector<16x896xbf16>
    %c37 = arith.constant 37 : index
    %c0_116 = arith.constant 0 : index
    %c0_117 = arith.constant 0 : index
    %198 = vector.load %arg3[%c37, %c0_116, %c0_117] : memref<49x16x16xbf16, #tpu.memory_space<vmem>>, vector<1x16x16xbf16>
    %199 = vector.shape_cast %198 : vector<1x16x16xbf16> to vector<16x16xbf16>
    %cst_118 = arith.constant dense<0.000000e+00> : vector<16x896xf32>
    %200 = tpu.matmul %199, %197, %cst_118 {dimension_numbers = #tpu.dot_dimension_numbers<[1], [0], [0], [1], [0, 0, 1, 1], [], []>} : vector<16x16xbf16>, vector<16x896xbf16>, vector<16x896xf32> -> vector<16x896xf32>
    %201 = arith.addf %196, %200 : vector<16x896xf32>
    %202 = vector.extract_strided_slice %186 {offsets = [0, 3], sizes = [16, 896], strides = [1, 1]} : vector<16x902xbf16> to vector<16x896xbf16>
    %c38 = arith.constant 38 : index
    %c0_119 = arith.constant 0 : index
    %c0_120 = arith.constant 0 : index
    %203 = vector.load %arg3[%c38, %c0_119, %c0_120] : memref<49x16x16xbf16, #tpu.memory_space<vmem>>, vector<1x16x16xbf16>
    %204 = vector.shape_cast %203 : vector<1x16x16xbf16> to vector<16x16xbf16>
    %cst_121 = arith.constant dense<0.000000e+00> : vector<16x896xf32>
    %205 = tpu.matmul %204, %202, %cst_121 {dimension_numbers = #tpu.dot_dimension_numbers<[1], [0], [0], [1], [0, 0, 1, 1], [], []>} : vector<16x16xbf16>, vector<16x896xbf16>, vector<16x896xf32> -> vector<16x896xf32>
    %206 = arith.addf %201, %205 : vector<16x896xf32>
    %207 = vector.extract_strided_slice %186 {offsets = [0, 4], sizes = [16, 896], strides = [1, 1]} : vector<16x902xbf16> to vector<16x896xbf16>
    %c39 = arith.constant 39 : index
    %c0_122 = arith.constant 0 : index
    %c0_123 = arith.constant 0 : index
    %208 = vector.load %arg3[%c39, %c0_122, %c0_123] : memref<49x16x16xbf16, #tpu.memory_space<vmem>>, vector<1x16x16xbf16>
    %209 = vector.shape_cast %208 : vector<1x16x16xbf16> to vector<16x16xbf16>
    %cst_124 = arith.constant dense<0.000000e+00> : vector<16x896xf32>
    %210 = tpu.matmul %209, %207, %cst_124 {dimension_numbers = #tpu.dot_dimension_numbers<[1], [0], [0], [1], [0, 0, 1, 1], [], []>} : vector<16x16xbf16>, vector<16x896xbf16>, vector<16x896xf32> -> vector<16x896xf32>
    %211 = arith.addf %206, %210 : vector<16x896xf32>
    %212 = vector.extract_strided_slice %186 {offsets = [0, 5], sizes = [16, 896], strides = [1, 1]} : vector<16x902xbf16> to vector<16x896xbf16>
    %c40 = arith.constant 40 : index
    %c0_125 = arith.constant 0 : index
    %c0_126 = arith.constant 0 : index
    %213 = vector.load %arg3[%c40, %c0_125, %c0_126] : memref<49x16x16xbf16, #tpu.memory_space<vmem>>, vector<1x16x16xbf16>
    %214 = vector.shape_cast %213 : vector<1x16x16xbf16> to vector<16x16xbf16>
    %cst_127 = arith.constant dense<0.000000e+00> : vector<16x896xf32>
    %215 = tpu.matmul %214, %212, %cst_127 {dimension_numbers = #tpu.dot_dimension_numbers<[1], [0], [0], [1], [0, 0, 1, 1], [], []>} : vector<16x16xbf16>, vector<16x896xbf16>, vector<16x896xf32> -> vector<16x896xf32>
    %216 = arith.addf %211, %215 : vector<16x896xf32>
    %217 = vector.extract_strided_slice %186 {offsets = [0, 6], sizes = [16, 896], strides = [1, 1]} : vector<16x902xbf16> to vector<16x896xbf16>
    %c41 = arith.constant 41 : index
    %c0_128 = arith.constant 0 : index
    %c0_129 = arith.constant 0 : index
    %218 = vector.load %arg3[%c41, %c0_128, %c0_129] : memref<49x16x16xbf16, #tpu.memory_space<vmem>>, vector<1x16x16xbf16>
    %219 = vector.shape_cast %218 : vector<1x16x16xbf16> to vector<16x16xbf16>
    %cst_130 = arith.constant dense<0.000000e+00> : vector<16x896xf32>
    %220 = tpu.matmul %219, %217, %cst_130 {dimension_numbers = #tpu.dot_dimension_numbers<[1], [0], [0], [1], [0, 0, 1, 1], [], []>} : vector<16x16xbf16>, vector<16x896xbf16>, vector<16x896xf32> -> vector<16x896xf32>
    %221 = arith.addf %216, %220 : vector<16x896xf32>
    %222 = vector.extract_strided_slice %2 {offsets = [0, 192], sizes = [16, 902], strides = [1, 1]} : vector<16x1792xbf16> to vector<16x902xbf16>
    %223 = vector.extract_strided_slice %222 {offsets = [0, 0], sizes = [16, 896], strides = [1, 1]} : vector<16x902xbf16> to vector<16x896xbf16>
    %c42 = arith.constant 42 : index
    %c0_131 = arith.constant 0 : index
    %c0_132 = arith.constant 0 : index
    %224 = vector.load %arg3[%c42, %c0_131, %c0_132] : memref<49x16x16xbf16, #tpu.memory_space<vmem>>, vector<1x16x16xbf16>
    %225 = vector.shape_cast %224 : vector<1x16x16xbf16> to vector<16x16xbf16>
    %cst_133 = arith.constant dense<0.000000e+00> : vector<16x896xf32>
    %226 = tpu.matmul %225, %223, %cst_133 {dimension_numbers = #tpu.dot_dimension_numbers<[1], [0], [0], [1], [0, 0, 1, 1], [], []>} : vector<16x16xbf16>, vector<16x896xbf16>, vector<16x896xf32> -> vector<16x896xf32>
    %227 = arith.addf %221, %226 : vector<16x896xf32>
    %228 = vector.extract_strided_slice %222 {offsets = [0, 1], sizes = [16, 896], strides = [1, 1]} : vector<16x902xbf16> to vector<16x896xbf16>
    %c43 = arith.constant 43 : index
    %c0_134 = arith.constant 0 : index
    %c0_135 = arith.constant 0 : index
    %229 = vector.load %arg3[%c43, %c0_134, %c0_135] : memref<49x16x16xbf16, #tpu.memory_space<vmem>>, vector<1x16x16xbf16>
    %230 = vector.shape_cast %229 : vector<1x16x16xbf16> to vector<16x16xbf16>
    %cst_136 = arith.constant dense<0.000000e+00> : vector<16x896xf32>
    %231 = tpu.matmul %230, %228, %cst_136 {dimension_numbers = #tpu.dot_dimension_numbers<[1], [0], [0], [1], [0, 0, 1, 1], [], []>} : vector<16x16xbf16>, vector<16x896xbf16>, vector<16x896xf32> -> vector<16x896xf32>
    %232 = arith.addf %227, %231 : vector<16x896xf32>
    %233 = vector.extract_strided_slice %222 {offsets = [0, 2], sizes = [16, 896], strides = [1, 1]} : vector<16x902xbf16> to vector<16x896xbf16>
    %c44 = arith.constant 44 : index
    %c0_137 = arith.constant 0 : index
    %c0_138 = arith.constant 0 : index
    %234 = vector.load %arg3[%c44, %c0_137, %c0_138] : memref<49x16x16xbf16, #tpu.memory_space<vmem>>, vector<1x16x16xbf16>
    %235 = vector.shape_cast %234 : vector<1x16x16xbf16> to vector<16x16xbf16>
    %cst_139 = arith.constant dense<0.000000e+00> : vector<16x896xf32>
    %236 = tpu.matmul %235, %233, %cst_139 {dimension_numbers = #tpu.dot_dimension_numbers<[1], [0], [0], [1], [0, 0, 1, 1], [], []>} : vector<16x16xbf16>, vector<16x896xbf16>, vector<16x896xf32> -> vector<16x896xf32>
    %237 = arith.addf %232, %236 : vector<16x896xf32>
    %238 = vector.extract_strided_slice %222 {offsets = [0, 3], sizes = [16, 896], strides = [1, 1]} : vector<16x902xbf16> to vector<16x896xbf16>
    %c45 = arith.constant 45 : index
    %c0_140 = arith.constant 0 : index
    %c0_141 = arith.constant 0 : index
    %239 = vector.load %arg3[%c45, %c0_140, %c0_141] : memref<49x16x16xbf16, #tpu.memory_space<vmem>>, vector<1x16x16xbf16>
    %240 = vector.shape_cast %239 : vector<1x16x16xbf16> to vector<16x16xbf16>
    %cst_142 = arith.constant dense<0.000000e+00> : vector<16x896xf32>
    %241 = tpu.matmul %240, %238, %cst_142 {dimension_numbers = #tpu.dot_dimension_numbers<[1], [0], [0], [1], [0, 0, 1, 1], [], []>} : vector<16x16xbf16>, vector<16x896xbf16>, vector<16x896xf32> -> vector<16x896xf32>
    %242 = arith.addf %237, %241 : vector<16x896xf32>
    %243 = vector.extract_strided_slice %222 {offsets = [0, 4], sizes = [16, 896], strides = [1, 1]} : vector<16x902xbf16> to vector<16x896xbf16>
    %c46 = arith.constant 46 : index
    %c0_143 = arith.constant 0 : index
    %c0_144 = arith.constant 0 : index
    %244 = vector.load %arg3[%c46, %c0_143, %c0_144] : memref<49x16x16xbf16, #tpu.memory_space<vmem>>, vector<1x16x16xbf16>
    %245 = vector.shape_cast %244 : vector<1x16x16xbf16> to vector<16x16xbf16>
    %cst_145 = arith.constant dense<0.000000e+00> : vector<16x896xf32>
    %246 = tpu.matmul %245, %243, %cst_145 {dimension_numbers = #tpu.dot_dimension_numbers<[1], [0], [0], [1], [0, 0, 1, 1], [], []>} : vector<16x16xbf16>, vector<16x896xbf16>, vector<16x896xf32> -> vector<16x896xf32>
    %247 = arith.addf %242, %246 : vector<16x896xf32>
    %248 = vector.extract_strided_slice %222 {offsets = [0, 5], sizes = [16, 896], strides = [1, 1]} : vector<16x902xbf16> to vector<16x896xbf16>
    %c47 = arith.constant 47 : index
    %c0_146 = arith.constant 0 : index
    %c0_147 = arith.constant 0 : index
    %249 = vector.load %arg3[%c47, %c0_146, %c0_147] : memref<49x16x16xbf16, #tpu.memory_space<vmem>>, vector<1x16x16xbf16>
    %250 = vector.shape_cast %249 : vector<1x16x16xbf16> to vector<16x16xbf16>
    %cst_148 = arith.constant dense<0.000000e+00> : vector<16x896xf32>
    %251 = tpu.matmul %250, %248, %cst_148 {dimension_numbers = #tpu.dot_dimension_numbers<[1], [0], [0], [1], [0, 0, 1, 1], [], []>} : vector<16x16xbf16>, vector<16x896xbf16>, vector<16x896xf32> -> vector<16x896xf32>
    %252 = arith.addf %247, %251 : vector<16x896xf32>
    %253 = vector.extract_strided_slice %222 {offsets = [0, 6], sizes = [16, 896], strides = [1, 1]} : vector<16x902xbf16> to vector<16x896xbf16>
    %c48 = arith.constant 48 : index
    %c0_149 = arith.constant 0 : index
    %c0_150 = arith.constant 0 : index
    %254 = vector.load %arg3[%c48, %c0_149, %c0_150] : memref<49x16x16xbf16, #tpu.memory_space<vmem>>, vector<1x16x16xbf16>
    %255 = vector.shape_cast %254 : vector<1x16x16xbf16> to vector<16x16xbf16>
    %cst_151 = arith.constant dense<0.000000e+00> : vector<16x896xf32>
    %256 = tpu.matmul %255, %253, %cst_151 {dimension_numbers = #tpu.dot_dimension_numbers<[1], [0], [0], [1], [0, 0, 1, 1], [], []>} : vector<16x16xbf16>, vector<16x896xbf16>, vector<16x896xf32> -> vector<16x896xf32>
    %257 = arith.addf %252, %256 : vector<16x896xf32>
    %258 = arith.negf %257 : vector<16x896xf32>
    %259 = math.exp %258 : vector<16x896xf32>
    %cst_152 = arith.constant 1.000000e+00 : f32
    %260 = vector.broadcast %cst_152 : f32 to vector<16x896xf32>
    %261 = arith.addf %260, %259 : vector<16x896xf32>
    %262 = arith.divf %260, %261 : vector<16x896xf32>
    %c0_153 = arith.constant 0 : index
    %c0_154 = arith.constant 0 : index
    %263 = vector.load %arg5[%c0_153, %c0_154] : memref<16x896xf32, #tpu.memory_space<vmem>>, vector<16x896xf32>
    tpu.vector_store %arg5[%c0_153, %c0_154], %262 {strides = array<i32>} : memref<16x896xf32, #tpu.memory_space<vmem>>, vector<16x896xf32>,
    return
  }
  func.func @transform_0(%arg0: i32) -> (i32, i32) {
    %c0_i32 = arith.constant 0 : i32
    %c0_i32_0 = arith.constant 0 : i32
    return %c0_i32, %arg0 : i32, i32
  }
  func.func @transform_1(%arg0: i32) -> (i32, i32) {
    %c1_i32 = arith.constant 1 : i32
    %0 = arith.addi %arg0, %c1_i32 : i32
    %c0_i32 = arith.constant 0 : i32
    %c0_i32_0 = arith.constant 0 : i32
    return %c0_i32, %0 : i32, i32
  }
  func.func @transform_2(%arg0: i32) -> (i32, i32, i32) {
    %c0_i32 = arith.constant 0 : i32
    %c0_i32_0 = arith.constant 0 : i32
    %c0_i32_1 = arith.constant 0 : i32
    %c0_i32_2 = arith.constant 0 : i32
    return %c0_i32, %c0_i32_0, %c0_i32_1 : i32, i32, i32
  }
  func.func @transform_3(%arg0: i32) -> (i32, i32) {
    %c0_i32 = arith.constant 0 : i32
    %c0_i32_0 = arith.constant 0 : i32
    %c0_i32_1 = arith.constant 0 : i32
    return %c0_i32, %c0_i32_0 : i32, i32
  }
  func.func @transform_4(%arg0: i32) -> (i32, i32) {
    %c0_i32 = arith.constant 0 : i32
    %c0_i32_0 = arith.constant 0 : i32
    return %c0_i32, %arg0 : i32, i32
  }
}

</mosaic_0001>

<bundles_post_ra>
// kernel: conv2d_sigmoid_pallas.1
= control target key start
LH: loop header
LB: loop body
LE: loop exit
PB: predicated region body
PF: predicated region fallthrough
CT: control target
= control target key end

     0   :  { %v14525_v8 = vmov 0   ;;  %s12466_s7 = smov 127   ;;  %vm182_vm0 = vcmask 130048   ;;  %v14529_v17 = vmov 0.0   ;;  %vm12468_vm1 = vmmov 0   ;;  %s12470_s11 = smov 125   ;;  %s14520_s0 = inlined_call_operand.vmem [shape: bf16[16,1792], index: 0, kind: input, shape index: {}, may-alias: {0,1}]   ;;  %s14521_s1 = inlined_call_operand.vmem [shape: bf16[16,1792], index: 1, kind: input, shape index: {}, may-alias: {0,1}]   ;;  %s14522_s2 = inlined_call_operand.vmem [shape: bf16[49,16,16], index: 2, kind: input, shape index: {}]   ;;  %s14523_s3 = inlined_call_operand.vmem [shape: f32[16,1], index: 3, kind: input, shape index: {}]   ;;  %s14524_s4 = inlined_call_operand.vmem [shape: f32[16,896], index: 4, kind: output, shape index: {}]  }
   0x1   :  { %v25_v0 = vld [vmem:[%s14520_s0] sm:$0xff]  ;;  %v31_v1 = vld [vmem:[%s14520_s0 + $0x38] sm:$0xff]  ;;  %v27_v2 = vld [vmem:[%s14520_s0 + $0x8] sm:$0xff]  ;;  %218 = vmatprep.mubr.bf16.mxu0 %v14525_v8  ;;  %261 = vmatprep.mubr.bf16.mxu1 %v14525_v8  ;;  %s12471_s12 = smov 124   ;;  %s12472_s13 = smov 123   ;;  %vm394_vm2 = vcmask 1039360  }
   0x2   :  { %v12529_v3 = vcombine.high %v25_v0, %v31_v1  ;;  %v12531_v4 = vcombine.low %v25_v0, %v31_v1  ;;  %v33_v5 = vld [vmem:[%s14520_s0 + $0x40] sm:$0xff]  ;;  %v29_v6 = vld [vmem:[%s14520_s0 + $0x10] sm:$0xff]  ;;  %v35_v7 = vld [vmem:[%s14520_s0 + $0x48] sm:$0xff]  ;;  %12345 = vset.pattern.permute.xlu0 %v14525_v8  ;;  %12346 = vset.pattern.permute.xlu1 %v14525_v8  ;;  %s12473_s14 = smov 122   ;;  %s12474_s15 = smov 96   ;;  %vm620_vm3 = vcmask 1031168  }
   0x3   :  { %v12544_v9 = vcombine.high %v27_v2, %v33_v5  ;;  %v10767_v10 = vld [vmem:[%s14520_s0 + $0x18] sm:$0xf]  ;;  %v10768_v11 = vld [vmem:[%s14520_s0 + $0x50] sm:$0xf]  ;;  %v10769_v12 = vld [vmem:[%s14521_s1 + $0x1c] sm:$0xff]  ;;  %v12560_v13 = vcombine.low %v27_v2, %v33_v5  ;;  %v12565_v15 = vcombine.high %v29_v6, %v35_v7  ;;  %v12580_v18 = vcombine.low %v29_v6, %v35_v7  ;;  %s12475_s16 = smov 95  }
   0x4   :  { %380 = vrot.lane.b32.xlu0 %v12529_v3, %s12466_s7  ;;  %378 = vrot.lane.b32.xlu1 %v12531_v4, %s12466_s7  ;;  %47 = vst [vmem:[#allocation2 + $0x18] sm:$0xf] %v10767_v10  ;;  %49 = vst [vmem:[#allocation2 + $0x34] sm:$0xf] %v10768_v11  ;;  %v10772_v14 = vld [vmem:[%s14521_s1 + $0x54] sm:$0xff]  ;;  %v12355_v16 = vld [vmem:[%s14522_s2] sm:$0xff]  }
   0x5   :  { %72 = vst [vmem:[#allocation3] sm:$0xff] %v10769_v12  ;;  %78 = vst [vmem:[#allocation3 + $0x1c] sm:$0xff] %v10772_v14  ;;  %186 = vmatprep.subr.bf16.mxu0 %v12529_v3  ;;  %229 = vmatprep.subr.bf16.mxu1 %v12544_v9  ;;  %v12595_v20 = vcombine.low %v10769_v12, %v10772_v14  ;;  %s12469_s1 = smov 126   ;;  %v12356_v27 = vld [vmem:[%s14522_s2 + $0x8] sm:$0xff]   ;;  %s12476_s19 = smov 94   ;;  %v12357_v43 = vld [vmem:[%s14522_s2 + $0x10] sm:$0xff]  }
   0x6   :  { %187 = vmatpush1.bf16.msra.mxu0 %v12531_v4  ;;  %230 = vmatpush1.bf16.msra.mxu1 %v12560_v13  ;;  %s12477_s22 = smov 93   ;;  %vm846_vm4 = vcmask 1022976   ;;  %v12358_v59 = vld [vmem:[%s14522_s2 + $0x18] sm:$0xff]   ;;  %s12478_s25 = smov 92   ;;  %vm1072_vm5 = vcmask 1014784   ;;  %vm1298_vm6 = vcmask 1006592  }
   0x7   :  { %272 = vmatprep.subr.bf16.mxu0 %v12565_v15  ;;  %11239 = vmatprep.subr.bf16.mxu1 %v14529_v17  ;;  %s12479_s28 = smov 91   ;;  %s12480_s5 = smov 90   ;;  %vm1524_vm7 = vcmask 998400   ;;  %vm1750_vm8 = vcmask 785408   ;;  %vm1976_vm9 = vcmask 777216   ;;  %vm2202_vm10 = vcmask 769024  }
   0x8   :  { %382 = vrot.lane.b32.xlu0 %v12560_v13, %s12466_s7  ;;  %384 = vrot.lane.b32.xlu1 %v12544_v9, %s12466_s7  ;;  %s12481_s0 = smov 64   ;;  %s12482_s17 = smov 63   ;;  %vm2428_vm11 = vcmask 760832   ;;  %vm2654_vm12 = vcmask 752640   ;;  %vm2880_vm13 = vcmask 744448   ;;  %vm14578_vm14 = vcmask 736256  }
   0x9   :  { %10787 = vmatmul.mubr.msk.bf16.vlgmr.msra.gmra.mrb[0].mxu0 %vm182_vm0, %v12355_v16  ;;  %10788 = vmatmul.mubr.msk.bf16.vlgmr.msra.gmra.mrb[0].mxu1 %vm182_vm0, %v12355_v16  ;;  %s12483_s21 = smov 62   ;;  %s12484_s26 = smov 61   ;;  %vm14586_vm15 = vcmask 523264  }
   0xa   :  { %273 = vmatpush1.bf16.msra.mxu0 %v12580_v18  ;;  %304 = vmatprep.mubr.bf16.mxu0 %v14525_v8  ;;  %s12485_s30 = smov 60   ;;  %s12486_s9 = smov 59  }
   0xb   :  { %v12586_v19 = vld [vmem:[#allocation2 + $0x18] ss:$28 sps:$4 sm:$0xff]   ;;  %11241 = vmatprep.mubr.msk.bf16.mxu1 %vm12468_vm1, %v14529_v17  ;;  %s12487_s20 = smov 58   ;;  %s12488_s27 = smov 32  }
   0xc   :  { %386 = vrot.lane.b32.xlu0 %v12580_v18, %s12466_s7  ;;  %388 = vrot.lane.b32.xlu1 %v12565_v15, %s12466_s7  ;;  %s12489_s8 = smov 31   ;;  %s12490_s23 = smov 30  }
   0xd   :  { %11240 = vmatpush3.bf16.msra.mxu1 %v12586_v19  ;;  %s12491_s29 = smov 29   ;;  %s12492_s10 = smov 28  }
   0xe   :  { %s12493_s24 = smov 27   ;;  %s12494_s6 = smov 26  }
  0x10   :  { %390 = vrot.lane.b32.xlu0 %v12586_v19, %s12466_s7  ;;  %392 = vrot.lane.b32.xlu1 %v12595_v20, %s12466_s7 }
  0x11   :  { %10789 = vmatmul.mubr.msk.bf16.vlgmr.msra.gmra.mrb[4].mxu0 %vm182_vm0, %v12355_v16  ;;  %11242 = vmatmul.mubr.msk.bf16.vlgmr.msra.gmra.mrb[4].mxu1 %vm182_vm0, %v12355_v16 }
  0x12   :  { %444 = vmatprep.mubr.bf16.mxu0 %v14525_v8  ;;  %487 = vmatprep.mubr.bf16.mxu1 %v14525_v8 }
  0x14   :  { %606 = vrot.lane.b32.xlu0 %v12529_v3, %s12469_s1  ;;  %608 = vrot.lane.b32.xlu1 %v12560_v13, %s12469_s1 }
  0x18   :  { %604 = vrot.lane.b32.xlu0 %v12531_v4, %s12469_s1  ;;  %610 = vrot.lane.b32.xlu1 %v12544_v9, %s12469_s1 }
  0x1c   :  { %612 = vrot.lane.b32.xlu0 %v12580_v18, %s12469_s1  ;;  %614 = vrot.lane.b32.xlu1 %v12565_v15, %s12469_s1 }
  0x20   :  { %616 = vrot.lane.b32.xlu0 %v12586_v19, %s12469_s1  ;;  %618 = vrot.lane.b32.xlu1 %v12595_v20, %s12469_s1 }
  0x24   :  { %832 = vrot.lane.b32.xlu0 %v12529_v3, %s12470_s11  ;;  %834 = vrot.lane.b32.xlu1 %v12560_v13, %s12470_s11 }
  0x28   :  { %830 = vrot.lane.b32.xlu0 %v12531_v4, %s12470_s11  ;;  %836 = vrot.lane.b32.xlu1 %v12544_v9, %s12470_s11 }
  0x2c   :  { %838 = vrot.lane.b32.xlu0 %v12580_v18, %s12470_s11  ;;  %840 = vrot.lane.b32.xlu1 %v12565_v15, %s12470_s11 }
  0x30   :  { %842 = vrot.lane.b32.xlu0 %v12586_v19, %s12470_s11  ;;  %844 = vrot.lane.b32.xlu1 %v12595_v20, %s12470_s11 }
  0x34   :  { %1058 = vrot.lane.b32.xlu0 %v12529_v3, %s12471_s12  ;;  %1060 = vrot.lane.b32.xlu1 %v12560_v13, %s12471_s12 }
  0x38   :  { %1056 = vrot.lane.b32.xlu0 %v12531_v4, %s12471_s12  ;;  %1062 = vrot.lane.b32.xlu1 %v12544_v9, %s12471_s12 }
  0x3c   :  { %1064 = vrot.lane.b32.xlu0 %v12580_v18, %s12471_s12  ;;  %1066 = vrot.lane.b32.xlu1 %v12565_v15, %s12471_s12 }
  0x40   :  { %1068 = vrot.lane.b32.xlu0 %v12586_v19, %s12471_s12  ;;  %1070 = vrot.lane.b32.xlu1 %v12595_v20, %s12471_s12 }
  0x44   :  { %1284 = vrot.lane.b32.xlu0 %v12529_v3, %s12472_s13  ;;  %1286 = vrot.lane.b32.xlu1 %v12560_v13, %s12472_s13 }
  0x48   :  { %1282 = vrot.lane.b32.xlu0 %v12531_v4, %s12472_s13  ;;  %1288 = vrot.lane.b32.xlu1 %v12544_v9, %s12472_s13 }
  0x4c   :  { %1290 = vrot.lane.b32.xlu0 %v12580_v18, %s12472_s13  ;;  %1292 = vrot.lane.b32.xlu1 %v12565_v15, %s12472_s13 }
  0x50   :  { %1294 = vrot.lane.b32.xlu0 %v12586_v19, %s12472_s13  ;;  %1296 = vrot.lane.b32.xlu1 %v12595_v20, %s12472_s13 }
  0x54   :  { %1510 = vrot.lane.b32.xlu0 %v12529_v3, %s12473_s14  ;;  %1512 = vrot.lane.b32.xlu1 %v12560_v13, %s12473_s14 }
  0x58   :  { %1508 = vrot.lane.b32.xlu0 %v12531_v4, %s12473_s14  ;;  %1514 = vrot.lane.b32.xlu1 %v12544_v9, %s12473_s14 }
  0x5c   :  { %1516 = vrot.lane.b32.xlu0 %v12580_v18, %s12473_s14  ;;  %1518 = vrot.lane.b32.xlu1 %v12565_v15, %s12473_s14 }
  0x60   :  { %1520 = vrot.lane.b32.xlu0 %v12586_v19, %s12473_s14  ;;  %1522 = vrot.lane.b32.xlu1 %v12595_v20, %s12473_s14 }
  0x64   :  { %1736 = vrot.lane.b32.xlu0 %v12529_v3, %s12474_s15  ;;  %1738 = vrot.lane.b32.xlu1 %v12560_v13, %s12474_s15 }
  0x68   :  { %1734 = vrot.lane.b32.xlu0 %v12531_v4, %s12474_s15  ;;  %1740 = vrot.lane.b32.xlu1 %v12544_v9, %s12474_s15 }
  0x6c   :  { %1742 = vrot.lane.b32.xlu0 %v12580_v18, %s12474_s15  ;;  %1744 = vrot.lane.b32.xlu1 %v12565_v15, %s12474_s15 }
  0x70   :  { %1746 = vrot.lane.b32.xlu0 %v12586_v19, %s12474_s15  ;;  %1748 = vrot.lane.b32.xlu1 %v12595_v20, %s12474_s15 }
  0x74   :  { %1962 = vrot.lane.b32.xlu0 %v12529_v3, %s12475_s16  ;;  %1964 = vrot.lane.b32.xlu1 %v12560_v13, %s12475_s16 }
  0x76   :  { %v381_v21 = vpop.permute.xlu0 %380  ;;  %v379_v22 = vpop.permute.xlu1 %378 }
  0x77   :  { %v395_v26 = vsel %vm394_vm2, %v379_v22, %v381_v21 }
  0x78   :  { %1960 = vrot.lane.b32.xlu0 %v12531_v4, %s12475_s16  ;;  %1966 = vrot.lane.b32.xlu1 %v12544_v9, %s12475_s16 }
  0x7a   :  { %v383_v23 = vpop.permute.xlu0 %382  ;;  %v385_v24 = vpop.permute.xlu1 %384 }
  0x7b   :  { %v12711_v25 = vsel %vm394_vm2, %v381_v21, %v383_v23  ;;  %v12732_v31 = vsel %vm394_vm2, %v383_v23, %v385_v24  ;;  %v12359_v21 = vld [vmem:[%s14522_s2 + $0x20] sm:$0xff]  }
  0x7c   :  { %1968 = vrot.lane.b32.xlu0 %v12580_v18, %s12475_s16  ;;  %1970 = vrot.lane.b32.xlu1 %v12565_v15, %s12475_s16 }
  0x7d   :  { %412 = vmatprep.subr.bf16.mxu0 %v12711_v25 }
  0x7e   :  { %413 = vmatpush1.bf16.msra.mxu0 %v395_v26  ;;  %v387_v28 = vpop.permute.xlu0 %386  ;;  %v389_v29 = vpop.permute.xlu1 %388 }
  0x7f   :  { %v12723_v30 = vsel %vm394_vm2, %v385_v24, %v387_v28  ;;  %v12753_v36 = vsel %vm394_vm2, %v387_v28, %v389_v29 }
  0x80   :  { %1972 = vrot.lane.b32.xlu0 %v12586_v19, %s12475_s16  ;;  %1974 = vrot.lane.b32.xlu1 %v12595_v20, %s12475_s16 }
  0x81   :  { %10794 = vmatmul.mubr.msk.bf16.vlgmr.msra.gmra.mrb[0].mxu0 %vm182_vm0, %v12356_v27  ;;  %455 = vmatprep.subr.bf16.mxu1 %v12723_v30 }
  0x82   :  { %456 = vmatpush1.bf16.msra.mxu1 %v12732_v31  ;;  %v391_v32 = vpop.permute.xlu0 %390  ;;  %v12735_v33 = vpop.permute.xlu1 %392  ;;  %530 = vmatprep.mubr.bf16.mxu0 %v14525_v8 }
  0x83   :  { %v12739_v34 = vsel %vm394_vm2, %v389_v29, %v391_v32  ;;  %11245 = vmatprep.subr.bf16.mxu1 %v14529_v17  ;;  %v12744_v35 = vsel %vm394_vm2, %v391_v32, %v12735_v33 }
  0x84   :  { %2188 = vrot.lane.b32.xlu0 %v12529_v3, %s12476_s19  ;;  %2190 = vrot.lane.b32.xlu1 %v12560_v13, %s12476_s19 }
  0x85   :  { %10795 = vmatmul.mubr.msk.bf16.vlgmr.msra.gmra.mrb[0].mxu1 %vm182_vm0, %v12356_v27  ;;  %498 = vmatprep.subr.bf16.mxu0 %v12739_v34 }
  0x86   :  { %499 = vmatpush1.bf16.msra.mxu0 %v12753_v36  ;;  %11246 = vmatpush3.bf16.msra.mxu1 %v12744_v35  ;;  %v607_v37 = vpop.permute.xlu0 %606  ;;  %v609_v38 = vpop.permute.xlu1 %608 }
  0x87   :  { %v12758_v39 = vsel %vm620_vm3, %v607_v37, %v609_v38  ;;  %11247 = vmatprep.mubr.msk.bf16.mxu1 %vm12468_vm1, %v14529_v17 }
  0x88   :  { %2186 = vrot.lane.b32.xlu0 %v12531_v4, %s12476_s19  ;;  %2192 = vrot.lane.b32.xlu1 %v12544_v9, %s12476_s19 }
  0x89   :  { %10796 = vmatmul.mubr.msk.bf16.vlgmr.msra.gmra.mrb[4].mxu0 %vm182_vm0, %v12356_v27  ;;  %638 = vmatprep.subr.bf16.mxu0 %v12758_v39 }
  0x8a   :  { %v605_v40 = vpop.permute.xlu0 %604  ;;  %v611_v41 = vpop.permute.xlu1 %610  ;;  %670 = vmatprep.mubr.bf16.mxu0 %v14525_v8 }
  0x8b   :  { %v621_v42 = vsel %vm620_vm3, %v605_v40, %v607_v37  ;;  %v12789_v47 = vsel %vm620_vm3, %v609_v38, %v611_v41 }
  0x8c   :  { %2194 = vrot.lane.b32.xlu0 %v12580_v18, %s12476_s19  ;;  %2196 = vrot.lane.b32.xlu1 %v12565_v15, %s12476_s19 }
  0x8d   :  { %11248 = vmatmul.mubr.msk.bf16.vlgmr.msra.gmra.mrb[4].mxu1 %vm182_vm0, %v12356_v27  ;;  %639 = vmatpush1.bf16.msra.mxu0 %v621_v42 }
  0x8e   :  { %v613_v44 = vpop.permute.xlu0 %612  ;;  %v615_v45 = vpop.permute.xlu1 %614  ;;  %713 = vmatprep.mubr.bf16.mxu1 %v14525_v8 }
  0x8f   :  { %v12780_v46 = vsel %vm620_vm3, %v611_v41, %v613_v44  ;;  %v12810_v52 = vsel %vm620_vm3, %v613_v44, %v615_v45 }
  0x90   :  { %2198 = vrot.lane.b32.xlu0 %v12586_v19, %s12476_s19  ;;  %2200 = vrot.lane.b32.xlu1 %v12595_v20, %s12476_s19 }
  0x91   :  { %10801 = vmatmul.mubr.msk.bf16.vlgmr.msra.gmra.mrb[0].mxu0 %vm182_vm0, %v12357_v43  ;;  %681 = vmatprep.subr.bf16.mxu1 %v12780_v46 }
  0x92   :  { %682 = vmatpush1.bf16.msra.mxu1 %v12789_v47  ;;  %v617_v48 = vpop.permute.xlu0 %616  ;;  %v12792_v49 = vpop.permute.xlu1 %618  ;;  %756 = vmatprep.mubr.bf16.mxu0 %v14525_v8 }
  0x93   :  { %v12796_v50 = vsel %vm620_vm3, %v615_v45, %v617_v48  ;;  %11251 = vmatprep.subr.bf16.mxu1 %v14529_v17  ;;  %v12801_v51 = vsel %vm620_vm3, %v617_v48, %v12792_v49  ;;  %v12360_v45 = vld [vmem:[%s14522_s2 + $0x28] sm:$0xff]  }
  0x94   :  { %2414 = vrot.lane.b32.xlu0 %v12529_v3, %s12477_s22  ;;  %2416 = vrot.lane.b32.xlu1 %v12560_v13, %s12477_s22 }
  0x95   :  { %10802 = vmatmul.mubr.msk.bf16.vlgmr.msra.gmra.mrb[0].mxu1 %vm182_vm0, %v12357_v43  ;;  %724 = vmatprep.subr.bf16.mxu0 %v12796_v50 }
  0x96   :  { %725 = vmatpush1.bf16.msra.mxu0 %v12810_v52  ;;  %11252 = vmatpush3.bf16.msra.mxu1 %v12801_v51  ;;  %v833_v53 = vpop.permute.xlu0 %832  ;;  %v835_v54 = vpop.permute.xlu1 %834 }
  0x97   :  { %v12815_v55 = vsel %vm846_vm4, %v833_v53, %v835_v54  ;;  %11253 = vmatprep.mubr.msk.bf16.mxu1 %vm12468_vm1, %v14529_v17 }
  0x98   :  { %2412 = vrot.lane.b32.xlu0 %v12531_v4, %s12477_s22  ;;  %2418 = vrot.lane.b32.xlu1 %v12544_v9, %s12477_s22 }
  0x99   :  { %10803 = vmatmul.mubr.msk.bf16.vlgmr.msra.gmra.mrb[4].mxu0 %vm182_vm0, %v12357_v43  ;;  %864 = vmatprep.subr.bf16.mxu0 %v12815_v55 }
  0x9a   :  { %v831_v56 = vpop.permute.xlu0 %830  ;;  %v837_v57 = vpop.permute.xlu1 %836  ;;  %896 = vmatprep.mubr.bf16.mxu0 %v14525_v8 }
  0x9b   :  { %v847_v58 = vsel %vm846_vm4, %v831_v56, %v833_v53  ;;  %v12846_v63 = vsel %vm846_vm4, %v835_v54, %v837_v57 }
  0x9c   :  { %2420 = vrot.lane.b32.xlu0 %v12580_v18, %s12477_s22  ;;  %2422 = vrot.lane.b32.xlu1 %v12565_v15, %s12477_s22 }
  0x9d   :  { %11254 = vmatmul.mubr.msk.bf16.vlgmr.msra.gmra.mrb[4].mxu1 %vm182_vm0, %v12357_v43  ;;  %865 = vmatpush1.bf16.msra.mxu0 %v847_v58 }
  0x9e   :  { %v839_v60 = vpop.permute.xlu0 %838  ;;  %v841_v61 = vpop.permute.xlu1 %840  ;;  %939 = vmatprep.mubr.bf16.mxu1 %v14525_v8 }
  0x9f   :  { %v12837_v62 = vsel %vm846_vm4, %v837_v57, %v839_v60  ;;  %v12867_v6 = vsel %vm846_vm4, %v839_v60, %v841_v61 }
  0xa0   :  { %2424 = vrot.lane.b32.xlu0 %v12586_v19, %s12477_s22  ;;  %2426 = vrot.lane.b32.xlu1 %v12595_v20, %s12477_s22 }
  0xa1   :  { %10808 = vmatmul.mubr.msk.bf16.vlgmr.msra.gmra.mrb[0].mxu0 %vm182_vm0, %v12358_v59  ;;  %907 = vmatprep.subr.bf16.mxu1 %v12837_v62 }
  0xa2   :  { %908 = vmatpush1.bf16.msra.mxu1 %v12846_v63  ;;  %v843_v0 = vpop.permute.xlu0 %842  ;;  %v12849_v1 = vpop.permute.xlu1 %844  ;;  %982 = vmatprep.mubr.bf16.mxu0 %v14525_v8 }
  0xa3   :  { %v12853_v2 = vsel %vm846_vm4, %v841_v61, %v843_v0  ;;  %11257 = vmatprep.subr.bf16.mxu1 %v14529_v17  ;;  %v12858_v5 = vsel %vm846_vm4, %v843_v0, %v12849_v1 }
  0xa4   :  { %2640 = vrot.lane.b32.xlu0 %v12529_v3, %s12478_s25  ;;  %2642 = vrot.lane.b32.xlu1 %v12560_v13, %s12478_s25 }
  0xa5   :  { %10809 = vmatmul.mubr.msk.bf16.vlgmr.msra.gmra.mrb[0].mxu1 %vm182_vm0, %v12358_v59  ;;  %950 = vmatprep.subr.bf16.mxu0 %v12853_v2 }
  0xa6   :  { %951 = vmatpush1.bf16.msra.mxu0 %v12867_v6  ;;  %11258 = vmatpush3.bf16.msra.mxu1 %v12858_v5  ;;  %v1059_v7 = vpop.permute.xlu0 %1058  ;;  %v1061_v10 = vpop.permute.xlu1 %1060 }
  0xa7   :  { %v12872_v11 = vsel %vm1072_vm5, %v1059_v7, %v1061_v10  ;;  %11259 = vmatprep.mubr.msk.bf16.mxu1 %vm12468_vm1, %v14529_v17 }
  0xa8   :  { %2638 = vrot.lane.b32.xlu0 %v12531_v4, %s12478_s25  ;;  %2644 = vrot.lane.b32.xlu1 %v12544_v9, %s12478_s25 }
  0xa9   :  { %10810 = vmatmul.mubr.msk.bf16.vlgmr.msra.gmra.mrb[4].mxu0 %vm182_vm0, %v12358_v59  ;;  %1090 = vmatprep.subr.bf16.mxu0 %v12872_v11 }
  0xaa   :  { %v1057_v12 = vpop.permute.xlu0 %1056  ;;  %v1063_v14 = vpop.permute.xlu1 %1062  ;;  %1122 = vmatprep.mubr.bf16.mxu0 %v14525_v8 }
  0xab   :  { %v1073_v16 = vsel %vm1072_vm5, %v1057_v12, %v1059_v7  ;;  %v12903_v26 = vsel %vm1072_vm5, %v1061_v10, %v1063_v14 }
  0xac   :  { %2646 = vrot.lane.b32.xlu0 %v12580_v18, %s12478_s25  ;;  %2648 = vrot.lane.b32.xlu1 %v12565_v15, %s12478_s25 }
  0xad   :  { %11260 = vmatmul.mubr.msk.bf16.vlgmr.msra.gmra.mrb[4].mxu1 %vm182_vm0, %v12358_v59  ;;  %1091 = vmatpush1.bf16.msra.mxu0 %v1073_v16 }
  0xae   :  { %v1065_v22 = vpop.permute.xlu0 %1064  ;;  %v1067_v23 = vpop.permute.xlu1 %1066  ;;  %1165 = vmatprep.mubr.bf16.mxu1 %v14525_v8 }
  0xaf   :  { %v12894_v24 = vsel %vm1072_vm5, %v1063_v14, %v1065_v22  ;;  %v12924_v37 = vsel %vm1072_vm5, %v1065_v22, %v1067_v23 }
  0xb0   :  { %2650 = vrot.lane.b32.xlu0 %v12586_v19, %s12478_s25  ;;  %2652 = vrot.lane.b32.xlu1 %v12595_v20, %s12478_s25 }
  0xb1   :  { %10815 = vmatmul.mubr.msk.bf16.vlgmr.msra.gmra.mrb[0].mxu0 %vm182_vm0, %v12359_v21  ;;  %1133 = vmatprep.subr.bf16.mxu1 %v12894_v24 }
  0xb2   :  { %1134 = vmatpush1.bf16.msra.mxu1 %v12903_v26  ;;  %v1069_v27 = vpop.permute.xlu0 %1068  ;;  %v12906_v28 = vpop.permute.xlu1 %1070  ;;  %1208 = vmatprep.mubr.bf16.mxu0 %v14525_v8 }
  0xb3   :  { %v12910_v29 = vsel %vm1072_vm5, %v1067_v23, %v1069_v27  ;;  %11263 = vmatprep.subr.bf16.mxu1 %v14529_v17  ;;  %v12915_v32 = vsel %vm1072_vm5, %v1069_v27, %v12906_v28 }
  0xb4   :  { %2866 = vrot.lane.b32.xlu0 %v12529_v3, %s12479_s28  ;;  %2868 = vrot.lane.b32.xlu1 %v12560_v13, %s12479_s28 }
  0xb5   :  { %10816 = vmatmul.mubr.msk.bf16.vlgmr.msra.gmra.mrb[0].mxu1 %vm182_vm0, %v12359_v21  ;;  %1176 = vmatprep.subr.bf16.mxu0 %v12910_v29 }
  0xb6   :  { %1177 = vmatpush1.bf16.msra.mxu0 %v12924_v37  ;;  %11264 = vmatpush3.bf16.msra.mxu1 %v12915_v32  ;;  %v1285_v38 = vpop.permute.xlu0 %1284  ;;  %v1287_v40 = vpop.permute.xlu1 %1286 }
  0xb7   :  { %v12929_v41 = vsel %vm1298_vm6, %v1285_v38, %v1287_v40  ;;  %11265 = vmatprep.mubr.msk.bf16.mxu1 %vm12468_vm1, %v14529_v17 }
  0xb8   :  { %2864 = vrot.lane.b32.xlu0 %v12531_v4, %s12479_s28  ;;  %2870 = vrot.lane.b32.xlu1 %v12544_v9, %s12479_s28 }
  0xb9   :  { %10817 = vmatmul.mubr.msk.bf16.vlgmr.msra.gmra.mrb[4].mxu0 %vm182_vm0, %v12359_v21  ;;  %1316 = vmatprep.subr.bf16.mxu0 %v12929_v41 }
  0xba   :  { %v1283_v42 = vpop.permute.xlu0 %1282  ;;  %v1289_v43 = vpop.permute.xlu1 %1288  ;;  %1348 = vmatprep.mubr.bf16.mxu0 %v14525_v8 }
  0xbb   :  { %v1299_v44 = vsel %vm1298_vm6, %v1283_v42, %v1285_v38  ;;  %v12960_v56 = vsel %vm1298_vm6, %v1287_v40, %v1289_v43 }
  0xbc   :  { %2872 = vrot.lane.b32.xlu0 %v12580_v18, %s12479_s28  ;;  %2874 = vrot.lane.b32.xlu1 %v12565_v15, %s12479_s28 }
  0xbd   :  { %11266 = vmatmul.mubr.msk.bf16.vlgmr.msra.gmra.mrb[4].mxu1 %vm182_vm0, %v12359_v21  ;;  %1317 = vmatpush1.bf16.msra.mxu0 %v1299_v44  ;;  %v12361_v21 = vld [vmem:[%s14522_s2 + $0x30] sm:$0xff]  }
  0xbe   :  { %v1291_v48 = vpop.permute.xlu0 %1290  ;;  %v1293_v53 = vpop.permute.xlu1 %1292  ;;  %1391 = vmatprep.mubr.bf16.mxu1 %v14525_v8 }
  0xbf   :  { %v12951_v54 = vsel %vm1298_vm6, %v1289_v43, %v1291_v48  ;;  %v12981_v61 = vsel %vm1298_vm6, %v1291_v48, %v1293_v53 }
  0xc0   :  { %2876 = vrot.lane.b32.xlu0 %v12586_v19, %s12479_s28  ;;  %2878 = vrot.lane.b32.xlu1 %v12595_v20, %s12479_s28 }
  0xc1   :  { %10822 = vmatmul.mubr.msk.bf16.vlgmr.msra.gmra.mrb[0].mxu0 %vm182_vm0, %v12360_v45  ;;  %1359 = vmatprep.subr.bf16.mxu1 %v12951_v54 }
  0xc2   :  { %1360 = vmatpush1.bf16.msra.mxu1 %v12960_v56  ;;  %v1295_v57 = vpop.permute.xlu0 %1294  ;;  %v12963_v58 = vpop.permute.xlu1 %1296  ;;  %1434 = vmatprep.mubr.bf16.mxu0 %v14525_v8 }
  0xc3   :  { %v12967_v59 = vsel %vm1298_vm6, %v1293_v53, %v1295_v57  ;;  %11269 = vmatprep.subr.bf16.mxu1 %v14529_v17  ;;  %v12972_v60 = vsel %vm1298_vm6, %v1295_v57, %v12963_v58 }
  0xc4   :  { %3092 = vrot.lane.b32.xlu0 %v12529_v3, %s12480_s5  ;;  %3094 = vrot.lane.b32.xlu1 %v12560_v13, %s12480_s5 }
  0xc5   :  { %10823 = vmatmul.mubr.msk.bf16.vlgmr.msra.gmra.mrb[0].mxu1 %vm182_vm0, %v12360_v45  ;;  %1402 = vmatprep.subr.bf16.mxu0 %v12967_v59 }
  0xc6   :  { %1403 = vmatpush1.bf16.msra.mxu0 %v12981_v61  ;;  %11270 = vmatpush3.bf16.msra.mxu1 %v12972_v60  ;;  %v1511_v0 = vpop.permute.xlu0 %1510  ;;  %v1513_v7 = vpop.permute.xlu1 %1512 }
  0xc7   :  { %v12986_v10 = vsel %vm1524_vm7, %v1511_v0, %v1513_v7  ;;  %11271 = vmatprep.mubr.msk.bf16.mxu1 %vm12468_vm1, %v14529_v17 }
  0xc8   :  { %3090 = vrot.lane.b32.xlu0 %v12531_v4, %s12480_s5  ;;  %3096 = vrot.lane.b32.xlu1 %v12544_v9, %s12480_s5 }
  0xc9   :  { %10824 = vmatmul.mubr.msk.bf16.vlgmr.msra.gmra.mrb[4].mxu0 %vm182_vm0, %v12360_v45  ;;  %1542 = vmatprep.subr.bf16.mxu0 %v12986_v10 }
  0xca   :  { %v1509_v12 = vpop.permute.xlu0 %1508  ;;  %v1515_v14 = vpop.permute.xlu1 %1514  ;;  %1574 = vmatprep.mubr.bf16.mxu0 %v14525_v8 }
  0xcb   :  { %v1525_v16 = vsel %vm1524_vm7, %v1509_v12, %v1511_v0  ;;  %v13017_v38 = vsel %vm1524_vm7, %v1513_v7, %v1515_v14 }
  0xcc   :  { %3098 = vrot.lane.b32.xlu0 %v12580_v18, %s12480_s5  ;;  %3100 = vrot.lane.b32.xlu1 %v12565_v15, %s12480_s5 }
  0xcd   :  { %11272 = vmatmul.mubr.msk.bf16.vlgmr.msra.gmra.mrb[4].mxu1 %vm182_vm0, %v12360_v45  ;;  %1543 = vmatpush1.bf16.msra.mxu0 %v1525_v16 }
  0xce   :  { %v1517_v22 = vpop.permute.xlu0 %1516  ;;  %v1519_v23 = vpop.permute.xlu1 %1518  ;;  %1617 = vmatprep.mubr.bf16.mxu1 %v14525_v8 }
  0xcf   :  { %v13008_v27 = vsel %vm1524_vm7, %v1515_v14, %v1517_v22  ;;  %v13038_v45 = vsel %vm1524_vm7, %v1517_v22, %v1519_v23  ;;  %v12362_v14 = vld [vmem:[%s14522_s2 + $0x38] sm:$0xff]  }
  0xd0   :  { %3102 = vrot.lane.b32.xlu0 %v12586_v19, %s12480_s5  ;;  %3104 = vrot.lane.b32.xlu1 %v12595_v20, %s12480_s5 }
  0xd1   :  { %10829 = vmatmul.mubr.msk.bf16.vlgmr.msra.gmra.mrb[0].mxu0 %vm182_vm0, %v12361_v21  ;;  %1585 = vmatprep.subr.bf16.mxu1 %v13008_v27 }
  0xd2   :  { %1586 = vmatpush1.bf16.msra.mxu1 %v13017_v38  ;;  %v1521_v40 = vpop.permute.xlu0 %1520  ;;  %v13020_v42 = vpop.permute.xlu1 %1522  ;;  %1660 = vmatprep.mubr.bf16.mxu0 %v14525_v8 }
  0xd3   :  { %v13024_v43 = vsel %vm1524_vm7, %v1519_v23, %v1521_v40  ;;  %11275 = vmatprep.subr.bf16.mxu1 %v14529_v17  ;;  %v13029_v44 = vsel %vm1524_vm7, %v1521_v40, %v13020_v42 }
  0xd4   :  { %3318 = vrot.lane.b32.xlu0 %v12529_v3, %s12481_s0  ;;  %3320 = vrot.lane.b32.xlu1 %v12560_v13, %s12481_s0 }
  0xd5   :  { %10830 = vmatmul.mubr.msk.bf16.vlgmr.msra.gmra.mrb[0].mxu1 %vm182_vm0, %v12361_v21  ;;  %1628 = vmatprep.subr.bf16.mxu0 %v13024_v43 }
  0xd6   :  { %1629 = vmatpush1.bf16.msra.mxu0 %v13038_v45  ;;  %11276 = vmatpush3.bf16.msra.mxu1 %v13029_v44  ;;  %v1737_v48 = vpop.permute.xlu0 %1736  ;;  %v1739_v53 = vpop.permute.xlu1 %1738 }
  0xd7   :  { %v13043_v57 = vsel %vm1750_vm8, %v1737_v48, %v1739_v53  ;;  %11277 = vmatprep.mubr.msk.bf16.mxu1 %vm12468_vm1, %v14529_v17 }
  0xd8   :  { %14633 = vst [vmem:[#allocation4_spill] sm:$0xff] %v13043_v57  ;;  %3316 = vrot.lane.b32.xlu0 %v12531_v4, %s12481_s0  ;;  %3322 = vrot.lane.b32.xlu1 %v12544_v9, %s12481_s0 }
  0xd9   :  { %10831 = vmatmul.mubr.msk.bf16.vlgmr.msra.gmra.mrb[4].mxu0 %vm182_vm0, %v12361_v21  ;;  %1768 = vmatprep.subr.bf16.mxu0 %v13043_v57  ;;  %v14645_v57 = vmov 0.0  }
  0xda   :  { %v1735_v0 = vpop.permute.xlu0 %1734  ;;  %v1741_v7 = vpop.permute.xlu1 %1740  ;;  %1800 = vmatprep.mubr.bf16.mxu0 %v14525_v8 }
  0xdb   :  { %v1751_v12 = vsel %vm1750_vm8, %v1735_v0, %v1737_v48 }
  0xdc   :  { %3324 = vrot.lane.b32.xlu0 %v12580_v18, %s12481_s0  ;;  %3326 = vrot.lane.b32.xlu1 %v12565_v15, %s12481_s0 }
  0xdd   :  { %11278 = vmatmul.mubr.msk.bf16.vlgmr.msra.gmra.mrb[4].mxu1 %vm182_vm0, %v12361_v21  ;;  %1769 = vmatpush1.bf16.msra.mxu0 %v1751_v12  ;;  %v13074_v21 = vsel %vm1750_vm8, %v1739_v53, %v1741_v7 }
  0xde   :  { %v1743_v16 = vpop.permute.xlu0 %1742  ;;  %v1745_v22 = vpop.permute.xlu1 %1744  ;;  %1843 = vmatprep.mubr.bf16.mxu1 %v14525_v8 }
  0xdf   :  { %v13065_v23 = vsel %vm1750_vm8, %v1741_v7, %v1743_v16  ;;  %v13095_v53 = vsel %vm1750_vm8, %v1743_v16, %v1745_v22 }
  0xe0   :  { %14634 = vst [vmem:[#allocation5_spill] sm:$0xff] %v13065_v23  ;;  %3328 = vrot.lane.b32.xlu0 %v12586_v19, %s12481_s0  ;;  %3330 = vrot.lane.b32.xlu1 %v12595_v20, %s12481_s0  ;;  %14638 = vst [vmem:[#allocation9_spill] sm:$0xff] %v13095_v53 }
  0xe1   :  { %10836 = vmatmul.mubr.msk.bf16.vlgmr.msra.gmra.mrb[0].mxu0 %vm182_vm0, %v12362_v14  ;;  %1811 = vmatprep.subr.bf16.mxu1 %v13065_v23 }
  0xe2   :  { %1812 = vmatpush1.bf16.msra.mxu1 %v13074_v21  ;;  %v1747_v40 = vpop.permute.xlu0 %1746  ;;  %v13077_v48 = vpop.permute.xlu1 %1748  ;;  %1886 = vmatprep.mubr.bf16.mxu0 %v14525_v8 }
  0xe3   :  { %14635 = vst [vmem:[#allocation6_spill] sm:$0xff] %v13077_v48  ;;  %v13081_v0 = vsel %vm1750_vm8, %v1745_v22, %v1747_v40  ;;  %11281 = vmatprep.subr.bf16.mxu1 %v14529_v17  ;;  %v13086_v12 = vsel %vm1750_vm8, %v1747_v40, %v13077_v48  ;;  %v14640_v48 = vmov 0  }
  0xe4   :  { %14636 = vst [vmem:[#allocation7_spill] sm:$0xff] %v13081_v0  ;;  %14637 = vst [vmem:[#allocation8_spill] sm:$0xff] %v13086_v12  ;;  %3544 = vrot.lane.b32.xlu0 %v12529_v3, %s12482_s17  ;;  %3546 = vrot.lane.b32.xlu1 %v12560_v13, %s12482_s17 }
  0xe5   :  { %10837 = vmatmul.mubr.msk.bf16.vlgmr.msra.gmra.mrb[0].mxu1 %vm182_vm0, %v12362_v14  ;;  %1854 = vmatprep.subr.bf16.mxu0 %v13081_v0 }
  0xe6   :  { %1855 = vmatpush1.bf16.msra.mxu0 %v13095_v53  ;;  %11282 = vmatpush3.bf16.msra.mxu1 %v13086_v12  ;;  %v1963_v7 = vpop.permute.xlu0 %1962  ;;  %v1965_v40 = vpop.permute.xlu1 %1964 }
  0xe7   :  { %v13100_v8 = vsel %vm1976_vm9, %v1963_v7, %v1965_v40  ;;  %11283 = vmatprep.mubr.msk.bf16.mxu1 %vm12468_vm1, %v14529_v17  ;;  %v12363_v17 = vld [vmem:[%s14522_s2 + $0x40] sm:$0xff]  }
  0xe8   :  { %14639 = vst [vmem:[#allocation10_spill] sm:$0xff] %v13100_v8  ;;  %3542 = vrot.lane.b32.xlu0 %v12531_v4, %s12482_s17  ;;  %3548 = vrot.lane.b32.xlu1 %v12544_v9, %s12482_s17 }
  0xe9   :  { %10838 = vmatmul.mubr.msk.bf16.vlgmr.msra.gmra.mrb[4].mxu0 %vm182_vm0, %v12362_v14  ;;  %1994 = vmatprep.subr.bf16.mxu0 %v13100_v8 }
  0xea   :  { %v1961_v16 = vpop.permute.xlu0 %1960  ;;  %v1967_v22 = vpop.permute.xlu1 %1966  ;;  %2026 = vmatprep.mubr.bf16.mxu0 %v14640_v48 }
  0xeb   :  { %v1977_v0 = vsel %vm1976_vm9, %v1961_v16, %v1963_v7 }
  0xec   :  { %3550 = vrot.lane.b32.xlu0 %v12580_v18, %s12482_s17  ;;  %3552 = vrot.lane.b32.xlu1 %v12565_v15, %s12482_s17 }
  0xed   :  { %11284 = vmatmul.mubr.msk.bf16.vlgmr.msra.gmra.mrb[4].mxu1 %vm182_vm0, %v12362_v14  ;;  %1995 = vmatpush1.bf16.msra.mxu0 %v1977_v0  ;;  %v13131_v14 = vsel %vm1976_vm9, %v1965_v40, %v1967_v22 }
  0xee   :  { %v1969_v8 = vpop.permute.xlu0 %1968  ;;  %v1971_v23 = vpop.permute.xlu1 %1970  ;;  %2069 = vmatprep.mubr.bf16.mxu1 %v14640_v48  ;;  %14642 = vst [vmem:[#allocation12_spill] sm:$0xff] %v13131_v14 }
  0xef   :  { %v13122_v12 = vsel %vm1976_vm9, %v1967_v22, %v1969_v8  ;;  %v13152_v40 = vsel %vm1976_vm9, %v1969_v8, %v1971_v23 }
  0xf0   :  { %14641 = vst [vmem:[#allocation11_spill] sm:$0xff] %v13122_v12  ;;  %3554 = vrot.lane.b32.xlu0 %v12586_v19, %s12482_s17  ;;  %3556 = vrot.lane.b32.xlu1 %v12595_v20, %s12482_s17  ;;  %14647 = vst [vmem:[#allocation16_spill] sm:$0xff] %v13152_v40 }
  0xf1   :  { %10843 = vmatmul.mubr.msk.bf16.vlgmr.msra.gmra.mrb[0].mxu0 %vm182_vm0, %v12363_v17  ;;  %2037 = vmatprep.subr.bf16.mxu1 %v13122_v12  ;;  %v12364_v12 = vld [vmem:[%s14522_s2 + $0x48] sm:$0xff]  }
  0xf2   :  { %2038 = vmatpush1.bf16.msra.mxu1 %v13131_v14  ;;  %v1973_v0 = vpop.permute.xlu0 %1972  ;;  %v13134_v7 = vpop.permute.xlu1 %1974  ;;  %2112 = vmatprep.mubr.bf16.mxu0 %v14640_v48 }
  0xf3   :  { %14643 = vst [vmem:[#allocation13_spill] sm:$0xff] %v13134_v7  ;;  %v13138_v16 = vsel %vm1976_vm9, %v1971_v23, %v1973_v0  ;;  %11287 = vmatprep.subr.bf16.mxu1 %v14645_v57  ;;  %v13143_v53 = vsel %vm1976_vm9, %v1973_v0, %v13134_v7 }
  0xf4   :  { %14644 = vst [vmem:[#allocation14_spill] sm:$0xff] %v13138_v16  ;;  %14646 = vst [vmem:[#allocation15_spill] sm:$0xff] %v13143_v53  ;;  %3770 = vrot.lane.b32.xlu0 %v12529_v3, %s12483_s21  ;;  %3772 = vrot.lane.b32.xlu1 %v12560_v13, %s12483_s21 }
  0xf5   :  { %10844 = vmatmul.mubr.msk.bf16.vlgmr.msra.gmra.mrb[0].mxu1 %vm182_vm0, %v12363_v17  ;;  %2080 = vmatprep.subr.bf16.mxu0 %v13138_v16 }
  0xf6   :  { %2081 = vmatpush1.bf16.msra.mxu0 %v13152_v40  ;;  %11288 = vmatpush3.bf16.msra.mxu1 %v13143_v53  ;;  %v2189_v22 = vpop.permute.xlu0 %2188  ;;  %v2191_v0 = vpop.permute.xlu1 %2190 }
  0xf7   :  { %v13157_v7 = vsel %vm2202_vm10, %v2189_v22, %v2191_v0  ;;  %11289 = vmatprep.mubr.msk.bf16.mxu1 %vm12468_vm1, %v14645_v57 }
  0xf8   :  { %14648 = vst [vmem:[#allocation17_spill] sm:$0xff] %v13157_v7  ;;  %3768 = vrot.lane.b32.xlu0 %v12531_v4, %s12483_s21  ;;  %3774 = vrot.lane.b32.xlu1 %v12544_v9, %s12483_s21 }
  0xf9   :  { %10845 = vmatmul.mubr.msk.bf16.vlgmr.msra.gmra.mrb[4].mxu0 %vm182_vm0, %v12363_v17  ;;  %2220 = vmatprep.subr.bf16.mxu0 %v13157_v7 }
  0xfa   :  { %v2187_v8 = vpop.permute.xlu0 %2186  ;;  %v2193_v23 = vpop.permute.xlu1 %2192  ;;  %2252 = vmatprep.mubr.bf16.mxu0 %v14640_v48 }
  0xfb   :  { %v2203_v16 = vsel %vm2202_vm10, %v2187_v8, %v2189_v22 }
  0xfc   :  { %3776 = vrot.lane.b32.xlu0 %v12580_v18, %s12483_s21  ;;  %3778 = vrot.lane.b32.xlu1 %v12565_v15, %s12483_s21 }
  0xfd   :  { %11290 = vmatmul.mubr.msk.bf16.vlgmr.msra.gmra.mrb[4].mxu1 %vm182_vm0, %v12363_v17  ;;  %2221 = vmatpush1.bf16.msra.mxu0 %v2203_v16  ;;  %v13188_v17 = vsel %vm2202_vm10, %v2191_v0, %v2193_v23 }
  0xfe   :  { %v2195_v7 = vpop.permute.xlu0 %2194  ;;  %v2197_v53 = vpop.permute.xlu1 %2196  ;;  %2295 = vmatprep.mubr.bf16.mxu1 %v14640_v48  ;;  %14650 = vst [vmem:[#allocation19_spill] sm:$0xff] %v13188_v17 }
  0xff   :  { %v13179_v40 = vsel %vm2202_vm10, %v2193_v23, %v2195_v7  ;;  %v13209_v0 = vsel %vm2202_vm10, %v2195_v7, %v2197_v53 }
 0x100   :  { %14649 = vst [vmem:[#allocation18_spill] sm:$0xff] %v13179_v40  ;;  %3780 = vrot.lane.b32.xlu0 %v12586_v19, %s12483_s21  ;;  %3782 = vrot.lane.b32.xlu1 %v12595_v20, %s12483_s21  ;;  %14654 = vst [vmem:[#allocation23_spill] sm:$0xff] %v13209_v0 }
 0x101   :  { %10850 = vmatmul.mubr.msk.bf16.vlgmr.msra.gmra.mrb[0].mxu0 %vm182_vm0, %v12364_v12  ;;  %2263 = vmatprep.subr.bf16.mxu1 %v13179_v40  ;;  %v12365_v40 = vld [vmem:[%s14522_s2 + $0x50] sm:$0xff]  }
 0x102   :  { %2264 = vmatpush1.bf16.msra.mxu1 %v13188_v17  ;;  %v2199_v16 = vpop.permute.xlu0 %2198  ;;  %v13191_v22 = vpop.permute.xlu1 %2200  ;;  %2338 = vmatprep.mubr.bf16.mxu0 %v14640_v48 }
 0x103   :  { %14651 = vst [vmem:[#allocation20_spill] sm:$0xff] %v13191_v22  ;;  %v13195_v8 = vsel %vm2202_vm10, %v2197_v53, %v2199_v16  ;;  %11293 = vmatprep.subr.bf16.mxu1 %v14645_v57  ;;  %v13200_v19 = vsel %vm2202_vm10, %v2199_v16, %v13191_v22 }
 0x104   :  { %14652 = vst [vmem:[#allocation21_spill] sm:$0xff] %v13195_v8  ;;  %14653 = vst [vmem:[#allocation22_spill] sm:$0xff] %v13200_v19  ;;  %3996 = vrot.lane.b32.xlu0 %v12529_v3, %s12484_s26  ;;  %3998 = vrot.lane.b32.xlu1 %v12560_v13, %s12484_s26 }
 0x105   :  { %10851 = vmatmul.mubr.msk.bf16.vlgmr.msra.gmra.mrb[0].mxu1 %vm182_vm0, %v12364_v12  ;;  %2306 = vmatprep.subr.bf16.mxu0 %v13195_v8 }
 0x106   :  { %2307 = vmatpush1.bf16.msra.mxu0 %v13209_v0  ;;  %11294 = vmatpush3.bf16.msra.mxu1 %v13200_v19  ;;  %v2415_v23 = vpop.permute.xlu0 %2414  ;;  %v2417_v16 = vpop.permute.xlu1 %2416 }
 0x107   :  { %v13214_v22 = vsel %vm2428_vm11, %v2415_v23, %v2417_v16  ;;  %11295 = vmatprep.mubr.msk.bf16.mxu1 %vm12468_vm1, %v14645_v57 }
 0x108   :  { %14655 = vst [vmem:[#allocation24_spill] sm:$0xff] %v13214_v22  ;;  %3994 = vrot.lane.b32.xlu0 %v12531_v4, %s12484_s26  ;;  %4000 = vrot.lane.b32.xlu1 %v12544_v9, %s12484_s26 }
 0x109   :  { %10852 = vmatmul.mubr.msk.bf16.vlgmr.msra.gmra.mrb[4].mxu0 %vm182_vm0, %v12364_v12  ;;  %2446 = vmatprep.subr.bf16.mxu0 %v13214_v22 }
 0x10a   :  { %v2413_v53 = vpop.permute.xlu0 %2412  ;;  %v2419_v7 = vpop.permute.xlu1 %2418  ;;  %2478 = vmatprep.mubr.bf16.mxu0 %v14640_v48 }
 0x10b   :  { %v2429_v8 = vsel %vm2428_vm11, %v2413_v53, %v2415_v23  ;;  %v13238_v23 = vld [vmem:[#allocation2 + $0x18] ss:$28 sps:$4 sm:$0xff]  }
 0x10c   :  { %4002 = vrot.lane.b32.xlu0 %v12580_v18, %s12484_s26  ;;  %4004 = vrot.lane.b32.xlu1 %v12565_v15, %s12484_s26 }
 0x10d   :  { %11296 = vmatmul.mubr.msk.bf16.vlgmr.msra.gmra.mrb[4].mxu1 %vm182_vm0, %v12364_v12  ;;  %2447 = vmatpush1.bf16.msra.mxu0 %v2429_v8  ;;  %v13247_v12 = vsel %vm2428_vm11, %v2417_v16, %v2419_v7 }
 0x10e   :  { %v2421_v22 = vpop.permute.xlu0 %2420  ;;  %v2423_v19 = vpop.permute.xlu1 %2422  ;;  %2521 = vmatprep.mubr.bf16.mxu1 %v14640_v48  ;;  %14657 = vst [vmem:[#allocation26_spill] sm:$0xff] %v13247_v12 }
 0x10f   :  { %v13236_v0 = vsel %vm2428_vm11, %v2419_v7, %v2421_v22  ;;  %v13268_v16 = vsel %vm2428_vm11, %v2421_v22, %v2423_v19 }
 0x110   :  { %14656 = vst [vmem:[#allocation25_spill] sm:$0xff] %v13236_v0  ;;  %4006 = vrot.lane.b32.xlu0 %v13238_v23, %s12484_s26  ;;  %4008 = vrot.lane.b32.xlu1 %v12595_v20, %s12484_s26  ;;  %14661 = vst [vmem:[#allocation30_spill] sm:$0xff] %v13268_v16 }
 0x111   :  { %10857 = vmatmul.mubr.msk.bf16.vlgmr.msra.gmra.mrb[0].mxu0 %vm182_vm0, %v12365_v40  ;;  %2489 = vmatprep.subr.bf16.mxu1 %v13236_v0  ;;  %v12366_v0 = vld [vmem:[%s14522_s2 + $0x58] sm:$0xff]  }
 0x112   :  { %2490 = vmatpush1.bf16.msra.mxu1 %v13247_v12  ;;  %v2425_v8 = vpop.permute.xlu0 %2424  ;;  %v13250_v53 = vpop.permute.xlu1 %2426  ;;  %2564 = vmatprep.mubr.bf16.mxu0 %v14640_v48 }
 0x113   :  { %14658 = vst [vmem:[#allocation27_spill] sm:$0xff] %v13250_v53  ;;  %v13254_v17 = vsel %vm2428_vm11, %v2423_v19, %v2425_v8  ;;  %11299 = vmatprep.subr.bf16.mxu1 %v14645_v57  ;;  %v13259_v14 = vsel %vm2428_vm11, %v2425_v8, %v13250_v53 }
 0x114   :  { %14659 = vst [vmem:[#allocation28_spill] sm:$0xff] %v13254_v17  ;;  %14660 = vst [vmem:[#allocation29_spill] sm:$0xff] %v13259_v14  ;;  %4222 = vrot.lane.b32.xlu0 %v12529_v3, %s12485_s30  ;;  %4224 = vrot.lane.b32.xlu1 %v12560_v13, %s12485_s30 }
 0x115   :  { %10858 = vmatmul.mubr.msk.bf16.vlgmr.msra.gmra.mrb[0].mxu1 %vm182_vm0, %v12365_v40  ;;  %2532 = vmatprep.subr.bf16.mxu0 %v13254_v17 }
 0x116   :  { %2533 = vmatpush1.bf16.msra.mxu0 %v13268_v16  ;;  %11300 = vmatpush3.bf16.msra.mxu1 %v13259_v14  ;;  %v2641_v7 = vpop.permute.xlu0 %2640  ;;  %v2643_v8 = vpop.permute.xlu1 %2642 }
 0x117   :  { %v13273_v53 = vsel %vm2654_vm12, %v2641_v7, %v2643_v8  ;;  %11301 = vmatprep.mubr.msk.bf16.mxu1 %vm12468_vm1, %v14645_v57 }
 0x118   :  { %14662 = vst [vmem:[#allocation31_spill] sm:$0xff] %v13273_v53  ;;  %4220 = vrot.lane.b32.xlu0 %v12531_v4, %s12485_s30  ;;  %4226 = vrot.lane.b32.xlu1 %v12544_v9, %s12485_s30 }
 0x119   :  { %10859 = vmatmul.mubr.msk.bf16.vlgmr.msra.gmra.mrb[4].mxu0 %vm182_vm0, %v12365_v40  ;;  %2672 = vmatprep.subr.bf16.mxu0 %v13273_v53 }
 0x11a   :  { %v2639_v22 = vpop.permute.xlu0 %2638  ;;  %v2645_v19 = vpop.permute.xlu1 %2644  ;;  %2704 = vmatprep.mubr.bf16.mxu0 %v14640_v48 }
 0x11b   :  { %v2655_v17 = vsel %vm2654_vm12, %v2639_v22, %v2641_v7 }
 0x11c   :  { %4228 = vrot.lane.b32.xlu0 %v12580_v18, %s12485_s30  ;;  %4230 = vrot.lane.b32.xlu1 %v12565_v15, %s12485_s30 }
 0x11d   :  { %11302 = vmatmul.mubr.msk.bf16.vlgmr.msra.gmra.mrb[4].mxu1 %vm182_vm0, %v12365_v40  ;;  %2673 = vmatpush1.bf16.msra.mxu0 %v2655_v17  ;;  %v13304_v40 = vsel %vm2654_vm12, %v2643_v8, %v2645_v19 }
 0x11e   :  { %v2647_v53 = vpop.permute.xlu0 %2646  ;;  %v2649_v14 = vpop.permute.xlu1 %2648  ;;  %2747 = vmatprep.mubr.bf16.mxu1 %v14640_v48  ;;  %14664 = vst [vmem:[#allocation33_spill] sm:$0xff] %v13304_v40 }
 0x11f   :  { %v13295_v16 = vsel %vm2654_vm12, %v2645_v19, %v2647_v53  ;;  %v13325_v8 = vsel %vm2654_vm12, %v2647_v53, %v2649_v14 }
 0x120   :  { %14663 = vst [vmem:[#allocation32_spill] sm:$0xff] %v13295_v16  ;;  %4232 = vrot.lane.b32.xlu0 %v13238_v23, %s12485_s30  ;;  %4234 = vrot.lane.b32.xlu1 %v12595_v20, %s12485_s30  ;;  %14668 = vst [vmem:[#allocation37_spill] sm:$0xff] %v13325_v8 }
 0x121   :  { %10864 = vmatmul.mubr.msk.bf16.vlgmr.msra.gmra.mrb[0].mxu0 %vm182_vm0, %v12366_v0  ;;  %2715 = vmatprep.subr.bf16.mxu1 %v13295_v16  ;;  %v12367_v16 = vld [vmem:[%s14522_s2 + $0x60] sm:$0xff]  }
 0x122   :  { %2716 = vmatpush1.bf16.msra.mxu1 %v13304_v40  ;;  %v2651_v17 = vpop.permute.xlu0 %2650  ;;  %v13307_v7 = vpop.permute.xlu1 %2652  ;;  %2790 = vmatprep.mubr.bf16.mxu0 %v14640_v48 }
 0x123   :  { %14665 = vst [vmem:[#allocation34_spill] sm:$0xff] %v13307_v7  ;;  %v13311_v22 = vsel %vm2654_vm12, %v2649_v14, %v2651_v17  ;;  %11305 = vmatprep.subr.bf16.mxu1 %v14645_v57  ;;  %v13316_v12 = vsel %vm2654_vm12, %v2651_v17, %v13307_v7 }
 0x124   :  { %14666 = vst [vmem:[#allocation35_spill] sm:$0xff] %v13311_v22  ;;  %14667 = vst [vmem:[#allocation36_spill] sm:$0xff] %v13316_v12  ;;  %4448 = vrot.lane.b32.xlu0 %v12529_v3, %s12486_s9  ;;  %4450 = vrot.lane.b32.xlu1 %v12560_v13, %s12486_s9 }
 0x125   :  { %10865 = vmatmul.mubr.msk.bf16.vlgmr.msra.gmra.mrb[0].mxu1 %vm182_vm0, %v12366_v0  ;;  %2758 = vmatprep.subr.bf16.mxu0 %v13311_v22 }
 0x126   :  { %2759 = vmatpush1.bf16.msra.mxu0 %v13325_v8  ;;  %11306 = vmatpush3.bf16.msra.mxu1 %v13316_v12  ;;  %v2867_v19 = vpop.permute.xlu0 %2866  ;;  %v2869_v17 = vpop.permute.xlu1 %2868 }
 0x127   :  { %v13330_v7 = vsel %vm2880_vm13, %v2867_v19, %v2869_v17  ;;  %11307 = vmatprep.mubr.msk.bf16.mxu1 %vm12468_vm1, %v14645_v57 }
 0x128   :  { %14669 = vst [vmem:[#allocation38_spill] sm:$0xff] %v13330_v7  ;;  %4446 = vrot.lane.b32.xlu0 %v12531_v4, %s12486_s9  ;;  %4452 = vrot.lane.b32.xlu1 %v12544_v9, %s12486_s9 }
 0x129   :  { %10866 = vmatmul.mubr.msk.bf16.vlgmr.msra.gmra.mrb[4].mxu0 %vm182_vm0, %v12366_v0  ;;  %2898 = vmatprep.subr.bf16.mxu0 %v13330_v7 }
 0x12a   :  { %v2865_v14 = vpop.permute.xlu0 %2864  ;;  %v2871_v53 = vpop.permute.xlu1 %2870  ;;  %2930 = vmatprep.mubr.bf16.mxu0 %v14640_v48 }
 0x12b   :  { %v2881_v22 = vsel %vm2880_vm13, %v2865_v14, %v2867_v19 }
 0x12c   :  { %4454 = vrot.lane.b32.xlu0 %v12580_v18, %s12486_s9  ;;  %4456 = vrot.lane.b32.xlu1 %v12565_v15, %s12486_s9 }
 0x12d   :  { %11308 = vmatmul.mubr.msk.bf16.vlgmr.msra.gmra.mrb[4].mxu1 %vm182_vm0, %v12366_v0  ;;  %2899 = vmatpush1.bf16.msra.mxu0 %v2881_v22  ;;  %v13361_v0 = vsel %vm2880_vm13, %v2869_v17, %v2871_v53 }
 0x12e   :  { %v2873_v7 = vpop.permute.xlu0 %2872  ;;  %v2875_v12 = vpop.permute.xlu1 %2874  ;;  %2973 = vmatprep.mubr.bf16.mxu1 %v14640_v48  ;;  %14671 = vst [vmem:[#allocation40_spill] sm:$0xff] %v13361_v0 }
 0x12f   :  { %v13352_v8 = vsel %vm2880_vm13, %v2871_v53, %v2873_v7  ;;  %v13382_v17 = vsel %vm2880_vm13, %v2873_v7, %v2875_v12 }
 0x130   :  { %14670 = vst [vmem:[#allocation39_spill] sm:$0xff] %v13352_v8  ;;  %4458 = vrot.lane.b32.xlu0 %v13238_v23, %s12486_s9  ;;  %4460 = vrot.lane.b32.xlu1 %v12595_v20, %s12486_s9  ;;  %14675 = vst [vmem:[#allocation44_spill] sm:$0xff] %v13382_v17 }
 0x131   :  { %10871 = vmatmul.mubr.msk.bf16.vlgmr.msra.gmra.mrb[0].mxu0 %vm182_vm0, %v12367_v16  ;;  %2941 = vmatprep.subr.bf16.mxu1 %v13352_v8  ;;  %v12368_v8 = vld [vmem:[%s14522_s2 + $0x68] sm:$0xff]  }
 0x132   :  { %2942 = vmatpush1.bf16.msra.mxu1 %v13361_v0  ;;  %v2877_v22 = vpop.permute.xlu0 %2876  ;;  %v13364_v19 = vpop.permute.xlu1 %2878  ;;  %3016 = vmatprep.mubr.bf16.mxu0 %v14640_v48 }
 0x133   :  { %14672 = vst [vmem:[#allocation41_spill] sm:$0xff] %v13364_v19  ;;  %v13368_v14 = vsel %vm2880_vm13, %v2875_v12, %v2877_v22  ;;  %11311 = vmatprep.subr.bf16.mxu1 %v14645_v57  ;;  %v13373_v40 = vsel %vm2880_vm13, %v2877_v22, %v13364_v19 }
 0x134   :  { %14673 = vst [vmem:[#allocation42_spill] sm:$0xff] %v13368_v14  ;;  %14674 = vst [vmem:[#allocation43_spill] sm:$0xff] %v13373_v40  ;;  %4674 = vrot.lane.b32.xlu0 %v12529_v3, %s12487_s20  ;;  %4676 = vrot.lane.b32.xlu1 %v12560_v13, %s12487_s20 }
 0x135   :  { %10872 = vmatmul.mubr.msk.bf16.vlgmr.msra.gmra.mrb[0].mxu1 %vm182_vm0, %v12367_v16  ;;  %2984 = vmatprep.subr.bf16.mxu0 %v13368_v14 }
 0x136   :  { %2985 = vmatpush1.bf16.msra.mxu0 %v13382_v17  ;;  %11312 = vmatpush3.bf16.msra.mxu1 %v13373_v40  ;;  %v3093_v53 = vpop.permute.xlu0 %3092  ;;  %v3095_v22 = vpop.permute.xlu1 %3094 }
 0x137   :  { %v13387_v19 = vsel %vm14578_vm14, %v3093_v53, %v3095_v22  ;;  %11313 = vmatprep.mubr.msk.bf16.mxu1 %vm12468_vm1, %v14645_v57 }
 0x138   :  { %14676 = vst [vmem:[#allocation45_spill] sm:$0xff] %v13387_v19  ;;  %4672 = vrot.lane.b32.xlu0 %v12531_v4, %s12487_s20  ;;  %4678 = vrot.lane.b32.xlu1 %v12544_v9, %s12487_s20 }
 0x139   :  { %10873 = vmatmul.mubr.msk.bf16.vlgmr.msra.gmra.mrb[4].mxu0 %vm182_vm0, %v12367_v16  ;;  %3124 = vmatprep.subr.bf16.mxu0 %v13387_v19 }
 0x13a   :  { %v3091_v12 = vpop.permute.xlu0 %3090  ;;  %v3097_v7 = vpop.permute.xlu1 %3096  ;;  %3156 = vmatprep.mubr.bf16.mxu0 %v14640_v48 }
 0x13b   :  { %v3107_v14 = vsel %vm14578_vm14, %v3091_v12, %v3093_v53 }
 0x13c   :  { %4680 = vrot.lane.b32.xlu0 %v12580_v18, %s12487_s20  ;;  %4682 = vrot.lane.b32.xlu1 %v12565_v15, %s12487_s20 }
 0x13d   :  { %11314 = vmatmul.mubr.msk.bf16.vlgmr.msra.gmra.mrb[4].mxu1 %vm182_vm0, %v12367_v16  ;;  %3125 = vmatpush1.bf16.msra.mxu0 %v3107_v14  ;;  %v13418_v16 = vsel %vm14578_vm14, %v3095_v22, %v3097_v7 }
 0x13e   :  { %v3099_v19 = vpop.permute.xlu0 %3098  ;;  %v3101_v40 = vpop.permute.xlu1 %3100  ;;  %3199 = vmatprep.mubr.bf16.mxu1 %v14640_v48  ;;  %14678 = vst [vmem:[#allocation47_spill] sm:$0xff] %v13418_v16 }
 0x13f   :  { %v13409_v17 = vsel %vm14578_vm14, %v3097_v7, %v3099_v19  ;;  %v13439_v22 = vsel %vm14578_vm14, %v3099_v19, %v3101_v40 }
 0x140   :  { %14677 = vst [vmem:[#allocation46_spill] sm:$0xff] %v13409_v17  ;;  %4684 = vrot.lane.b32.xlu0 %v13238_v23, %s12487_s20  ;;  %4686 = vrot.lane.b32.xlu1 %v12595_v20, %s12487_s20  ;;  %14682 = vst [vmem:[#allocation51_spill] sm:$0xff] %v13439_v22 }
 0x141   :  { %10878 = vmatmul.mubr.msk.bf16.vlgmr.msra.gmra.mrb[0].mxu0 %vm182_vm0, %v12368_v8  ;;  %3167 = vmatprep.subr.bf16.mxu1 %v13409_v17  ;;  %v12369_v17 = vld [vmem:[%s14522_s2 + $0x70] sm:$0xff]  }
 0x142   :  { %3168 = vmatpush1.bf16.msra.mxu1 %v13418_v16  ;;  %v3103_v14 = vpop.permute.xlu0 %3102  ;;  %v13421_v53 = vpop.permute.xlu1 %3104  ;;  %3242 = vmatprep.mubr.bf16.mxu0 %v14640_v48 }
 0x143   :  { %14679 = vst [vmem:[#allocation48_spill] sm:$0xff] %v13421_v53  ;;  %v13425_v12 = vsel %vm14578_vm14, %v3101_v40, %v3103_v14  ;;  %11317 = vmatprep.subr.bf16.mxu1 %v14645_v57  ;;  %v13430_v0 = vsel %vm14578_vm14, %v3103_v14, %v13421_v53  ;;  %vm14594_vm14 = vcmask 515072  }
 0x144   :  { %14680 = vst [vmem:[#allocation49_spill] sm:$0xff] %v13425_v12  ;;  %14681 = vst [vmem:[#allocation50_spill] sm:$0xff] %v13430_v0  ;;  %4900 = vrot.lane.b32.xlu0 %v12529_v3, %s12488_s27  ;;  %4902 = vrot.lane.b32.xlu1 %v12560_v13, %s12488_s27 }
 0x145   :  { %10879 = vmatmul.mubr.msk.bf16.vlgmr.msra.gmra.mrb[0].mxu1 %vm182_vm0, %v12368_v8  ;;  %3210 = vmatprep.subr.bf16.mxu0 %v13425_v12 }
 0x146   :  { %3211 = vmatpush1.bf16.msra.mxu0 %v13439_v22  ;;  %11318 = vmatpush3.bf16.msra.mxu1 %v13430_v0  ;;  %v3319_v7 = vpop.permute.xlu0 %3318  ;;  %v3321_v14 = vpop.permute.xlu1 %3320 }
 0x147   :  { %v13444_v53 = vsel %vm14586_vm15, %v3319_v7, %v3321_v14  ;;  %11319 = vmatprep.mubr.msk.bf16.mxu1 %vm12468_vm1, %v14645_v57 }
 0x148   :  { %14683 = vst [vmem:[#allocation52_spill] sm:$0xff] %v13444_v53  ;;  %4898 = vrot.lane.b32.xlu0 %v12531_v4, %s12488_s27  ;;  %4904 = vrot.lane.b32.xlu1 %v12544_v9, %s12488_s27 }
 0x149   :  { %10880 = vmatmul.mubr.msk.bf16.vlgmr.msra.gmra.mrb[4].mxu0 %vm182_vm0, %v12368_v8  ;;  %3350 = vmatprep.subr.bf16.mxu0 %v13444_v53 }
 0x14a   :  { %v3317_v40 = vpop.permute.xlu0 %3316  ;;  %v3323_v19 = vpop.permute.xlu1 %3322  ;;  %3382 = vmatprep.mubr.bf16.mxu0 %v14640_v48 }
 0x14b   :  { %v3333_v12 = vsel %vm14586_vm15, %v3317_v40, %v3319_v7 }
 0x14c   :  { %4906 = vrot.lane.b32.xlu0 %v12580_v18, %s12488_s27  ;;  %4908 = vrot.lane.b32.xlu1 %v12565_v15, %s12488_s27 }
 0x14d   :  { %11320 = vmatmul.mubr.msk.bf16.vlgmr.msra.gmra.mrb[4].mxu1 %vm182_vm0, %v12368_v8  ;;  %3351 = vmatpush1.bf16.msra.mxu0 %v3333_v12  ;;  %v13475_v8 = vsel %vm14586_vm15, %v3321_v14, %v3323_v19 }
 0x14e   :  { %v3325_v53 = vpop.permute.xlu0 %3324  ;;  %v3327_v0 = vpop.permute.xlu1 %3326  ;;  %3425 = vmatprep.mubr.bf16.mxu1 %v14640_v48  ;;  %14685 = vst [vmem:[#allocation54_spill] sm:$0xff] %v13475_v8 }
 0x14f   :  { %v13466_v22 = vsel %vm14586_vm15, %v3323_v19, %v3325_v53  ;;  %v13496_v14 = vsel %vm14586_vm15, %v3325_v53, %v3327_v0 }
 0x150   :  { %14684 = vst [vmem:[#allocation53_spill] sm:$0xff] %v13466_v22  ;;  %4910 = vrot.lane.b32.xlu0 %v13238_v23, %s12488_s27  ;;  %4912 = vrot.lane.b32.xlu1 %v12595_v20, %s12488_s27  ;;  %14689 = vst [vmem:[#allocation58_spill] sm:$0xff] %v13496_v14 }
 0x151   :  { %10885 = vmatmul.mubr.msk.bf16.vlgmr.msra.gmra.mrb[0].mxu0 %vm182_vm0, %v12369_v17  ;;  %3393 = vmatprep.subr.bf16.mxu1 %v13466_v22  ;;  %v12370_v22 = vld [vmem:[%s14522_s2 + $0x78] sm:$0xff]  }
 0x152   :  { %3394 = vmatpush1.bf16.msra.mxu1 %v13475_v8  ;;  %v3329_v12 = vpop.permute.xlu0 %3328  ;;  %v13478_v7 = vpop.permute.xlu1 %3330  ;;  %3468 = vmatprep.mubr.bf16.mxu0 %v14640_v48 }
 0x153   :  { %14686 = vst [vmem:[#allocation55_spill] sm:$0xff] %v13478_v7  ;;  %v13482_v40 = vsel %vm14586_vm15, %v3327_v0, %v3329_v12  ;;  %11323 = vmatprep.subr.bf16.mxu1 %v14645_v57  ;;  %v13487_v16 = vsel %vm14586_vm15, %v3329_v12, %v13478_v7  ;;  %vm14602_vm15 = vcmask 506880  }
 0x154   :  { %14687 = vst [vmem:[#allocation56_spill] sm:$0xff] %v13482_v40  ;;  %14688 = vst [vmem:[#allocation57_spill] sm:$0xff] %v13487_v16  ;;  %5126 = vrot.lane.b32.xlu0 %v12529_v3, %s12489_s8  ;;  %5128 = vrot.lane.b32.xlu1 %v12560_v13, %s12489_s8 }
 0x155   :  { %10886 = vmatmul.mubr.msk.bf16.vlgmr.msra.gmra.mrb[0].mxu1 %vm182_vm0, %v12369_v17  ;;  %3436 = vmatprep.subr.bf16.mxu0 %v13482_v40 }
 0x156   :  { %3437 = vmatpush1.bf16.msra.mxu0 %v13496_v14  ;;  %11324 = vmatpush3.bf16.msra.mxu1 %v13487_v16  ;;  %v3545_v19 = vpop.permute.xlu0 %3544  ;;  %v3547_v12 = vpop.permute.xlu1 %3546 }
 0x157   :  { %v13501_v7 = vsel %vm14594_vm14, %v3545_v19, %v3547_v12  ;;  %11325 = vmatprep.mubr.msk.bf16.mxu1 %vm12468_vm1, %v14645_v57 }
 0x158   :  { %14690 = vst [vmem:[#allocation59_spill] sm:$0xff] %v13501_v7  ;;  %5124 = vrot.lane.b32.xlu0 %v12531_v4, %s12489_s8  ;;  %5130 = vrot.lane.b32.xlu1 %v12544_v9, %s12489_s8 }
 0x159   :  { %10887 = vmatmul.mubr.msk.bf16.vlgmr.msra.gmra.mrb[4].mxu0 %vm182_vm0, %v12369_v17  ;;  %3576 = vmatprep.subr.bf16.mxu0 %v13501_v7 }
 0x15a   :  { %v3543_v0 = vpop.permute.xlu0 %3542  ;;  %v3549_v53 = vpop.permute.xlu1 %3548  ;;  %3608 = vmatprep.mubr.bf16.mxu0 %v14640_v48 }
 0x15b   :  { %v3559_v40 = vsel %vm14594_vm14, %v3543_v0, %v3545_v19 }
 0x15c   :  { %5132 = vrot.lane.b32.xlu0 %v12580_v18, %s12489_s8  ;;  %5134 = vrot.lane.b32.xlu1 %v12565_v15, %s12489_s8 }
 0x15d   :  { %11326 = vmatmul.mubr.msk.bf16.vlgmr.msra.gmra.mrb[4].mxu1 %vm182_vm0, %v12369_v17  ;;  %3577 = vmatpush1.bf16.msra.mxu0 %v3559_v40  ;;  %v13532_v17 = vsel %vm14594_vm14, %v3547_v12, %v3549_v53 }
 0x15e   :  { %v3551_v7 = vpop.permute.xlu0 %3550  ;;  %v3553_v16 = vpop.permute.xlu1 %3552  ;;  %3651 = vmatprep.mubr.bf16.mxu1 %v14640_v48  ;;  %14692 = vst [vmem:[#allocation61_spill] sm:$0xff] %v13532_v17 }
 0x15f   :  { %v13523_v14 = vsel %vm14594_vm14, %v3549_v53, %v3551_v7  ;;  %v13553_v12 = vsel %vm14594_vm14, %v3551_v7, %v3553_v16 }
 0x160   :  { %14691 = vst [vmem:[#allocation60_spill] sm:$0xff] %v13523_v14  ;;  %5136 = vrot.lane.b32.xlu0 %v13238_v23, %s12489_s8  ;;  %5138 = vrot.lane.b32.xlu1 %v12595_v20, %s12489_s8  ;;  %14696 = vst [vmem:[#allocation65_spill] sm:$0xff] %v13553_v12 }
 0x161   :  { %10892 = vmatmul.mubr.msk.bf16.vlgmr.msra.gmra.mrb[0].mxu0 %vm182_vm0, %v12370_v22  ;;  %3619 = vmatprep.subr.bf16.mxu1 %v13523_v14  ;;  %v12371_v14 = vld [vmem:[%s14522_s2 + $0x80] sm:$0xff]  }
 0x162   :  { %3620 = vmatpush1.bf16.msra.mxu1 %v13532_v17  ;;  %v3555_v40 = vpop.permute.xlu0 %3554  ;;  %v13535_v19 = vpop.permute.xlu1 %3556  ;;  %3694 = vmatprep.mubr.bf16.mxu0 %v14640_v48 }
 0x163   :  { %14693 = vst [vmem:[#allocation62_spill] sm:$0xff] %v13535_v19  ;;  %v13539_v0 = vsel %vm14594_vm14, %v3553_v16, %v3555_v40  ;;  %11329 = vmatprep.subr.bf16.mxu1 %v14645_v57  ;;  %v13544_v8 = vsel %vm14594_vm14, %v3555_v40, %v13535_v19  ;;  %vm14610_vm14 = vcmask 498688  }
 0x164   :  { %14694 = vst [vmem:[#allocation63_spill] sm:$0xff] %v13539_v0  ;;  %14695 = vst [vmem:[#allocation64_spill] sm:$0xff] %v13544_v8  ;;  %5352 = vrot.lane.b32.xlu0 %v12529_v3, %s12490_s23  ;;  %5354 = vrot.lane.b32.xlu1 %v12560_v13, %s12490_s23 }
 0x165   :  { %10893 = vmatmul.mubr.msk.bf16.vlgmr.msra.gmra.mrb[0].mxu1 %vm182_vm0, %v12370_v22  ;;  %3662 = vmatprep.subr.bf16.mxu0 %v13539_v0 }
 0x166   :  { %3663 = vmatpush1.bf16.msra.mxu0 %v13553_v12  ;;  %11330 = vmatpush3.bf16.msra.mxu1 %v13544_v8  ;;  %v3771_v53 = vpop.permute.xlu0 %3770  ;;  %v3773_v40 = vpop.permute.xlu1 %3772 }
 0x167   :  { %v13558_v19 = vsel %vm14602_vm15, %v3771_v53, %v3773_v40  ;;  %11331 = vmatprep.mubr.msk.bf16.mxu1 %vm12468_vm1, %v14645_v57 }
 0x168   :  { %14697 = vst [vmem:[#allocation66_spill] sm:$0xff] %v13558_v19  ;;  %5350 = vrot.lane.b32.xlu0 %v12531_v4, %s12490_s23  ;;  %5356 = vrot.lane.b32.xlu1 %v12544_v9, %s12490_s23 }
 0x169   :  { %10894 = vmatmul.mubr.msk.bf16.vlgmr.msra.gmra.mrb[4].mxu0 %vm182_vm0, %v12370_v22  ;;  %3802 = vmatprep.subr.bf16.mxu0 %v13558_v19 }
 0x16a   :  { %v3769_v16 = vpop.permute.xlu0 %3768  ;;  %v3775_v7 = vpop.permute.xlu1 %3774  ;;  %3834 = vmatprep.mubr.bf16.mxu0 %v14640_v48 }
 0x16b   :  { %v3785_v0 = vsel %vm14602_vm15, %v3769_v16, %v3771_v53 }
 0x16c   :  { %5358 = vrot.lane.b32.xlu0 %v12580_v18, %s12490_s23  ;;  %5360 = vrot.lane.b32.xlu1 %v12565_v15, %s12490_s23 }
 0x16d   :  { %11332 = vmatmul.mubr.msk.bf16.vlgmr.msra.gmra.mrb[4].mxu1 %vm182_vm0, %v12370_v22  ;;  %3803 = vmatpush1.bf16.msra.mxu0 %v3785_v0  ;;  %v13589_v22 = vsel %vm14602_vm15, %v3773_v40, %v3775_v7 }
 0x16e   :  { %v3777_v19 = vpop.permute.xlu0 %3776  ;;  %v3779_v8 = vpop.permute.xlu1 %3778  ;;  %3877 = vmatprep.mubr.bf16.mxu1 %v14640_v48  ;;  %14699 = vst [vmem:[#allocation68_spill] sm:$0xff] %v13589_v22 }
 0x16f   :  { %v13580_v12 = vsel %vm14602_vm15, %v3775_v7, %v3777_v19  ;;  %v13610_v40 = vsel %vm14602_vm15, %v3777_v19, %v3779_v8 }
 0x170   :  { %14698 = vst [vmem:[#allocation67_spill] sm:$0xff] %v13580_v12  ;;  %5362 = vrot.lane.b32.xlu0 %v13238_v23, %s12490_s23  ;;  %5364 = vrot.lane.b32.xlu1 %v12595_v20, %s12490_s23  ;;  %14703 = vst [vmem:[#allocation72_spill] sm:$0xff] %v13610_v40 }
 0x171   :  { %10899 = vmatmul.mubr.msk.bf16.vlgmr.msra.gmra.mrb[0].mxu0 %vm182_vm0, %v12371_v14  ;;  %3845 = vmatprep.subr.bf16.mxu1 %v13580_v12  ;;  %v12372_v12 = vld [vmem:[%s14522_s2 + $0x88] sm:$0xff]  }
 0x172   :  { %3846 = vmatpush1.bf16.msra.mxu1 %v13589_v22  ;;  %v3781_v0 = vpop.permute.xlu0 %3780  ;;  %v13592_v53 = vpop.permute.xlu1 %3782  ;;  %3920 = vmatprep.mubr.bf16.mxu0 %v14640_v48 }
 0x173   :  { %14700 = vst [vmem:[#allocation69_spill] sm:$0xff] %v13592_v53  ;;  %v13596_v16 = vsel %vm14602_vm15, %v3779_v8, %v3781_v0  ;;  %11335 = vmatprep.subr.bf16.mxu1 %v14645_v57  ;;  %v13601_v17 = vsel %vm14602_vm15, %v3781_v0, %v13592_v53  ;;  %vm14618_vm15 = vcmask 490496  }
 0x174   :  { %14701 = vst [vmem:[#allocation70_spill] sm:$0xff] %v13596_v16  ;;  %14702 = vst [vmem:[#allocation71_spill] sm:$0xff] %v13601_v17  ;;  %5578 = vrot.lane.b32.xlu0 %v12529_v3, %s12491_s29  ;;  %5580 = vrot.lane.b32.xlu1 %v12560_v13, %s12491_s29 }
 0x175   :  { %10900 = vmatmul.mubr.msk.bf16.vlgmr.msra.gmra.mrb[0].mxu1 %vm182_vm0, %v12371_v14  ;;  %3888 = vmatprep.subr.bf16.mxu0 %v13596_v16 }
 0x176   :  { %3889 = vmatpush1.bf16.msra.mxu0 %v13610_v40  ;;  %11336 = vmatpush3.bf16.msra.mxu1 %v13601_v17  ;;  %v3997_v7 = vpop.permute.xlu0 %3996  ;;  %v3999_v0 = vpop.permute.xlu1 %3998 }
 0x177   :  { %v13615_v53 = vsel %vm14610_vm14, %v3997_v7, %v3999_v0  ;;  %11337 = vmatprep.mubr.msk.bf16.mxu1 %vm12468_vm1, %v14645_v57 }
 0x178   :  { %14704 = vst [vmem:[#allocation73_spill] sm:$0xff] %v13615_v53  ;;  %5576 = vrot.lane.b32.xlu0 %v12531_v4, %s12491_s29  ;;  %5582 = vrot.lane.b32.xlu1 %v12544_v9, %s12491_s29 }
 0x179   :  { %10901 = vmatmul.mubr.msk.bf16.vlgmr.msra.gmra.mrb[4].mxu0 %vm182_vm0, %v12371_v14  ;;  %4028 = vmatprep.subr.bf16.mxu0 %v13615_v53 }
 0x17a   :  { %v3995_v8 = vpop.permute.xlu0 %3994  ;;  %v4001_v19 = vpop.permute.xlu1 %4000  ;;  %4060 = vmatprep.mubr.bf16.mxu0 %v14640_v48 }
 0x17b   :  { %v4011_v16 = vsel %vm14610_vm14, %v3995_v8, %v3997_v7 }
 0x17c   :  { %5584 = vrot.lane.b32.xlu0 %v12580_v18, %s12491_s29  ;;  %5586 = vrot.lane.b32.xlu1 %v12565_v15, %s12491_s29 }
 0x17d   :  { %11338 = vmatmul.mubr.msk.bf16.vlgmr.msra.gmra.mrb[4].mxu1 %vm182_vm0, %v12371_v14  ;;  %4029 = vmatpush1.bf16.msra.mxu0 %v4011_v16  ;;  %v13646_v14 = vsel %vm14610_vm14, %v3999_v0, %v4001_v19 }
 0x17e   :  { %v4003_v53 = vpop.permute.xlu0 %4002  ;;  %v4005_v17 = vpop.permute.xlu1 %4004  ;;  %4103 = vmatprep.mubr.bf16.mxu1 %v14640_v48  ;;  %14706 = vst [vmem:[#allocation75_spill] sm:$0xff] %v13646_v14 }
 0x17f   :  { %v13637_v40 = vsel %vm14610_vm14, %v4001_v19, %v4003_v53  ;;  %v13667_v0 = vsel %vm14610_vm14, %v4003_v53, %v4005_v17 }
 0x180   :  { %14705 = vst [vmem:[#allocation74_spill] sm:$0xff] %v13637_v40  ;;  %5588 = vrot.lane.b32.xlu0 %v13238_v23, %s12491_s29  ;;  %5590 = vrot.lane.b32.xlu1 %v12595_v20, %s12491_s29  ;;  %14710 = vst [vmem:[#allocation79_spill] sm:$0xff] %v13667_v0 }
 0x181   :  { %10906 = vmatmul.mubr.msk.bf16.vlgmr.msra.gmra.mrb[0].mxu0 %vm182_vm0, %v12372_v12  ;;  %4071 = vmatprep.subr.bf16.mxu1 %v13637_v40  ;;  %v12373_v40 = vld [vmem:[%s14522_s2 + $0x90] sm:$0xff]  }
 0x182   :  { %4072 = vmatpush1.bf16.msra.mxu1 %v13646_v14  ;;  %v4007_v16 = vpop.permute.xlu0 %4006  ;;  %v13649_v7 = vpop.permute.xlu1 %4008  ;;  %4146 = vmatprep.mubr.bf16.mxu0 %v14640_v48 }
 0x183   :  { %14707 = vst [vmem:[#allocation76_spill] sm:$0xff] %v13649_v7  ;;  %v13653_v8 = vsel %vm14610_vm14, %v4005_v17, %v4007_v16  ;;  %11341 = vmatprep.subr.bf16.mxu1 %v14645_v57  ;;  %v13658_v22 = vsel %vm14610_vm14, %v4007_v16, %v13649_v7  ;;  %vm14626_vm14 = vcmask 482304  }
 0x184   :  { %14708 = vst [vmem:[#allocation77_spill] sm:$0xff] %v13653_v8  ;;  %14709 = vst [vmem:[#allocation78_spill] sm:$0xff] %v13658_v22  ;;  %5804 = vrot.lane.b32.xlu0 %v12529_v3, %s12492_s10  ;;  %5806 = vrot.lane.b32.xlu1 %v12560_v13, %s12492_s10 }
 0x185   :  { %10907 = vmatmul.mubr.msk.bf16.vlgmr.msra.gmra.mrb[0].mxu1 %vm182_vm0, %v12372_v12  ;;  %4114 = vmatprep.subr.bf16.mxu0 %v13653_v8 }
 0x186   :  { %4115 = vmatpush1.bf16.msra.mxu0 %v13667_v0  ;;  %11342 = vmatpush3.bf16.msra.mxu1 %v13658_v22  ;;  %v4223_v19 = vpop.permute.xlu0 %4222  ;;  %v4225_v16 = vpop.permute.xlu1 %4224 }
 0x187   :  { %v13672_v7 = vsel %vm14618_vm15, %v4223_v19, %v4225_v16  ;;  %11343 = vmatprep.mubr.msk.bf16.mxu1 %vm12468_vm1, %v14645_v57 }
 0x188   :  { %14711 = vst [vmem:[#allocation80_spill] sm:$0xff] %v13672_v7  ;;  %5802 = vrot.lane.b32.xlu0 %v12531_v4, %s12492_s10  ;;  %5808 = vrot.lane.b32.xlu1 %v12544_v9, %s12492_s10 }
 0x189   :  { %10908 = vmatmul.mubr.msk.bf16.vlgmr.msra.gmra.mrb[4].mxu0 %vm182_vm0, %v12372_v12  ;;  %4254 = vmatprep.subr.bf16.mxu0 %v13672_v7 }
 0x18a   :  { %v4221_v17 = vpop.permute.xlu0 %4220  ;;  %v4227_v53 = vpop.permute.xlu1 %4226  ;;  %4286 = vmatprep.mubr.bf16.mxu0 %v14640_v48 }
 0x18b   :  { %v4237_v8 = vsel %vm14618_vm15, %v4221_v17, %v4223_v19 }
 0x18c   :  { %5810 = vrot.lane.b32.xlu0 %v12580_v18, %s12492_s10  ;;  %5812 = vrot.lane.b32.xlu1 %v12565_v15, %s12492_s10 }
 0x18d   :  { %11344 = vmatmul.mubr.msk.bf16.vlgmr.msra.gmra.mrb[4].mxu1 %vm182_vm0, %v12372_v12  ;;  %4255 = vmatpush1.bf16.msra.mxu0 %v4237_v8  ;;  %v13703_v12 = vsel %vm14618_vm15, %v4225_v16, %v4227_v53 }
 0x18e   :  { %v4229_v7 = vpop.permute.xlu0 %4228  ;;  %v4231_v22 = vpop.permute.xlu1 %4230  ;;  %4329 = vmatprep.mubr.bf16.mxu1 %v14640_v48  ;;  %14713 = vst [vmem:[#allocation82_spill] sm:$0xff] %v13703_v12 }
 0x18f   :  { %v13694_v0 = vsel %vm14618_vm15, %v4227_v53, %v4229_v7  ;;  %v13722_v16 = vsel %vm14618_vm15, %v4229_v7, %v4231_v22 }
 0x190   :  { %14712 = vst [vmem:[#allocation81_spill] sm:$0xff] %v13694_v0  ;;  %5814 = vrot.lane.b32.xlu0 %v13238_v23, %s12492_s10  ;;  %5816 = vrot.lane.b32.xlu1 %v12595_v20, %s12492_s10  ;;  %14717 = vst [vmem:[#allocation86_spill] sm:$0xff] %v13722_v16 }
 0x191   :  { %10913 = vmatmul.mubr.msk.bf16.vlgmr.msra.gmra.mrb[0].mxu0 %vm182_vm0, %v12373_v40  ;;  %4297 = vmatprep.subr.bf16.mxu1 %v13694_v0  ;;  %v12374_v0 = vld [vmem:[%s14522_s2 + $0x98] sm:$0xff]  }
 0x192   :  { %4298 = vmatpush1.bf16.msra.mxu1 %v13703_v12  ;;  %v4233_v8 = vpop.permute.xlu0 %4232  ;;  %v13706_v19 = vpop.permute.xlu1 %4234  ;;  %4372 = vmatprep.mubr.bf16.mxu0 %v14640_v48 }
 0x193   :  { %14714 = vst [vmem:[#allocation83_spill] sm:$0xff] %v13706_v19  ;;  %v13711_v17 = vsel %vm14618_vm15, %v4233_v8, %v13706_v19  ;;  %v13714_v14 = vsel %vm14618_vm15, %v4231_v22, %v4233_v8  ;;  %11347 = vmatprep.subr.bf16.mxu1 %v14645_v57  ;;  %vm14632_vm15 = vcmask 474112  }
 0x194   :  { %14715 = vst [vmem:[#allocation84_spill] sm:$0xff] %v13711_v17  ;;  %14716 = vst [vmem:[#allocation85_spill] sm:$0xff] %v13714_v14  ;;  %6030 = vrot.lane.b32.xlu0 %v12529_v3, %s12493_s24  ;;  %6032 = vrot.lane.b32.xlu1 %v12560_v13, %s12493_s24 }
 0x195   :  { %10914 = vmatmul.mubr.msk.bf16.vlgmr.msra.gmra.mrb[0].mxu1 %vm182_vm0, %v12373_v40  ;;  %4340 = vmatprep.subr.bf16.mxu0 %v13714_v14 }
 0x196   :  { %4341 = vmatpush1.bf16.msra.mxu0 %v13722_v16  ;;  %11348 = vmatpush3.bf16.msra.mxu1 %v13711_v17  ;;  %v4449_v53 = vpop.permute.xlu0 %4448  ;;  %v4451_v8 = vpop.permute.xlu1 %4450 }
 0x197   :  { %v13729_v19 = vsel %vm14626_vm14, %v4449_v53, %v4451_v8  ;;  %11349 = vmatprep.mubr.msk.bf16.mxu1 %vm12468_vm1, %v14645_v57 }
 0x198   :  { %14718 = vst [vmem:[#allocation87_spill] sm:$0xff] %v13729_v19  ;;  %6028 = vrot.lane.b32.xlu0 %v12531_v4, %s12493_s24  ;;  %6034 = vrot.lane.b32.xlu1 %v12544_v9, %s12493_s24 }
 0x199   :  { %10915 = vmatmul.mubr.msk.bf16.vlgmr.msra.gmra.mrb[4].mxu0 %vm182_vm0, %v12373_v40  ;;  %4480 = vmatprep.subr.bf16.mxu0 %v13729_v19 }
 0x19a   :  { %v4447_v22 = vpop.permute.xlu0 %4446  ;;  %v4453_v7 = vpop.permute.xlu1 %4452  ;;  %4512 = vmatprep.mubr.bf16.mxu0 %v14640_v48 }
 0x19b   :  { %v4463_v14 = vsel %vm14626_vm14, %v4447_v22, %v4449_v53 }
 0x19c   :  { %6036 = vrot.lane.b32.xlu0 %v12580_v18, %s12493_s24  ;;  %6038 = vrot.lane.b32.xlu1 %v12565_v15, %s12493_s24 }
 0x19d   :  { %11350 = vmatmul.mubr.msk.bf16.vlgmr.msra.gmra.mrb[4].mxu1 %vm182_vm0, %v12373_v40  ;;  %4481 = vmatpush1.bf16.msra.mxu0 %v4463_v14  ;;  %v13758_v40 = vsel %vm14626_vm14, %v4451_v8, %v4453_v7 }
 0x19e   :  { %v4455_v19 = vpop.permute.xlu0 %4454  ;;  %v4457_v17 = vpop.permute.xlu1 %4456  ;;  %4555 = vmatprep.mubr.bf16.mxu1 %v14640_v48  ;;  %14720 = vst [vmem:[#allocation89_spill] sm:$0xff] %v13758_v40 }
 0x19f   :  { %v13751_v16 = vsel %vm14626_vm14, %v4453_v7, %v4455_v19  ;;  %v13779_v8 = vsel %vm14626_vm14, %v4455_v19, %v4457_v17 }
 0x1a0   :  { %14719 = vst [vmem:[#allocation88_spill] sm:$0xff] %v13751_v16  ;;  %6040 = vrot.lane.b32.xlu0 %v13238_v23, %s12493_s24  ;;  %6042 = vrot.lane.b32.xlu1 %v12595_v20, %s12493_s24  ;;  %14724 = vst [vmem:[#allocation93_spill] sm:$0xff] %v13779_v8 }
 0x1a1   :  { %10920 = vmatmul.mubr.msk.bf16.vlgmr.msra.gmra.mrb[0].mxu0 %vm182_vm0, %v12374_v0  ;;  %4523 = vmatprep.subr.bf16.mxu1 %v13751_v16 }
 0x1a2   :  { %4524 = vmatpush1.bf16.msra.mxu1 %v13758_v40  ;;  %v4459_v14 = vpop.permute.xlu0 %4458  ;;  %v13763_v53 = vpop.permute.xlu1 %4460  ;;  %4598 = vmatprep.mubr.bf16.mxu0 %v14640_v48 }
 0x1a3   :  { %14721 = vst [vmem:[#allocation90_spill] sm:$0xff] %v13763_v53  ;;  %v13768_v22 = vsel %vm14626_vm14, %v4459_v14, %v13763_v53  ;;  %v13771_v12 = vsel %vm14626_vm14, %v4457_v17, %v4459_v14  ;;  %11353 = vmatprep.subr.bf16.mxu1 %v14645_v57  ;;  %vm4914_vm14 = vcmask 261120  }
 0x1a4   :  { %14722 = vst [vmem:[#allocation91_spill] sm:$0xff] %v13768_v22  ;;  %14723 = vst [vmem:[#allocation92_spill] sm:$0xff] %v13771_v12  ;;  %6256 = vrot.lane.b32.xlu0 %v12529_v3, %s12494_s6  ;;  %6258 = vrot.lane.b32.xlu1 %v12560_v13, %s12494_s6 }
 0x1a5   :  { %10921 = vmatmul.mubr.msk.bf16.vlgmr.msra.gmra.mrb[0].mxu1 %vm182_vm0, %v12374_v0  ;;  %4566 = vmatprep.subr.bf16.mxu0 %v13771_v12 }
 0x1a6   :  { %4567 = vmatpush1.bf16.msra.mxu0 %v13779_v8  ;;  %11354 = vmatpush3.bf16.msra.mxu1 %v13768_v22  ;;  %v4675_v7 = vpop.permute.xlu0 %4674  ;;  %v4677_v14 = vpop.permute.xlu1 %4676 }
 0x1a7   :  { %v13786_v53 = vsel %vm14632_vm15, %v4675_v7, %v4677_v14  ;;  %11355 = vmatprep.mubr.msk.bf16.mxu1 %vm12468_vm1, %v14645_v57 }
 0x1a8   :  { %14725 = vst [vmem:[#allocation94_spill] sm:$0xff] %v13786_v53  ;;  %6254 = vrot.lane.b32.xlu0 %v12531_v4, %s12494_s6  ;;  %6260 = vrot.lane.b32.xlu1 %v12544_v9, %s12494_s6  ;;  %v12375_v4 = vld [vmem:[%s14522_s2 + $0xa0] sm:$0xff]  }
 0x1a9   :  { %10922 = vmatmul.mubr.msk.bf16.vlgmr.msra.gmra.mrb[4].mxu0 %vm182_vm0, %v12374_v0  ;;  %4706 = vmatprep.subr.bf16.mxu0 %v13786_v53 }
 0x1aa   :  { %v4673_v19 = vpop.permute.xlu0 %4672  ;;  %v4679_v17 = vpop.permute.xlu1 %4678  ;;  %4738 = vmatprep.mubr.bf16.mxu0 %v14640_v48 }
 0x1ab   :  { %v4689_v12 = vsel %vm14632_vm15, %v4673_v19, %v4675_v7  ;;  %v12462_v7 = vld [vmem:[#allocation3] sm:$0xff]  ;;  %v13817_v19 = vsel %vm14632_vm15, %v4677_v14, %v4679_v17 }
 0x1ac   :  { %6262 = vrot.lane.b32.xlu0 %v12580_v18, %s12494_s6  ;;  %6264 = vrot.lane.b32.xlu1 %v12565_v15, %s12494_s6 }
 0x1ad   :  { %11356 = vmatmul.mubr.msk.bf16.vlgmr.msra.gmra.mrb[4].mxu1 %vm182_vm0, %v12374_v0  ;;  %4707 = vmatpush1.bf16.msra.mxu0 %v4689_v12  ;;  %v12463_v0 = vld [vmem:[#allocation3 + $0x1c] sm:$0xff] }
 0x1ae   :  { %v4681_v53 = vpop.permute.xlu0 %4680  ;;  %v4683_v16 = vpop.permute.xlu1 %4682  ;;  %4781 = vmatprep.mubr.bf16.mxu1 %v14640_v48  ;;  %v13814_v12 = vcombine.high %v12462_v7, %v12463_v0 }
 0x1af   :  { %v13808_v22 = vsel %vm14632_vm15, %v4679_v17, %v4681_v53  ;;  %v13838_v14 = vsel %vm14632_vm15, %v4681_v53, %v4683_v16 }
 0x1b0   :  { %14726 = vst [vmem:[#allocation95_spill] sm:$0xff] %v13808_v22  ;;  %6266 = vrot.lane.b32.xlu0 %v13238_v23, %s12494_s6  ;;  %6268 = vrot.lane.b32.xlu1 %v12595_v20, %s12494_s6  ;;  %14730 = vst [vmem:[#allocation99_spill] sm:$0xff] %v13838_v14 }
 0x1b1   :  { %10927 = vmatmul.mubr.msk.bf16.vlgmr.msra.gmra.mrb[0].mxu0 %vm182_vm0, %v12375_v4  ;;  %4749 = vmatprep.subr.bf16.mxu1 %v13808_v22 }
 0x1b2   :  { %4750 = vmatpush1.bf16.msra.mxu1 %v13817_v19  ;;  %v4685_v8 = vpop.permute.xlu0 %4684  ;;  %v13822_v40 = vpop.permute.xlu1 %4686  ;;  %4824 = vmatprep.mubr.bf16.mxu0 %v14640_v48 }
 0x1b3   :  { %14727 = vst [vmem:[#allocation96_spill] sm:$0xff] %v13822_v40  ;;  %v13827_v23 = vsel %vm14632_vm15, %v4685_v8, %v13822_v40  ;;  %v13830_v7 = vsel %vm14632_vm15, %v4683_v16, %v4685_v8  ;;  %11359 = vmatprep.subr.bf16.mxu1 %v14645_v57  ;;  %vm5140_vm15 = vcmask 252928  }
 0x1b4   :  { %14728 = vst [vmem:[#allocation97_spill] sm:$0xff] %v13827_v23  ;;  %14729 = vst [vmem:[#allocation98_spill] sm:$0xff] %v13830_v7  ;;  %6675 = vrot.lane.b32.xlu0 %v13814_v12, %s12466_s7  ;;  %6874 = vrot.lane.b32.xlu1 %v13814_v12, %s12469_s1 }
 0x1b5   :  { %10928 = vmatmul.mubr.msk.bf16.vlgmr.msra.gmra.mrb[0].mxu1 %vm182_vm0, %v12375_v4  ;;  %4792 = vmatprep.subr.bf16.mxu0 %v13830_v7  ;;  %v12377_v7 = vld [vmem:[%s14522_s2 + $0xa8] sm:$0xff]  }
 0x1b6   :  { %4793 = vmatpush1.bf16.msra.mxu0 %v13838_v14  ;;  %11360 = vmatpush3.bf16.msra.mxu1 %v13827_v23  ;;  %v4901_v8 = vpop.permute.xlu0 %4900  ;;  %v4903_v17 = vpop.permute.xlu1 %4902 }
 0x1b7   :  { %v4916_v0 = vsel %vm4914_vm14, %v4901_v8, %v4903_v17  ;;  %11361 = vmatprep.mubr.msk.bf16.mxu1 %vm12468_vm1, %v14645_v57 }
 0x1b8   :  { %7073 = vrot.lane.b32.xlu0 %v13814_v12, %s12470_s11  ;;  %7272 = vrot.lane.b32.xlu1 %v13814_v12, %s12471_s12 }
 0x1b9   :  { %10929 = vmatmul.mubr.msk.bf16.vlgmr.msra.gmra.mrb[4].mxu0 %vm182_vm0, %v12375_v4  ;;  %4932 = vmatprep.subr.bf16.mxu0 %v4916_v0 }
 0x1ba   :  { %v4899_v16 = vpop.permute.xlu0 %4898  ;;  %v4905_v53 = vpop.permute.xlu1 %4904  ;;  %4964 = vmatprep.mubr.bf16.mxu0 %v14640_v48 }
 0x1bb   :  { %v4915_v40 = vsel %vm4914_vm14, %v4899_v16, %v4901_v8  ;;  %v4917_v8 = vsel %vm4914_vm14, %v4903_v17, %v4905_v53 }
 0x1bc   :  { %7471 = vrot.lane.b32.xlu0 %v13814_v12, %s12472_s13  ;;  %7670 = vrot.lane.b32.xlu1 %v13814_v12, %s12473_s14 }
 0x1bd   :  { %11362 = vmatmul.mubr.msk.bf16.vlgmr.msra.gmra.mrb[4].mxu1 %vm182_vm0, %v12375_v4  ;;  %4933 = vmatpush1.bf16.msra.mxu0 %v4915_v40 }
 0x1be   :  { %v4907_v0 = vpop.permute.xlu0 %4906  ;;  %v4909_v22 = vpop.permute.xlu1 %4908  ;;  %5007 = vmatprep.mubr.bf16.mxu1 %v14640_v48 }
 0x1bf   :  { %v4918_v23 = vsel %vm4914_vm14, %v4905_v53, %v4907_v0 }
 0x1c0   :  { %7869 = vrot.lane.b32.xlu0 %v13814_v12, %s12474_s15  ;;  %8068 = vrot.lane.b32.xlu1 %v13814_v12, %s12475_s16 }
 0x1c1   :  { %10934 = vmatmul.mubr.msk.bf16.vlgmr.msra.gmra.mrb[0].mxu0 %vm182_vm0, %v12377_v7  ;;  %4975 = vmatprep.subr.bf16.mxu1 %v4918_v23  ;;  %v4919_v23 = vsel %vm4914_vm14, %v4907_v0, %v4909_v22 }
 0x1c2   :  { %4976 = vmatpush1.bf16.msra.mxu1 %v4917_v8  ;;  %v4911_v40 = vpop.permute.xlu0 %4910  ;;  %v4913_v4 = vpop.permute.xlu1 %4912  ;;  %5050 = vmatprep.mubr.bf16.mxu0 %v14640_v48 }
 0x1c3   :  { %v4921_v16 = vsel %vm4914_vm14, %v4911_v40, %v4913_v4  ;;  %v4920_v14 = vsel %vm4914_vm14, %v4909_v22, %v4911_v40  ;;  %11365 = vmatprep.subr.bf16.mxu1 %v14645_v57  ;;  %v12378_v40 = vld [vmem:[%s14522_s2 + $0xb0] sm:$0xff]   ;;  %vm5366_vm14 = vcmask 244736  }
 0x1c4   :  { %8267 = vrot.lane.b32.xlu0 %v13814_v12, %s12476_s19  ;;  %8466 = vrot.lane.b32.xlu1 %v13814_v12, %s12477_s22 }
 0x1c5   :  { %10935 = vmatmul.mubr.msk.bf16.vlgmr.msra.gmra.mrb[0].mxu1 %vm182_vm0, %v12377_v7  ;;  %5018 = vmatprep.subr.bf16.mxu0 %v4920_v14 }
 0x1c6   :  { %5019 = vmatpush1.bf16.msra.mxu0 %v4919_v23  ;;  %11366 = vmatpush3.bf16.msra.mxu1 %v4921_v16  ;;  %v5127_v17 = vpop.permute.xlu0 %5126  ;;  %v5129_v53 = vpop.permute.xlu1 %5128 }
 0x1c7   :  { %v5142_v8 = vsel %vm5140_vm15, %v5127_v17, %v5129_v53  ;;  %11367 = vmatprep.mubr.msk.bf16.mxu1 %vm12468_vm1, %v14645_v57 }
 0x1c8   :  { %8665 = vrot.lane.b32.xlu0 %v13814_v12, %s12478_s25  ;;  %8864 = vrot.lane.b32.xlu1 %v13814_v12, %s12479_s28 }
 0x1c9   :  { %10936 = vmatmul.mubr.msk.bf16.vlgmr.msra.gmra.mrb[4].mxu0 %vm182_vm0, %v12377_v7  ;;  %5158 = vmatprep.subr.bf16.mxu0 %v5142_v8 }
 0x1ca   :  { %v5125_v22 = vpop.permute.xlu0 %5124  ;;  %v5131_v14 = vpop.permute.xlu1 %5130  ;;  %5190 = vmatprep.mubr.bf16.mxu0 %v14640_v48 }
 0x1cb   :  { %v5141_v0 = vsel %vm5140_vm15, %v5125_v22, %v5127_v17  ;;  %v5143_v17 = vsel %vm5140_vm15, %v5129_v53, %v5131_v14 }
 0x1cc   :  { %9063 = vrot.lane.b32.xlu0 %v13814_v12, %s12480_s5  ;;  %9262 = vrot.lane.b32.xlu1 %v13814_v12, %s12481_s0 }
 0x1cd   :  { %11368 = vmatmul.mubr.msk.bf16.vlgmr.msra.gmra.mrb[4].mxu1 %vm182_vm0, %v12377_v7  ;;  %5159 = vmatpush1.bf16.msra.mxu0 %v5141_v0 }
 0x1ce   :  { %v5133_v4 = vpop.permute.xlu0 %5132  ;;  %v5135_v16 = vpop.permute.xlu1 %5134  ;;  %5233 = vmatprep.mubr.bf16.mxu1 %v14640_v48 }
 0x1cf   :  { %v5144_v23 = vsel %vm5140_vm15, %v5131_v14, %v5133_v4  ;;  %v5145_v53 = vsel %vm5140_vm15, %v5133_v4, %v5135_v16 }
 0x1d0   :  { %9461 = vrot.lane.b32.xlu0 %v13814_v12, %s12482_s17  ;;  %9660 = vrot.lane.b32.xlu1 %v13814_v12, %s12483_s21 }
 0x1d1   :  { %10941 = vmatmul.mubr.msk.bf16.vlgmr.msra.gmra.mrb[0].mxu0 %vm182_vm0, %v12378_v40  ;;  %5201 = vmatprep.subr.bf16.mxu1 %v5144_v23 }
 0x1d2   :  { %5202 = vmatpush1.bf16.msra.mxu1 %v5143_v17  ;;  %v5137_v7 = vpop.permute.xlu0 %5136  ;;  %v5139_v8 = vpop.permute.xlu1 %5138  ;;  %5276 = vmatprep.mubr.bf16.mxu0 %v14640_v48 }
 0x1d3   :  { %v5147_v22 = vsel %vm5140_vm15, %v5137_v7, %v5139_v8  ;;  %v5146_v0 = vsel %vm5140_vm15, %v5135_v16, %v5137_v7  ;;  %11371 = vmatprep.subr.bf16.mxu1 %v14645_v57  ;;  %v12379_v8 = vld [vmem:[%s14522_s2 + $0xb8] sm:$0xff]   ;;  %vm5592_vm15 = vcmask 236544  }
 0x1d4   :  { %9859 = vrot.lane.b32.xlu0 %v13814_v12, %s12484_s26  ;;  %10058 = vrot.lane.b32.xlu1 %v13814_v12, %s12485_s30 }
 0x1d5   :  { %10942 = vmatmul.mubr.msk.bf16.vlgmr.msra.gmra.mrb[0].mxu1 %vm182_vm0, %v12378_v40  ;;  %5244 = vmatprep.subr.bf16.mxu0 %v5146_v0 }
 0x1d6   :  { %5245 = vmatpush1.bf16.msra.mxu0 %v5145_v53  ;;  %11372 = vmatpush3.bf16.msra.mxu1 %v5147_v22  ;;  %v5353_v14 = vpop.permute.xlu0 %5352  ;;  %v5355_v23 = vpop.permute.xlu1 %5354 }
 0x1d7   :  { %v5368_v17 = vsel %vm5366_vm14, %v5353_v14, %v5355_v23  ;;  %11373 = vmatprep.mubr.msk.bf16.mxu1 %vm12468_vm1, %v14645_v57 }
 0x1d8   :  { %10257 = vrot.lane.b32.xlu0 %v13814_v12, %s12486_s9  ;;  %10456 = vrot.lane.b32.xlu1 %v13814_v12, %s12487_s20 }
 0x1d9   :  { %10943 = vmatmul.mubr.msk.bf16.vlgmr.msra.gmra.mrb[4].mxu0 %vm182_vm0, %v12378_v40  ;;  %5384 = vmatprep.subr.bf16.mxu0 %v5368_v17 }
 0x1da   :  { %v5351_v4 = vpop.permute.xlu0 %5350  ;;  %v5357_v16 = vpop.permute.xlu1 %5356  ;;  %5416 = vmatprep.mubr.bf16.mxu0 %v14640_v48 }
 0x1db   :  { %v5367_v7 = vsel %vm5366_vm14, %v5351_v4, %v5353_v14  ;;  %v5369_v53 = vsel %vm5366_vm14, %v5355_v23, %v5357_v16 }
 0x1dc   :  { %5385 = vmatpush1.bf16.msra.mxu0 %v5367_v7 }
 0x1dd   :  { %11374 = vmatmul.mubr.msk.bf16.vlgmr.msra.gmra.mrb[4].mxu1 %vm182_vm0, %v12378_v40 }
 0x1de   :  { %v5359_v22 = vpop.permute.xlu0 %5358  ;;  %v5361_v0 = vpop.permute.xlu1 %5360  ;;  %5459 = vmatprep.mubr.bf16.mxu1 %v14640_v48 }
 0x1df   :  { %v5370_v12 = vsel %vm5366_vm14, %v5357_v16, %v5359_v22  ;;  %v5371_v7 = vsel %vm5366_vm14, %v5359_v22, %v5361_v0 }
 0x1e0   :  { %5427 = vmatprep.subr.bf16.mxu1 %v5370_v12 }
 0x1e1   :  { %10948 = vmatmul.mubr.msk.bf16.vlgmr.msra.gmra.mrb[0].mxu0 %vm182_vm0, %v12379_v8  ;;  %5428 = vmatpush1.bf16.msra.mxu1 %v5369_v53 }
 0x1e2   :  { %v5363_v14 = vpop.permute.xlu0 %5362  ;;  %v5365_v17 = vpop.permute.xlu1 %5364  ;;  %11377 = vmatprep.subr.bf16.mxu1 %v14645_v57  ;;  %5502 = vmatprep.mubr.bf16.mxu0 %v14640_v48 }
 0x1e3   :  { %v5373_v40 = vsel %vm5366_vm14, %v5363_v14, %v5365_v17  ;;  %v5372_v4 = vsel %vm5366_vm14, %v5361_v0, %v5363_v14  ;;  %v12380_v0 = vld [vmem:[%s14522_s2 + $0xc0] sm:$0xff]   ;;  %vm5818_vm14 = vcmask 228352  }
 0x1e4   :  { %5470 = vmatprep.subr.bf16.mxu0 %v5372_v4 }
 0x1e5   :  { %10949 = vmatmul.mubr.msk.bf16.vlgmr.msra.gmra.mrb[0].mxu1 %vm182_vm0, %v12379_v8  ;;  %5471 = vmatpush1.bf16.msra.mxu0 %v5371_v7 }
 0x1e6   :  { %11378 = vmatpush3.bf16.msra.mxu1 %v5373_v40  ;;  %v5579_v23 = vpop.permute.xlu0 %5578  ;;  %v5581_v16 = vpop.permute.xlu1 %5580  ;;  %11379 = vmatprep.mubr.msk.bf16.mxu1 %vm12468_vm1, %v14645_v57 }
 0x1e7   :  { %v5594_v12 = vsel %vm5592_vm15, %v5579_v23, %v5581_v16 }
 0x1e8   :  { %5610 = vmatprep.subr.bf16.mxu0 %v5594_v12 }
 0x1e9   :  { %10950 = vmatmul.mubr.msk.bf16.vlgmr.msra.gmra.mrb[4].mxu0 %vm182_vm0, %v12379_v8 }
 0x1ea   :  { %v5577_v53 = vpop.permute.xlu0 %5576  ;;  %v5583_v14 = vpop.permute.xlu1 %5582  ;;  %5642 = vmatprep.mubr.bf16.mxu0 %v14640_v48 }
 0x1eb   :  { %v5593_v22 = vsel %vm5592_vm15, %v5577_v53, %v5579_v23  ;;  %v5595_v7 = vsel %vm5592_vm15, %v5581_v16, %v5583_v14 }
 0x1ec   :  { %5611 = vmatpush1.bf16.msra.mxu0 %v5593_v22 }
 0x1ed   :  { %11380 = vmatmul.mubr.msk.bf16.vlgmr.msra.gmra.mrb[4].mxu1 %vm182_vm0, %v12379_v8 }
 0x1ee   :  { %v5585_v17 = vpop.permute.xlu0 %5584  ;;  %v5587_v40 = vpop.permute.xlu1 %5586  ;;  %5685 = vmatprep.mubr.bf16.mxu1 %v14640_v48 }
 0x1ef   :  { %v5596_v4 = vsel %vm5592_vm15, %v5583_v14, %v5585_v17  ;;  %v5597_v22 = vsel %vm5592_vm15, %v5585_v17, %v5587_v40 }
 0x1f0   :  { %5653 = vmatprep.subr.bf16.mxu1 %v5596_v4 }
 0x1f1   :  { %10955 = vmatmul.mubr.msk.bf16.vlgmr.msra.gmra.mrb[0].mxu0 %vm182_vm0, %v12380_v0  ;;  %5654 = vmatpush1.bf16.msra.mxu1 %v5595_v7 }
 0x1f2   :  { %v5589_v23 = vpop.permute.xlu0 %5588  ;;  %v5591_v12 = vpop.permute.xlu1 %5590  ;;  %11383 = vmatprep.subr.bf16.mxu1 %v14645_v57  ;;  %5728 = vmatprep.mubr.bf16.mxu0 %v14640_v48 }
 0x1f3   :  { %v5599_v8 = vsel %vm5592_vm15, %v5589_v23, %v5591_v12  ;;  %v5598_v53 = vsel %vm5592_vm15, %v5587_v40, %v5589_v23  ;;  %v12381_v40 = vld [vmem:[%s14522_s2 + $0xc8] sm:$0xff]   ;;  %vm6044_vm15 = vcmask 220160  }
 0x1f4   :  { %5696 = vmatprep.subr.bf16.mxu0 %v5598_v53 }
 0x1f5   :  { %10956 = vmatmul.mubr.msk.bf16.vlgmr.msra.gmra.mrb[0].mxu1 %vm182_vm0, %v12380_v0  ;;  %5697 = vmatpush1.bf16.msra.mxu0 %v5597_v22 }
 0x1f6   :  { %11384 = vmatpush3.bf16.msra.mxu1 %v5599_v8  ;;  %v5805_v16 = vpop.permute.xlu0 %5804  ;;  %v5807_v14 = vpop.permute.xlu1 %5806  ;;  %11385 = vmatprep.mubr.msk.bf16.mxu1 %vm12468_vm1, %v14645_v57 }
 0x1f7   :  { %v5820_v4 = vsel %vm5818_vm14, %v5805_v16, %v5807_v14 }
 0x1f8   :  { %5836 = vmatprep.subr.bf16.mxu0 %v5820_v4 }
 0x1f9   :  { %10957 = vmatmul.mubr.msk.bf16.vlgmr.msra.gmra.mrb[4].mxu0 %vm182_vm0, %v12380_v0 }
 0x1fa   :  { %v5803_v7 = vpop.permute.xlu0 %5802  ;;  %v5809_v23 = vpop.permute.xlu1 %5808  ;;  %5868 = vmatprep.mubr.bf16.mxu0 %v14640_v48 }
 0x1fb   :  { %v5819_v17 = vsel %vm5818_vm14, %v5803_v7, %v5805_v16  ;;  %v5821_v22 = vsel %vm5818_vm14, %v5807_v14, %v5809_v23 }
 0x1fc   :  { %5837 = vmatpush1.bf16.msra.mxu0 %v5819_v17 }
 0x1fd   :  { %11386 = vmatmul.mubr.msk.bf16.vlgmr.msra.gmra.mrb[4].mxu1 %vm182_vm0, %v12380_v0 }
 0x1fe   :  { %v5811_v12 = vpop.permute.xlu0 %5810  ;;  %v5813_v8 = vpop.permute.xlu1 %5812  ;;  %5911 = vmatprep.mubr.bf16.mxu1 %v14640_v48 }
 0x1ff   :  { %v5822_v53 = vsel %vm5818_vm14, %v5809_v23, %v5811_v12  ;;  %v5823_v17 = vsel %vm5818_vm14, %v5811_v12, %v5813_v8 }
 0x200   :  { %5879 = vmatprep.subr.bf16.mxu1 %v5822_v53 }
 0x201   :  { %10962 = vmatmul.mubr.msk.bf16.vlgmr.msra.gmra.mrb[0].mxu0 %vm182_vm0, %v12381_v40  ;;  %5880 = vmatpush1.bf16.msra.mxu1 %v5821_v22 }
 0x202   :  { %v5815_v16 = vpop.permute.xlu0 %5814  ;;  %v5817_v4 = vpop.permute.xlu1 %5816  ;;  %11389 = vmatprep.subr.bf16.mxu1 %v14645_v57  ;;  %5954 = vmatprep.mubr.bf16.mxu0 %v14640_v48 }
 0x203   :  { %v5825_v0 = vsel %vm5818_vm14, %v5815_v16, %v5817_v4  ;;  %v5824_v7 = vsel %vm5818_vm14, %v5813_v8, %v5815_v16  ;;  %v12382_v8 = vld [vmem:[%s14522_s2 + $0xd0] sm:$0xff]   ;;  %vm6270_vm14 = vcmask 211968  }
 0x204   :  { %5922 = vmatprep.subr.bf16.mxu0 %v5824_v7 }
 0x205   :  { %10963 = vmatmul.mubr.msk.bf16.vlgmr.msra.gmra.mrb[0].mxu1 %vm182_vm0, %v12381_v40  ;;  %5923 = vmatpush1.bf16.msra.mxu0 %v5823_v17 }
 0x206   :  { %11390 = vmatpush3.bf16.msra.mxu1 %v5825_v0  ;;  %v6031_v14 = vpop.permute.xlu0 %6030  ;;  %v6033_v23 = vpop.permute.xlu1 %6032  ;;  %11391 = vmatprep.mubr.msk.bf16.mxu1 %vm12468_vm1, %v14645_v57 }
 0x207   :  { %v6046_v53 = vsel %vm6044_vm15, %v6031_v14, %v6033_v23 }
 0x208   :  { %6062 = vmatprep.subr.bf16.mxu0 %v6046_v53 }
 0x209   :  { %10964 = vmatmul.mubr.msk.bf16.vlgmr.msra.gmra.mrb[4].mxu0 %vm182_vm0, %v12381_v40 }
 0x20a   :  { %v6029_v22 = vpop.permute.xlu0 %6028  ;;  %v6035_v16 = vpop.permute.xlu1 %6034  ;;  %6094 = vmatprep.mubr.bf16.mxu0 %v14640_v48 }
 0x20b   :  { %v6045_v12 = vsel %vm6044_vm15, %v6029_v22, %v6031_v14  ;;  %v6047_v17 = vsel %vm6044_vm15, %v6033_v23, %v6035_v16 }
 0x20c   :  { %6063 = vmatpush1.bf16.msra.mxu0 %v6045_v12 }
 0x20d   :  { %11392 = vmatmul.mubr.msk.bf16.vlgmr.msra.gmra.mrb[4].mxu1 %vm182_vm0, %v12381_v40 }
 0x20e   :  { %v6037_v4 = vpop.permute.xlu0 %6036  ;;  %v6039_v0 = vpop.permute.xlu1 %6038  ;;  %6137 = vmatprep.mubr.bf16.mxu1 %v14640_v48 }
 0x20f   :  { %v6048_v7 = vsel %vm6044_vm15, %v6035_v16, %v6037_v4  ;;  %v6049_v12 = vsel %vm6044_vm15, %v6037_v4, %v6039_v0 }
 0x210   :  { %6105 = vmatprep.subr.bf16.mxu1 %v6048_v7 }
 0x211   :  { %10969 = vmatmul.mubr.msk.bf16.vlgmr.msra.gmra.mrb[0].mxu0 %vm182_vm0, %v12382_v8  ;;  %6106 = vmatpush1.bf16.msra.mxu1 %v6047_v17 }
 0x212   :  { %v6041_v14 = vpop.permute.xlu0 %6040  ;;  %v6043_v53 = vpop.permute.xlu1 %6042  ;;  %11395 = vmatprep.subr.bf16.mxu1 %v14645_v57  ;;  %6180 = vmatprep.mubr.bf16.mxu0 %v14640_v48 }
 0x213   :  { %v6051_v40 = vsel %vm6044_vm15, %v6041_v14, %v6043_v53  ;;  %v6050_v22 = vsel %vm6044_vm15, %v6039_v0, %v6041_v14  ;;  %v12383_v0 = vld [vmem:[%s14522_s2 + $0xd8] sm:$0xff]  }
 0x214   :  { %6148 = vmatprep.subr.bf16.mxu0 %v6050_v22 }
 0x215   :  { %10970 = vmatmul.mubr.msk.bf16.vlgmr.msra.gmra.mrb[0].mxu1 %vm182_vm0, %v12382_v8  ;;  %6149 = vmatpush1.bf16.msra.mxu0 %v6049_v12 }
 0x216   :  { %11396 = vmatpush3.bf16.msra.mxu1 %v6051_v40  ;;  %v6257_v23 = vpop.permute.xlu0 %6256  ;;  %v6259_v16 = vpop.permute.xlu1 %6258  ;;  %11397 = vmatprep.mubr.msk.bf16.mxu1 %vm12468_vm1, %v14645_v57 }
 0x217   :  { %v6272_v7 = vsel %vm6270_vm14, %v6257_v23, %v6259_v16 }
 0x218   :  { %6288 = vmatprep.subr.bf16.mxu0 %v6272_v7 }
 0x219   :  { %10971 = vmatmul.mubr.msk.bf16.vlgmr.msra.gmra.mrb[4].mxu0 %vm182_vm0, %v12382_v8 }
 0x21a   :  { %v6255_v17 = vpop.permute.xlu0 %6254  ;;  %v6261_v14 = vpop.permute.xlu1 %6260  ;;  %6320 = vmatprep.mubr.bf16.mxu0 %v14640_v48 }
 0x21b   :  { %v6271_v4 = vsel %vm6270_vm14, %v6255_v17, %v6257_v23  ;;  %v6273_v12 = vsel %vm6270_vm14, %v6259_v16, %v6261_v14  ;;  %v12464_v16 = vld [vmem:[#allocation2 + $0x18] ss:$28 sps:$4 sm:$0xff]  }
 0x21c   :  { %6289 = vmatpush1.bf16.msra.mxu0 %v6271_v4 }
 0x21d   :  { %11398 = vmatmul.mubr.msk.bf16.vlgmr.msra.gmra.mrb[4].mxu1 %vm182_vm0, %v12382_v8 }
 0x21e   :  { %v6263_v53 = vpop.permute.xlu0 %6262  ;;  %v6265_v40 = vpop.permute.xlu1 %6264  ;;  %6363 = vmatprep.mubr.bf16.mxu1 %v14640_v48 }
 0x21f   :  { %v6274_v22 = vsel %vm6270_vm14, %v6261_v14, %v6263_v53  ;;  %v6275_v4 = vsel %vm6270_vm14, %v6263_v53, %v6265_v40  ;;  %v12384_v14 = vld [vmem:[%s14522_s2 + $0xe0] sm:$0xff]   ;;  %v14754_v53 = vld [vmem:[#allocation29_spill] sm:$0xff] }
 0x220   :  { %6331 = vmatprep.subr.bf16.mxu1 %v6274_v22  ;;  %v14755_v22 = vld [vmem:[#allocation25_spill] sm:$0xff] }
 0x221   :  { %10976 = vmatmul.mubr.msk.bf16.vlgmr.msra.gmra.mrb[0].mxu0 %vm182_vm0, %v12383_v0  ;;  %6332 = vmatpush1.bf16.msra.mxu1 %v6273_v12 }
 0x222   :  { %v6267_v23 = vpop.permute.xlu0 %6266  ;;  %v6269_v7 = vpop.permute.xlu1 %6268  ;;  %11401 = vmatprep.subr.bf16.mxu1 %v14645_v57  ;;  %6406 = vmatprep.mubr.bf16.mxu0 %v14640_v48 }
 0x223   :  { %v6277_v8 = vsel %vm6270_vm14, %v6267_v23, %v6269_v7  ;;  %v6276_v17 = vsel %vm6270_vm14, %v6265_v40, %v6267_v23  ;;  %v12394_v40 = vld [vmem:[%s14522_s2 + $0x130] sm:$0xff]   ;;  %v14757_v7 = vld [vmem:[#allocation33_spill] sm:$0xff] }
 0x224   :  { %6374 = vmatprep.subr.bf16.mxu0 %v6276_v17  ;;  %v14756_v23 = vld [vmem:[#allocation28_spill] sm:$0xff] }
 0x225   :  { %10977 = vmatmul.mubr.msk.bf16.vlgmr.msra.gmra.mrb[0].mxu1 %vm182_vm0, %v12383_v0  ;;  %6375 = vmatpush1.bf16.msra.mxu0 %v6275_v4  ;;  %v14759_v4 = vld [vmem:[#allocation37_spill] sm:$0xff] }
 0x226   :  { %11402 = vmatpush3.bf16.msra.mxu1 %v6277_v8  ;;  %11403 = vmatprep.mubr.msk.bf16.mxu1 %vm12468_vm1, %v14645_v57  ;;  %v14758_v8 = vld [vmem:[#allocation27_spill] sm:$0xff] }
 0x227   :  { %6483 = vmatprep.subr.bf16.mxu0 %v12560_v13  ;;  %6526 = vmatprep.subr.bf16.mxu1 %v12580_v18  ;;  %v6875_v18 = vpop.permute.xlu1 %6874 }
 0x229   :  { %10978 = vmatmul.mubr.msk.bf16.vlgmr.msra.gmra.mrb[4].mxu0 %vm182_vm0, %v12383_v0 }
 0x22a   :  { %6484 = vmatpush1.bf16.msra.mxu0 %v12529_v3  ;;  %6515 = vmatprep.mubr.bf16.mxu0 %v14640_v48  ;;  %v12385_v3 = vld [vmem:[%s14522_s2 + $0xe8] sm:$0xff]  }
 0x22b   :  { %6569 = vmatprep.subr.bf16.mxu0 %v12464_v16  ;;  %v14760_v16 = vld [vmem:[#allocation31_spill] sm:$0xff] }
 0x22d   :  { %11404 = vmatmul.mubr.msk.bf16.vlgmr.msra.gmra.mrb[4].mxu1 %vm182_vm0, %v12383_v0  ;;  %v14753_v0 = vld [vmem:[#allocation24_spill] sm:$0xff] }
 0x22e   :  { %6527 = vmatpush1.bf16.msra.mxu1 %v12544_v9  ;;  %6558 = vmatprep.mubr.bf16.mxu1 %v14640_v48  ;;  %v6676_v9 = vpop.permute.xlu0 %6675 }
 0x22f   :  { %11407 = vmatprep.subr.bf16.mxu1 %v14645_v57  ;;  %v6677_v13 = vsel %vm394_vm2, %v12735_v33, %v6676_v9  ;;  %v12388_v33 = vld [vmem:[%s14522_s2 + $0x100] sm:$0xff]   ;;  %v14762_v9 = vld [vmem:[#allocation32_spill] sm:$0xff]  ;;  %vm14780_vm2 = vcmask 736256  }
 0x231   :  { %10983 = vmatmul.mubr.msk.bf16.vlgmr.msra.gmra.mrb[0].mxu0 %vm182_vm0, %v12384_v14 }
 0x232   :  { %6570 = vmatpush1.bf16.msra.mxu0 %v12565_v15  ;;  %6601 = vmatprep.mubr.bf16.mxu0 %v14640_v48  ;;  %v12386_v15 = vld [vmem:[%s14522_s2 + $0xf0] sm:$0xff]  }
 0x233   :  { %6682 = vmatprep.subr.bf16.mxu0 %v12732_v31 }
 0x235   :  { %10984 = vmatmul.mubr.msk.bf16.vlgmr.msra.gmra.mrb[0].mxu1 %vm182_vm0, %v12384_v14 }
 0x236   :  { %11408 = vmatpush3.bf16.msra.mxu1 %v12595_v20  ;;  %11409 = vmatprep.mubr.msk.bf16.mxu1 %vm12468_vm1, %v14645_v57  ;;  %v6876_v20 = vsel %vm620_vm3, %v12792_v49, %v6875_v18  ;;  %v14764_v18 = vld [vmem:[#allocation40_spill] sm:$0xff]  ;;  %vm14788_vm3 = vcmask 523264  }
 0x237   :  { %6725 = vmatprep.subr.bf16.mxu1 %v12753_v36  ;;  %v12389_v36 = vld [vmem:[%s14522_s2 + $0x108] sm:$0xff]  }
 0x239   :  { %10985 = vmatmul.mubr.msk.bf16.vlgmr.msra.gmra.mrb[4].mxu0 %vm182_vm0, %v12384_v14 }
 0x23a   :  { %6683 = vmatpush1.bf16.msra.mxu0 %v12711_v25  ;;  %6714 = vmatprep.mubr.bf16.mxu0 %v14640_v48  ;;  %v12387_v25 = vld [vmem:[%s14522_s2 + $0xf8] sm:$0xff]  }
 0x23b   :  { %6768 = vmatprep.subr.bf16.mxu0 %v12744_v35 }
 0x23d   :  { %11410 = vmatmul.mubr.msk.bf16.vlgmr.msra.gmra.mrb[4].mxu1 %vm182_vm0, %v12384_v14  ;;  %v14761_v14 = vld [vmem:[#allocation36_spill] sm:$0xff] }
 0x23e   :  { %6726 = vmatpush1.bf16.msra.mxu1 %v12723_v30  ;;  %6757 = vmatprep.mubr.bf16.mxu1 %v14640_v48  ;;  %v7074_v30 = vpop.permute.xlu0 %7073 }
 0x23f   :  { %11413 = vmatprep.subr.bf16.mxu1 %v14645_v57  ;;  %v7075_v31 = vsel %vm846_vm4, %v12849_v1, %v7074_v30  ;;  %v14766_v30 = vld [vmem:[#allocation44_spill] sm:$0xff]  ;;  %vm14796_vm4 = vcmask 515072  }
 0x241   :  { %10990 = vmatmul.mubr.msk.bf16.vlgmr.msra.gmra.mrb[0].mxu0 %vm182_vm0, %v12385_v3 }
 0x242   :  { %6769 = vmatpush1.bf16.msra.mxu0 %v12739_v34  ;;  %6800 = vmatprep.mubr.bf16.mxu0 %v14640_v48  ;;  %v7273_v34 = vpop.permute.xlu1 %7272 }
 0x243   :  { %6881 = vmatprep.subr.bf16.mxu0 %v12789_v47  ;;  %v7274_v35 = vsel %vm1072_vm5, %v12906_v28, %v7273_v34  ;;  %v12390_v47 = vld [vmem:[%s14522_s2 + $0x110] sm:$0xff]   ;;  %v14740_v28 = vld [vmem:[#allocation15_spill] sm:$0xff]  ;;  %v12396_v34 = vld [vmem:[%s14522_s2 + $0x140] sm:$0xff]   ;;  %vm14804_vm5 = vcmask 506880  }
 0x245   :  { %10991 = vmatmul.mubr.msk.bf16.vlgmr.msra.gmra.mrb[0].mxu1 %vm182_vm0, %v12385_v3 }
 0x246   :  { %11414 = vmatpush3.bf16.msra.mxu1 %v6677_v13  ;;  %11415 = vmatprep.mubr.msk.bf16.mxu1 %vm12468_vm1, %v14645_v57  ;;  %v7671_v49 = vpop.permute.xlu1 %7670 }
 0x247   :  { %6924 = vmatprep.subr.bf16.mxu1 %v12810_v52  ;;  %v14732_v52 = vld [vmem:[#allocation4_spill] sm:$0xff] }
 0x249   :  { %10992 = vmatmul.mubr.msk.bf16.vlgmr.msra.gmra.mrb[4].mxu0 %vm182_vm0, %v12385_v3 }
 0x24a   :  { %6882 = vmatpush1.bf16.msra.mxu0 %v12758_v39  ;;  %6913 = vmatprep.mubr.bf16.mxu0 %v14640_v48  ;;  %v7472_v39 = vpop.permute.xlu0 %7471 }
 0x24b   :  { %6967 = vmatprep.subr.bf16.mxu0 %v12801_v51  ;;  %v14731_v51 = vld [vmem:[#allocation9_spill] sm:$0xff] }
 0x24d   :  { %11416 = vmatmul.mubr.msk.bf16.vlgmr.msra.gmra.mrb[4].mxu1 %vm182_vm0, %v12385_v3  ;;  %v12395_v3 = vld [vmem:[%s14522_s2 + $0x138] sm:$0xff]  }
 0x24e   :  { %6925 = vmatpush1.bf16.msra.mxu1 %v12780_v46  ;;  %6956 = vmatprep.mubr.bf16.mxu1 %v14640_v48  ;;  %v7473_v46 = vsel %vm1298_vm6, %v12963_v58, %v7472_v39  ;;  %v7870_v1 = vpop.permute.xlu0 %7869  ;;  %v14770_v39 = vld [vmem:[#allocation42_spill] sm:$0xff]  ;;  %vm14812_vm6 = vcmask 498688  }
 0x24f   :  { %11419 = vmatprep.subr.bf16.mxu1 %v14645_v57 }
 0x251   :  { %10997 = vmatmul.mubr.msk.bf16.vlgmr.msra.gmra.mrb[0].mxu0 %vm182_vm0, %v12386_v15 }
 0x252   :  { %6968 = vmatpush1.bf16.msra.mxu0 %v12796_v50  ;;  %6999 = vmatprep.mubr.bf16.mxu0 %v14640_v48  ;;  %v7672_v50 = vsel %vm1524_vm7, %v13020_v42, %v7671_v49  ;;  %v14749_v42 = vld [vmem:[#allocation21_spill] sm:$0xff]  ;;  %vm14820_vm7 = vcmask 490496  }
 0x253   :  { %7080 = vmatprep.subr.bf16.mxu0 %v12846_v63  ;;  %v14734_v63 = vld [vmem:[#allocation5_spill] sm:$0xff] }
 0x255   :  { %10998 = vmatmul.mubr.msk.bf16.vlgmr.msra.gmra.mrb[0].mxu1 %vm182_vm0, %v12386_v15 }
 0x256   :  { %11420 = vmatpush3.bf16.msra.mxu1 %v6876_v20  ;;  %11421 = vmatprep.mubr.msk.bf16.mxu1 %vm12468_vm1, %v14645_v57  ;;  %v14765_v20 = vld [vmem:[#allocation34_spill] sm:$0xff] }
 0x257   :  { %7123 = vmatprep.subr.bf16.mxu1 %v12867_v6  ;;  %v14737_v6 = vld [vmem:[#allocation6_spill] sm:$0xff] }
 0x259   :  { %10999 = vmatmul.mubr.msk.bf16.vlgmr.msra.gmra.mrb[4].mxu0 %vm182_vm0, %v12386_v15 }
 0x25a   :  { %7081 = vmatpush1.bf16.msra.mxu0 %v12815_v55  ;;  %7112 = vmatprep.mubr.bf16.mxu0 %v14640_v48  ;;  %v14733_v55 = vld [vmem:[#allocation8_spill] sm:$0xff] }
 0x25b   :  { %7166 = vmatprep.subr.bf16.mxu0 %v12858_v5  ;;  %v14736_v5 = vld [vmem:[#allocation12_spill] sm:$0xff] }
 0x25d   :  { %11422 = vmatmul.mubr.msk.bf16.vlgmr.msra.gmra.mrb[4].mxu1 %vm182_vm0, %v12386_v15  ;;  %v14763_v15 = vld [vmem:[#allocation35_spill] sm:$0xff] }
 0x25e   :  { %7124 = vmatpush1.bf16.msra.mxu1 %v12837_v62  ;;  %7155 = vmatprep.mubr.bf16.mxu1 %v14640_v48  ;;  %v12391_v62 = vld [vmem:[%s14522_s2 + $0x118] sm:$0xff]  }
 0x25f   :  { %11425 = vmatprep.subr.bf16.mxu1 %v14645_v57 }
 0x261   :  { %11004 = vmatmul.mubr.msk.bf16.vlgmr.msra.gmra.mrb[0].mxu0 %vm182_vm0, %v12387_v25 }
 0x262   :  { %7167 = vmatpush1.bf16.msra.mxu0 %v12853_v2  ;;  %7198 = vmatprep.mubr.bf16.mxu0 %v14640_v48  ;;  %v14735_v2 = vld [vmem:[#allocation7_spill] sm:$0xff] }
 0x263   :  { %7279 = vmatprep.subr.bf16.mxu0 %v12903_v26  ;;  %v14739_v26 = vld [vmem:[#allocation10_spill] sm:$0xff] }
 0x265   :  { %11005 = vmatmul.mubr.msk.bf16.vlgmr.msra.gmra.mrb[0].mxu1 %vm182_vm0, %v12387_v25 }
 0x266   :  { %11426 = vmatpush3.bf16.msra.mxu1 %v7075_v31  ;;  %11427 = vmatprep.mubr.msk.bf16.mxu1 %vm12468_vm1, %v14645_v57  ;;  %v14767_v31 = vld [vmem:[#allocation38_spill] sm:$0xff] }
 0x267   :  { %7322 = vmatprep.subr.bf16.mxu1 %v12924_v37  ;;  %v8069_v37 = vpop.permute.xlu1 %8068 }
 0x269   :  { %11006 = vmatmul.mubr.msk.bf16.vlgmr.msra.gmra.mrb[4].mxu0 %vm182_vm0, %v12387_v25 }
 0x26a   :  { %7280 = vmatpush1.bf16.msra.mxu0 %v12872_v11  ;;  %7311 = vmatprep.mubr.bf16.mxu0 %v14640_v48  ;;  %v7871_v11 = vsel %vm1750_vm8, %v14737_v6, %v7870_v1  ;;  %v14776_v1 = vld [vmem:[#allocation46_spill] sm:$0xff]  ;;  %vm14827_vm8 = vcmask 482304  }
 0x26b   :  { %7365 = vmatprep.subr.bf16.mxu0 %v12915_v32  ;;  %v14741_v32 = vld [vmem:[#allocation11_spill] sm:$0xff]  ;;  %v8467_v12 = vpop.permute.xlu1 %8466  ;;  %v14778_v6 = vld [vmem:[#allocation54_spill] sm:$0xff] }
 0x26c   :  { %v8468_v17 = vsel %vm2428_vm11, %v14758_v8, %v8467_v12  ;;  %v14800_v12 = vld [vmem:[#allocation67_spill] sm:$0xff] }
 0x26d   :  { %11428 = vmatmul.mubr.msk.bf16.vlgmr.msra.gmra.mrb[4].mxu1 %vm182_vm0, %v12387_v25  ;;  %v14802_v8 = vld [vmem:[#allocation75_spill] sm:$0xff] }
 0x26e   :  { %7323 = vmatpush1.bf16.msra.mxu1 %v12894_v24  ;;  %7354 = vmatprep.mubr.bf16.mxu1 %v14640_v48  ;;  %v14738_v24 = vld [vmem:[#allocation16_spill] sm:$0xff] }
 0x26f   :  { %11431 = vmatprep.subr.bf16.mxu1 %v14645_v57 }
 0x271   :  { %11011 = vmatmul.mubr.msk.bf16.vlgmr.msra.gmra.mrb[0].mxu0 %vm182_vm0, %v12388_v33 }
 0x272   :  { %7366 = vmatpush1.bf16.msra.mxu0 %v12910_v29  ;;  %7397 = vmatprep.mubr.bf16.mxu0 %v14640_v48  ;;  %v12392_v29 = vld [vmem:[%s14522_s2 + $0x120] sm:$0xff]  }
 0x273   :  { %7478 = vmatprep.subr.bf16.mxu0 %v12960_v56  ;;  %v14744_v56 = vld [vmem:[#allocation13_spill] sm:$0xff] }
 0x274   :  { %v8070_v58 = vsel %vm1976_vm9, %v14744_v56, %v8069_v37  ;;  %v14784_v37 = vld [vmem:[#allocation53_spill] sm:$0xff]  ;;  %vm14834_vm9 = vcmask 474112  }
 0x275   :  { %11012 = vmatmul.mubr.msk.bf16.vlgmr.msra.gmra.mrb[0].mxu1 %vm182_vm0, %v12388_v33  ;;  %v14786_v56 = vld [vmem:[#allocation61_spill] sm:$0xff] }
 0x276   :  { %11432 = vmatpush3.bf16.msra.mxu1 %v7274_v35  ;;  %11433 = vmatprep.mubr.msk.bf16.mxu1 %vm12468_vm1, %v14645_v57  ;;  %v14769_v35 = vld [vmem:[#allocation39_spill] sm:$0xff] }
 0x277   :  { %7521 = vmatprep.subr.bf16.mxu1 %v12981_v61  ;;  %v14747_v61 = vld [vmem:[#allocation22_spill] sm:$0xff] }
 0x279   :  { %11013 = vmatmul.mubr.msk.bf16.vlgmr.msra.gmra.mrb[4].mxu0 %vm182_vm0, %v12388_v33 }
 0x27a   :  { %7479 = vmatpush1.bf16.msra.mxu0 %v12929_v41  ;;  %7510 = vmatprep.mubr.bf16.mxu0 %v14640_v48  ;;  %v14742_v41 = vld [vmem:[#allocation14_spill] sm:$0xff] }
 0x27b   :  { %7564 = vmatprep.subr.bf16.mxu0 %v12972_v60  ;;  %v14746_v60 = vld [vmem:[#allocation17_spill] sm:$0xff] }
 0x27d   :  { %11434 = vmatmul.mubr.msk.bf16.vlgmr.msra.gmra.mrb[4].mxu1 %vm182_vm0, %v12388_v33  ;;  %v14768_v33 = vld [vmem:[#allocation43_spill] sm:$0xff] }
 0x27e   :  { %7522 = vmatpush1.bf16.msra.mxu1 %v12951_v54  ;;  %7553 = vmatprep.mubr.bf16.mxu1 %v14640_v48  ;;  %v14743_v54 = vld [vmem:[#allocation19_spill] sm:$0xff] }
 0x27f   :  { %11437 = vmatprep.subr.bf16.mxu1 %v14645_v57 }
 0x281   :  { %11018 = vmatmul.mubr.msk.bf16.vlgmr.msra.gmra.mrb[0].mxu0 %vm182_vm0, %v12389_v36 }
 0x282   :  { %7565 = vmatpush1.bf16.msra.mxu0 %v12967_v59  ;;  %7596 = vmatprep.mubr.bf16.mxu0 %v14640_v48  ;;  %v14745_v59 = vld [vmem:[#allocation23_spill] sm:$0xff] }
 0x283   :  { %7677 = vmatprep.subr.bf16.mxu0 %v13017_v38  ;;  %v8268_v38 = vpop.permute.xlu0 %8267 }
 0x285   :  { %11019 = vmatmul.mubr.msk.bf16.vlgmr.msra.gmra.mrb[0].mxu1 %vm182_vm0, %v12389_v36 }
 0x286   :  { %11438 = vmatpush3.bf16.msra.mxu1 %v7473_v46  ;;  %11439 = vmatprep.mubr.msk.bf16.mxu1 %vm12468_vm1, %v14645_v57  ;;  %v14771_v46 = vld [vmem:[#allocation47_spill] sm:$0xff] }
 0x287   :  { %7720 = vmatprep.subr.bf16.mxu1 %v13038_v45  ;;  %v8666_v13 = vpop.permute.xlu0 %8665 }
 0x288   :  { %v8667_v25 = vsel %vm2654_vm12, %v14765_v20, %v8666_v13  ;;  %v14808_v13 = vld [vmem:[#allocation74_spill] sm:$0xff] }
 0x289   :  { %11020 = vmatmul.mubr.msk.bf16.vlgmr.msra.gmra.mrb[4].mxu0 %vm182_vm0, %v12389_v36  ;;  %v14810_v20 = vld [vmem:[#allocation82_spill] sm:$0xff] }
 0x28a   :  { %7678 = vmatpush1.bf16.msra.mxu0 %v12986_v10  ;;  %7709 = vmatprep.mubr.bf16.mxu0 %v14640_v48  ;;  %v12393_v10 = vld [vmem:[%s14522_s2 + $0x128] sm:$0xff]  }
 0x28b   :  { %7763 = vmatprep.subr.bf16.mxu0 %v13029_v44  ;;  %v14751_v44 = vld [vmem:[#allocation20_spill] sm:$0xff] }
 0x28c   :  { %v8269_v45 = vsel %vm2202_vm10, %v14751_v44, %v8268_v38  ;;  %v14792_v38 = vld [vmem:[#allocation60_spill] sm:$0xff] }
 0x28d   :  { %11440 = vmatmul.mubr.msk.bf16.vlgmr.msra.gmra.mrb[4].mxu1 %vm182_vm0, %v12389_v36  ;;  %v8865_v36 = vpop.permute.xlu1 %8864  ;;  %v14794_v44 = vld [vmem:[#allocation68_spill] sm:$0xff] }
 0x28e   :  { %7721 = vmatpush1.bf16.msra.mxu1 %v13008_v27  ;;  %7752 = vmatprep.mubr.bf16.mxu1 %v14640_v48  ;;  %v14748_v27 = vld [vmem:[#allocation18_spill] sm:$0xff] }
 0x28f   :  { %11443 = vmatprep.subr.bf16.mxu1 %v14645_v57 }
 0x291   :  { %11025 = vmatmul.mubr.msk.bf16.vlgmr.msra.gmra.mrb[0].mxu0 %vm182_vm0, %v12390_v47 }
 0x292   :  { %7764 = vmatpush1.bf16.msra.mxu0 %v13024_v43  ;;  %7795 = vmatprep.mubr.bf16.mxu0 %v14640_v48  ;;  %v14750_v43 = vld [vmem:[#allocation26_spill] sm:$0xff] }
 0x293   :  { %7876 = vmatprep.subr.bf16.mxu0 %v13074_v21  ;;  %v14752_v21 = vld [vmem:[#allocation30_spill] sm:$0xff] }
 0x295   :  { %11026 = vmatmul.mubr.msk.bf16.vlgmr.msra.gmra.mrb[0].mxu1 %vm182_vm0, %v12390_v47 }
 0x296   :  { %11444 = vmatpush3.bf16.msra.mxu1 %v7672_v50  ;;  %11445 = vmatprep.mubr.msk.bf16.mxu1 %vm12468_vm1, %v14645_v57  ;;  %v14773_v50 = vld [vmem:[#allocation51_spill] sm:$0xff] }
 0x297   :  { %7919 = vmatprep.subr.bf16.mxu1 %v14731_v51  ;;  %v14774_v51 = vld [vmem:[#allocation45_spill] sm:$0xff] }
 0x299   :  { %11027 = vmatmul.mubr.msk.bf16.vlgmr.msra.gmra.mrb[4].mxu0 %vm182_vm0, %v12390_v47 }
 0x29a   :  { %7877 = vmatpush1.bf16.msra.mxu0 %v14732_v52  ;;  %7908 = vmatprep.mubr.bf16.mxu0 %v14640_v48  ;;  %v14775_v52 = vld [vmem:[#allocation50_spill] sm:$0xff] }
 0x29b   :  { %7962 = vmatprep.subr.bf16.mxu0 %v14733_v55  ;;  %v12397_v55 = vld [vmem:[%s14522_s2 + $0x148] sm:$0xff]  }
 0x29d   :  { %11446 = vmatmul.mubr.msk.bf16.vlgmr.msra.gmra.mrb[4].mxu1 %vm182_vm0, %v12390_v47  ;;  %v14772_v47 = vld [vmem:[#allocation41_spill] sm:$0xff] }
 0x29e   :  { %7920 = vmatpush1.bf16.msra.mxu1 %v14734_v63  ;;  %7951 = vmatprep.mubr.bf16.mxu1 %v14640_v48  ;;  %v8866_v49 = vsel %vm2880_vm13, %v14772_v47, %v8865_v36  ;;  %v164_v63 = vld [vmem:[%s14523_s3 + $0x8] sm:$0xff]  ;;  %v14816_v36 = vld [vmem:[#allocation81_spill] sm:$0xff] }
 0x29f   :  { %11449 = vmatprep.subr.bf16.mxu1 %v14645_v57  ;;  %172 = vperm.xlu1 %12346, %v164_v63   ;;  %v14818_v47 = vld [vmem:[#allocation89_spill] sm:$0xff]  ;;  %v14824_v63 = vld [vmem:[#allocation88_spill] sm:$0xff] }
 0x2a1   :  { %11032 = vmatmul.mubr.msk.bf16.vlgmr.msra.gmra.mrb[0].mxu0 %vm182_vm0, %v12391_v62 }
 0x2a2   :  { %7963 = vmatpush1.bf16.msra.mxu0 %v14735_v2  ;;  %7994 = vmatprep.mubr.bf16.mxu0 %v14640_v48  ;;  %v9064_v2 = vpop.permute.xlu0 %9063 }
 0x2a3   :  { %8075 = vmatprep.subr.bf16.mxu0 %v14736_v5  ;;  %v14777_v5 = vld [vmem:[#allocation49_spill] sm:$0xff] }
 0x2a5   :  { %11033 = vmatmul.mubr.msk.bf16.vlgmr.msra.gmra.mrb[0].mxu1 %vm182_vm0, %v12391_v62 }
 0x2a6   :  { %11450 = vmatpush3.bf16.msra.mxu1 %v7871_v11  ;;  %11451 = vmatprep.mubr.msk.bf16.mxu1 %vm12468_vm1, %v14645_v57  ;;  %v14779_v11 = vld [vmem:[#allocation48_spill] sm:$0xff] }
 0x2a7   :  { %8118 = vmatprep.subr.bf16.mxu1 %v14738_v24  ;;  %v9065_v24 = vsel %vm14780_vm2, %v14779_v11, %v9064_v2  ;;  %v14825_v2 = vld [vmem:[#allocation92_spill] sm:$0xff]  ;;  %v14828_v11 = vld [vmem:[#allocation99_spill] sm:$0xff] }
 0x2a9   :  { %11034 = vmatmul.mubr.msk.bf16.vlgmr.msra.gmra.mrb[4].mxu0 %vm182_vm0, %v12391_v62 }
 0x2aa   :  { %8076 = vmatpush1.bf16.msra.mxu0 %v14739_v26  ;;  %8107 = vmatprep.mubr.bf16.mxu0 %v14640_v48  ;;  %v14781_v26 = vld [vmem:[#allocation58_spill] sm:$0xff] }
 0x2ab   :  { %8161 = vmatprep.subr.bf16.mxu0 %v14740_v28  ;;  %v14782_v28 = vld [vmem:[#allocation52_spill] sm:$0xff] }
 0x2ad   :  { %11452 = vmatmul.mubr.msk.bf16.vlgmr.msra.gmra.mrb[4].mxu1 %vm182_vm0, %v12391_v62  ;;  %v163_v62 = vld [vmem:[%s14523_s3] sm:$0xff] }
 0x2ae   :  { %8119 = vmatpush1.bf16.msra.mxu1 %v14741_v32  ;;  %8150 = vmatprep.mubr.bf16.mxu1 %v14640_v48  ;;  %v12398_v32 = vld [vmem:[%s14522_s2 + $0x150] sm:$0xff]  }
 0x2af   :  { %11455 = vmatprep.subr.bf16.mxu1 %v14645_v57  ;;  %167 = vperm.xlu0 %12345, %v163_v62   ;;  %v12403_v62 = vld [vmem:[%s14522_s2 + $0x178] sm:$0xff]  }
 0x2b1   :  { %11039 = vmatmul.mubr.msk.bf16.vlgmr.msra.gmra.mrb[0].mxu0 %vm182_vm0, %v12392_v29 }
 0x2b2   :  { %8162 = vmatpush1.bf16.msra.mxu0 %v14742_v41  ;;  %8193 = vmatprep.mubr.bf16.mxu0 %v14640_v48  ;;  %v9263_v41 = vpop.permute.xlu1 %9262 }
 0x2b3   :  { %8274 = vmatprep.subr.bf16.mxu0 %v14743_v54  ;;  %v14785_v54 = vld [vmem:[#allocation56_spill] sm:$0xff] }
 0x2b5   :  { %11040 = vmatmul.mubr.msk.bf16.vlgmr.msra.gmra.mrb[0].mxu1 %vm182_vm0, %v12392_v29 }
 0x2b6   :  { %11456 = vmatpush3.bf16.msra.mxu1 %v8070_v58  ;;  %11457 = vmatprep.mubr.msk.bf16.mxu1 %vm12468_vm1, %v14645_v57  ;;  %v14787_v58 = vld [vmem:[#allocation55_spill] sm:$0xff] }
 0x2b7   :  { %8317 = vmatprep.subr.bf16.mxu1 %v14745_v59  ;;  %v9264_v59 = vsel %vm14788_vm3, %v14787_v58, %v9263_v41 }
 0x2b9   :  { %11041 = vmatmul.mubr.msk.bf16.vlgmr.msra.gmra.mrb[4].mxu0 %vm182_vm0, %v12392_v29 }
 0x2ba   :  { %8275 = vmatpush1.bf16.msra.mxu0 %v14746_v60  ;;  %8306 = vmatprep.mubr.bf16.mxu0 %v14640_v48  ;;  %v14789_v60 = vld [vmem:[#allocation65_spill] sm:$0xff] }
 0x2bb   :  { %8360 = vmatprep.subr.bf16.mxu0 %v14747_v61  ;;  %v14790_v61 = vld [vmem:[#allocation59_spill] sm:$0xff] }
 0x2bd   :  { %11458 = vmatmul.mubr.msk.bf16.vlgmr.msra.gmra.mrb[4].mxu1 %vm182_vm0, %v12392_v29  ;;  %v14783_v29 = vld [vmem:[#allocation57_spill] sm:$0xff] }
 0x2be   :  { %8318 = vmatpush1.bf16.msra.mxu1 %v14748_v27  ;;  %8349 = vmatprep.mubr.bf16.mxu1 %v14640_v48  ;;  %v12399_v27 = vld [vmem:[%s14522_s2 + $0x158] sm:$0xff]  }
 0x2bf   :  { %11461 = vmatprep.subr.bf16.mxu1 %v14645_v57 }
 0x2c1   :  { %11046 = vmatmul.mubr.msk.bf16.vlgmr.msra.gmra.mrb[0].mxu0 %vm182_vm0, %v12393_v10 }
 0x2c2   :  { %8361 = vmatpush1.bf16.msra.mxu0 %v14749_v42  ;;  %8392 = vmatprep.mubr.bf16.mxu0 %v14640_v48  ;;  %v9462_v42 = vpop.permute.xlu0 %9461 }
 0x2c3   :  { %8473 = vmatprep.subr.bf16.mxu0 %v14750_v43  ;;  %v14793_v43 = vld [vmem:[#allocation63_spill] sm:$0xff] }
 0x2c5   :  { %11047 = vmatmul.mubr.msk.bf16.vlgmr.msra.gmra.mrb[0].mxu1 %vm182_vm0, %v12393_v10 }
 0x2c6   :  { %11462 = vmatpush3.bf16.msra.mxu1 %v8269_v45  ;;  %11463 = vmatprep.mubr.msk.bf16.mxu1 %vm12468_vm1, %v14645_v57  ;;  %v14795_v45 = vld [vmem:[#allocation62_spill] sm:$0xff] }
 0x2c7   :  { %8516 = vmatprep.subr.bf16.mxu1 %v14752_v21  ;;  %v9463_v21 = vsel %vm14796_vm4, %v14795_v45, %v9462_v42 }
 0x2c9   :  { %11048 = vmatmul.mubr.msk.bf16.vlgmr.msra.gmra.mrb[4].mxu0 %vm182_vm0, %v12393_v10 }
 0x2ca   :  { %8474 = vmatpush1.bf16.msra.mxu0 %v14753_v0  ;;  %8505 = vmatprep.mubr.bf16.mxu0 %v14640_v48  ;;  %v14797_v0 = vld [vmem:[#allocation72_spill] sm:$0xff] }
 0x2cb   :  { %8559 = vmatprep.subr.bf16.mxu0 %v14754_v53  ;;  %v14798_v53 = vld [vmem:[#allocation66_spill] sm:$0xff] }
 0x2cd   :  { %11464 = vmatmul.mubr.msk.bf16.vlgmr.msra.gmra.mrb[4].mxu1 %vm182_vm0, %v12393_v10  ;;  %v14791_v10 = vld [vmem:[#allocation64_spill] sm:$0xff] }
 0x2ce   :  { %8517 = vmatpush1.bf16.msra.mxu1 %v14755_v22  ;;  %8548 = vmatprep.mubr.bf16.mxu1 %v14640_v48  ;;  %v12400_v22 = vld [vmem:[%s14522_s2 + $0x160] sm:$0xff]  }
 0x2cf   :  { %11467 = vmatprep.subr.bf16.mxu1 %v14645_v57 }
 0x2d1   :  { %11053 = vmatmul.mubr.msk.bf16.vlgmr.msra.gmra.mrb[0].mxu0 %vm182_vm0, %v12394_v40 }
 0x2d2   :  { %8560 = vmatpush1.bf16.msra.mxu0 %v14756_v23  ;;  %8591 = vmatprep.mubr.bf16.mxu0 %v14640_v48  ;;  %v9661_v23 = vpop.permute.xlu1 %9660 }
 0x2d3   :  { %8672 = vmatprep.subr.bf16.mxu0 %v14757_v7  ;;  %v14801_v7 = vld [vmem:[#allocation70_spill] sm:$0xff] }
 0x2d5   :  { %11054 = vmatmul.mubr.msk.bf16.vlgmr.msra.gmra.mrb[0].mxu1 %vm182_vm0, %v12394_v40 }
 0x2d6   :  { %11468 = vmatpush3.bf16.msra.mxu1 %v8468_v17  ;;  %11469 = vmatprep.mubr.msk.bf16.mxu1 %vm12468_vm1, %v14645_v57  ;;  %v14803_v17 = vld [vmem:[#allocation69_spill] sm:$0xff] }
 0x2d7   :  { %8715 = vmatprep.subr.bf16.mxu1 %v14759_v4  ;;  %v9662_v4 = vsel %vm14804_vm5, %v14803_v17, %v9661_v23 }
 0x2d9   :  { %11055 = vmatmul.mubr.msk.bf16.vlgmr.msra.gmra.mrb[4].mxu0 %vm182_vm0, %v12394_v40 }
 0x2da   :  { %8673 = vmatpush1.bf16.msra.mxu0 %v14760_v16  ;;  %8704 = vmatprep.mubr.bf16.mxu0 %v14640_v48  ;;  %v14805_v16 = vld [vmem:[#allocation79_spill] sm:$0xff] }
 0x2db   :  { %8758 = vmatprep.subr.bf16.mxu0 %v14761_v14  ;;  %v14806_v14 = vld [vmem:[#allocation73_spill] sm:$0xff] }
 0x2dd   :  { %11470 = vmatmul.mubr.msk.bf16.vlgmr.msra.gmra.mrb[4].mxu1 %vm182_vm0, %v12394_v40  ;;  %v14799_v40 = vld [vmem:[#allocation71_spill] sm:$0xff] }
 0x2de   :  { %8716 = vmatpush1.bf16.msra.mxu1 %v14762_v9  ;;  %8747 = vmatprep.mubr.bf16.mxu1 %v14640_v48  ;;  %v12401_v9 = vld [vmem:[%s14522_s2 + $0x168] sm:$0xff]  }
 0x2df   :  { %11473 = vmatprep.subr.bf16.mxu1 %v14645_v57 }
 0x2e1   :  { %11060 = vmatmul.mubr.msk.bf16.vlgmr.msra.gmra.mrb[0].mxu0 %vm182_vm0, %v12395_v3 }
 0x2e2   :  { %8759 = vmatpush1.bf16.msra.mxu0 %v14763_v15  ;;  %8790 = vmatprep.mubr.bf16.mxu0 %v14640_v48  ;;  %v9860_v15 = vpop.permute.xlu0 %9859 }
 0x2e3   :  { %8871 = vmatprep.subr.bf16.mxu0 %v14764_v18  ;;  %v14809_v18 = vld [vmem:[#allocation77_spill] sm:$0xff] }
 0x2e5   :  { %11061 = vmatmul.mubr.msk.bf16.vlgmr.msra.gmra.mrb[0].mxu1 %vm182_vm0, %v12395_v3 }
 0x2e6   :  { %11474 = vmatpush3.bf16.msra.mxu1 %v8667_v25  ;;  %11475 = vmatprep.mubr.msk.bf16.mxu1 %vm12468_vm1, %v14645_v57  ;;  %v14811_v25 = vld [vmem:[#allocation76_spill] sm:$0xff] }
 0x2e7   :  { %8914 = vmatprep.subr.bf16.mxu1 %v14766_v30  ;;  %v9861_v30 = vsel %vm14812_vm6, %v14811_v25, %v9860_v15 }
 0x2e9   :  { %11062 = vmatmul.mubr.msk.bf16.vlgmr.msra.gmra.mrb[4].mxu0 %vm182_vm0, %v12395_v3 }
 0x2ea   :  { %8872 = vmatpush1.bf16.msra.mxu0 %v14767_v31  ;;  %8903 = vmatprep.mubr.bf16.mxu0 %v14640_v48  ;;  %v14813_v31 = vld [vmem:[#allocation86_spill] sm:$0xff] }
 0x2eb   :  { %8957 = vmatprep.subr.bf16.mxu0 %v14768_v33  ;;  %v14814_v33 = vld [vmem:[#allocation80_spill] sm:$0xff] }
 0x2ed   :  { %11476 = vmatmul.mubr.msk.bf16.vlgmr.msra.gmra.mrb[4].mxu1 %vm182_vm0, %v12395_v3  ;;  %v14807_v3 = vld [vmem:[#allocation78_spill] sm:$0xff] }
 0x2ee   :  { %8915 = vmatpush1.bf16.msra.mxu1 %v14769_v35  ;;  %8946 = vmatprep.mubr.bf16.mxu1 %v14640_v48  ;;  %v12402_v35 = vld [vmem:[%s14522_s2 + $0x170] sm:$0xff]  }
 0x2ef   :  { %11479 = vmatprep.subr.bf16.mxu1 %v14645_v57 }
 0x2f1   :  { %11067 = vmatmul.mubr.msk.bf16.vlgmr.msra.gmra.mrb[0].mxu0 %vm182_vm0, %v12396_v34 }
 0x2f2   :  { %8958 = vmatpush1.bf16.msra.mxu0 %v14770_v39  ;;  %8989 = vmatprep.mubr.bf16.mxu0 %v14640_v48  ;;  %v10059_v39 = vpop.permute.xlu1 %10058 }
 0x2f3   :  { %9070 = vmatprep.subr.bf16.mxu0 %v14771_v46  ;;  %v14817_v46 = vld [vmem:[#allocation85_spill] sm:$0xff] }
 0x2f5   :  { %11068 = vmatmul.mubr.msk.bf16.vlgmr.msra.gmra.mrb[0].mxu1 %vm182_vm0, %v12396_v34 }
 0x2f6   :  { %11480 = vmatpush3.bf16.msra.mxu1 %v8866_v49  ;;  %11481 = vmatprep.mubr.msk.bf16.mxu1 %vm12468_vm1, %v14645_v57  ;;  %v14819_v49 = vld [vmem:[#allocation83_spill] sm:$0xff] }
 0x2f7   :  { %9113 = vmatprep.subr.bf16.mxu1 %v14773_v50  ;;  %v10060_v50 = vsel %vm14820_vm7, %v14819_v49, %v10059_v39 }
 0x2f9   :  { %11069 = vmatmul.mubr.msk.bf16.vlgmr.msra.gmra.mrb[4].mxu0 %vm182_vm0, %v12396_v34 }
 0x2fa   :  { %9071 = vmatpush1.bf16.msra.mxu0 %v14774_v51  ;;  %9102 = vmatprep.mubr.bf16.mxu0 %v14640_v48  ;;  %v14821_v51 = vld [vmem:[#allocation93_spill] sm:$0xff] }
 0x2fb   :  { %9156 = vmatprep.subr.bf16.mxu0 %v14775_v52  ;;  %v14822_v52 = vld [vmem:[#allocation87_spill] sm:$0xff] }
 0x2fd   :  { %11482 = vmatmul.mubr.msk.bf16.vlgmr.msra.gmra.mrb[4].mxu1 %vm182_vm0, %v12396_v34  ;;  %v14815_v34 = vld [vmem:[#allocation84_spill] sm:$0xff] }
 0x2fe   :  { %9114 = vmatpush1.bf16.msra.mxu1 %v14776_v1  ;;  %9145 = vmatprep.mubr.bf16.mxu1 %v14640_v48  ;;  %v10258_v1 = vpop.permute.xlu0 %10257 }
 0x2ff   :  { %11485 = vmatprep.subr.bf16.mxu1 %v14645_v57 }
 0x301   :  { %11074 = vmatmul.mubr.msk.bf16.vlgmr.msra.gmra.mrb[0].mxu0 %vm182_vm0, %v12397_v55 }
 0x302   :  { %9157 = vmatpush1.bf16.msra.mxu0 %v14777_v5  ;;  %9188 = vmatprep.mubr.bf16.mxu0 %v14640_v48  ;;  %v14826_v5 = vld [vmem:[#allocation90_spill] sm:$0xff] }
 0x303   :  { %9269 = vmatprep.subr.bf16.mxu0 %v14778_v6  ;;  %v10259_v6 = vsel %vm14827_vm8, %v14826_v5, %v10258_v1 }
 0x305   :  { %11075 = vmatmul.mubr.msk.bf16.vlgmr.msra.gmra.mrb[0].mxu1 %vm182_vm0, %v12397_v55 }
 0x306   :  { %11486 = vmatpush3.bf16.msra.mxu1 %v9065_v24  ;;  %11487 = vmatprep.mubr.msk.bf16.mxu1 %vm12468_vm1, %v14645_v57  ;;  %v14829_v24 = vld [vmem:[#allocation94_spill] sm:$0xff] }
 0x307   :  { %9312 = vmatprep.subr.bf16.mxu1 %v14781_v26  ;;  %v14830_v26 = vld [vmem:[#allocation97_spill] sm:$0xff] }
 0x309   :  { %11076 = vmatmul.mubr.msk.bf16.vlgmr.msra.gmra.mrb[4].mxu0 %vm182_vm0, %v12397_v55 }
 0x30a   :  { %9270 = vmatpush1.bf16.msra.mxu0 %v14782_v28  ;;  %9301 = vmatprep.mubr.bf16.mxu0 %v14640_v48  ;;  %v14831_v28 = vld [vmem:[#allocation95_spill] sm:$0xff] }
 0x30b   :  { %9355 = vmatprep.subr.bf16.mxu0 %v14783_v29  ;;  %v10457_v29 = vpop.permute.xlu1 %10456 }
 0x30d   :  { %11488 = vmatmul.mubr.msk.bf16.vlgmr.msra.gmra.mrb[4].mxu1 %vm182_vm0, %v12397_v55  ;;  %v14823_v55 = vld [vmem:[#allocation91_spill] sm:$0xff] }
 0x30e   :  { %9313 = vmatpush1.bf16.msra.mxu1 %v14784_v37  ;;  %9344 = vmatprep.mubr.bf16.mxu1 %v14640_v48  ;;  %v14833_v37 = vld [vmem:[#allocation96_spill] sm:$0xff] }
 0x30f   :  { %11491 = vmatprep.subr.bf16.mxu1 %v14645_v57  ;;  %v10458_v41 = vsel %vm14834_vm9, %v14833_v37, %v10457_v29 }
 0x311   :  { %11081 = vmatmul.mubr.msk.bf16.vlgmr.msra.gmra.mrb[0].mxu0 %vm182_vm0, %v12398_v32 }
 0x312   :  { %9356 = vmatpush1.bf16.msra.mxu0 %v14785_v54  ;;  %9387 = vmatprep.mubr.bf16.mxu0 %v14640_v48 }
 0x313   :  { %9468 = vmatprep.subr.bf16.mxu0 %v14786_v56 }
 0x315   :  { %11082 = vmatmul.mubr.msk.bf16.vlgmr.msra.gmra.mrb[0].mxu1 %vm182_vm0, %v12398_v32 }
 0x316   :  { %11492 = vmatpush3.bf16.msra.mxu1 %v9264_v59  ;;  %11493 = vmatprep.mubr.msk.bf16.mxu1 %vm12468_vm1, %v14645_v57 }
 0x317   :  { %9511 = vmatprep.subr.bf16.mxu1 %v14789_v60 }
 0x319   :  { %11083 = vmatmul.mubr.msk.bf16.vlgmr.msra.gmra.mrb[4].mxu0 %vm182_vm0, %v12398_v32 }
 0x31a   :  { %9469 = vmatpush1.bf16.msra.mxu0 %v14790_v61  ;;  %9500 = vmatprep.mubr.bf16.mxu0 %v14640_v48 }
 0x31b   :  { %9554 = vmatprep.subr.bf16.mxu0 %v14791_v10 }
 0x31d   :  { %11494 = vmatmul.mubr.msk.bf16.vlgmr.msra.gmra.mrb[4].mxu1 %vm182_vm0, %v12398_v32  ;;  %v14832_v32 = vld [vmem:[#allocation98_spill] sm:$0xff] }
 0x31e   :  { %9512 = vmatpush1.bf16.msra.mxu1 %v14792_v38  ;;  %9543 = vmatprep.mubr.bf16.mxu1 %v14640_v48  ;;  %v14469_v58 = vpop.permute.xlu1 %172 }
 0x31f   :  { %11497 = vmatprep.subr.bf16.mxu1 %v14645_v57 }
 0x321   :  { %11088 = vmatmul.mubr.msk.bf16.vlgmr.msra.gmra.mrb[0].mxu0 %vm182_vm0, %v12399_v27 }
 0x322   :  { %9555 = vmatpush1.bf16.msra.mxu0 %v14793_v43  ;;  %9586 = vmatprep.mubr.bf16.mxu0 %v14640_v48 }
 0x323   :  { %9667 = vmatprep.subr.bf16.mxu0 %v14794_v44 }
 0x325   :  { %11089 = vmatmul.mubr.msk.bf16.vlgmr.msra.gmra.mrb[0].mxu1 %vm182_vm0, %v12399_v27 }
 0x326   :  { %11498 = vmatpush3.bf16.msra.mxu1 %v9463_v21  ;;  %11499 = vmatprep.mubr.msk.bf16.mxu1 %vm12468_vm1, %v14645_v57 }
 0x327   :  { %9710 = vmatprep.subr.bf16.mxu1 %v14797_v0 }
 0x329   :  { %11090 = vmatmul.mubr.msk.bf16.vlgmr.msra.gmra.mrb[4].mxu0 %vm182_vm0, %v12399_v27 }
 0x32a   :  { %9668 = vmatpush1.bf16.msra.mxu0 %v14798_v53  ;;  %9699 = vmatprep.mubr.bf16.mxu0 %v14640_v48 }
 0x32b   :  { %9753 = vmatprep.subr.bf16.mxu0 %v14799_v40 }
 0x32d   :  { %11500 = vmatmul.mubr.msk.bf16.vlgmr.msra.gmra.mrb[4].mxu1 %vm182_vm0, %v12399_v27 }
 0x32e   :  { %9711 = vmatpush1.bf16.msra.mxu1 %v14800_v12  ;;  %9742 = vmatprep.mubr.bf16.mxu1 %v14640_v48  ;;  %v168_v54 = vpop.permute.xlu0 %167 }
 0x32f   :  { %11503 = vmatprep.subr.bf16.mxu1 %v14645_v57 }
 0x331   :  { %11095 = vmatmul.mubr.msk.bf16.vlgmr.msra.gmra.mrb[0].mxu0 %vm182_vm0, %v12400_v22 }
 0x332   :  { %9754 = vmatpush1.bf16.msra.mxu0 %v14801_v7  ;;  %9785 = vmatprep.mubr.bf16.mxu0 %v14640_v48 }
 0x333   :  { %9866 = vmatprep.subr.bf16.mxu0 %v14802_v8 }
 0x335   :  { %11096 = vmatmul.mubr.msk.bf16.vlgmr.msra.gmra.mrb[0].mxu1 %vm182_vm0, %v12400_v22 }
 0x336   :  { %11504 = vmatpush3.bf16.msra.mxu1 %v9662_v4  ;;  %11505 = vmatprep.mubr.msk.bf16.mxu1 %vm12468_vm1, %v14645_v57 }
 0x337   :  { %9909 = vmatprep.subr.bf16.mxu1 %v14805_v16 }
 0x339   :  { %11097 = vmatmul.mubr.msk.bf16.vlgmr.msra.gmra.mrb[4].mxu0 %vm182_vm0, %v12400_v22 }
 0x33a   :  { %9867 = vmatpush1.bf16.msra.mxu0 %v14806_v14  ;;  %9898 = vmatprep.mubr.bf16.mxu0 %v14640_v48 }
 0x33b   :  { %9952 = vmatprep.subr.bf16.mxu0 %v14807_v3 }
 0x33d   :  { %11506 = vmatmul.mubr.msk.bf16.vlgmr.msra.gmra.mrb[4].mxu1 %vm182_vm0, %v12400_v22 }
 0x33e   :  { %9910 = vmatpush1.bf16.msra.mxu1 %v14808_v13  ;;  %9941 = vmatprep.mubr.bf16.mxu1 %v14640_v48 }
 0x33f   :  { %11509 = vmatprep.subr.bf16.mxu1 %v14645_v57 }
 0x341   :  { %11102 = vmatmul.mubr.msk.bf16.vlgmr.msra.gmra.mrb[0].mxu0 %vm182_vm0, %v12401_v9 }
 0x342   :  { %9953 = vmatpush1.bf16.msra.mxu0 %v14809_v18  ;;  %9984 = vmatprep.mubr.bf16.mxu0 %v14640_v48 }
 0x343   :  { %10065 = vmatprep.subr.bf16.mxu0 %v14810_v20 }
 0x345   :  { %11103 = vmatmul.mubr.msk.bf16.vlgmr.msra.gmra.mrb[0].mxu1 %vm182_vm0, %v12401_v9 }
 0x346   :  { %11510 = vmatpush3.bf16.msra.mxu1 %v9861_v30  ;;  %11511 = vmatprep.mubr.msk.bf16.mxu1 %vm12468_vm1, %v14645_v57 }
 0x347   :  { %10108 = vmatprep.subr.bf16.mxu1 %v14813_v31 }
 0x349   :  { %11104 = vmatmul.mubr.msk.bf16.vlgmr.msra.gmra.mrb[4].mxu0 %vm182_vm0, %v12401_v9 }
 0x34a   :  { %10066 = vmatpush1.bf16.msra.mxu0 %v14814_v33  ;;  %10097 = vmatprep.mubr.bf16.mxu0 %v14640_v48 }
 0x34b   :  { %10151 = vmatprep.subr.bf16.mxu0 %v14815_v34 }
 0x34d   :  { %11512 = vmatmul.mubr.msk.bf16.vlgmr.msra.gmra.mrb[4].mxu1 %vm182_vm0, %v12401_v9 }
 0x34e   :  { %10109 = vmatpush1.bf16.msra.mxu1 %v14816_v36  ;;  %10140 = vmatprep.mubr.bf16.mxu1 %v14640_v48 }
 0x34f   :  { %11515 = vmatprep.subr.bf16.mxu1 %v14645_v57 }
 0x351   :  { %11109 = vmatmul.mubr.msk.bf16.vlgmr.msra.gmra.mrb[0].mxu0 %vm182_vm0, %v12402_v35 }
 0x352   :  { %10152 = vmatpush1.bf16.msra.mxu0 %v14817_v46  ;;  %10183 = vmatprep.mubr.bf16.mxu0 %v14640_v48 }
 0x353   :  { %10264 = vmatprep.subr.bf16.mxu0 %v14818_v47 }
 0x355   :  { %11110 = vmatmul.mubr.msk.bf16.vlgmr.msra.gmra.mrb[0].mxu1 %vm182_vm0, %v12402_v35 }
 0x356   :  { %11516 = vmatpush3.bf16.msra.mxu1 %v10060_v50  ;;  %11517 = vmatprep.mubr.msk.bf16.mxu1 %vm12468_vm1, %v14645_v57 }
 0x357   :  { %10307 = vmatprep.subr.bf16.mxu1 %v14821_v51 }
 0x359   :  { %11111 = vmatmul.mubr.msk.bf16.vlgmr.msra.gmra.mrb[4].mxu0 %vm182_vm0, %v12402_v35 }
 0x35a   :  { %10265 = vmatpush1.bf16.msra.mxu0 %v14822_v52  ;;  %10296 = vmatprep.mubr.bf16.mxu0 %v14640_v48 }
 0x35b   :  { %10350 = vmatprep.subr.bf16.mxu0 %v14823_v55 }
 0x35d   :  { %11518 = vmatmul.mubr.msk.bf16.vlgmr.msra.gmra.mrb[4].mxu1 %vm182_vm0, %v12402_v35 }
 0x35e   :  { %10308 = vmatpush1.bf16.msra.mxu1 %v14824_v63  ;;  %10339 = vmatprep.mubr.bf16.mxu1 %v14640_v48 }
 0x35f   :  { %11521 = vmatprep.subr.bf16.mxu1 %v14645_v57 }
 0x361   :  { %11116 = vmatmul.mubr.msk.bf16.vlgmr.msra.gmra.mrb[0].mxu0 %vm182_vm0, %v12403_v62 }
 0x362   :  { %10351 = vmatpush1.bf16.msra.mxu0 %v14825_v2  ;;  %10382 = vmatprep.mubr.bf16.mxu0 %v14640_v48 }
 0x363   :  { %10463 = vmatprep.subr.bf16.mxu0 %v13817_v19  ;;  %v12404_v19 = vld [vmem:[%s14522_s2 + $0x180] sm:$0xff]  }
 0x365   :  { %11117 = vmatmul.mubr.msk.bf16.vlgmr.msra.gmra.mrb[0].mxu1 %vm182_vm0, %v12403_v62 }
 0x366   :  { %11522 = vmatpush3.bf16.msra.mxu1 %v10259_v6  ;;  %11523 = vmatprep.mubr.msk.bf16.mxu1 %vm12468_vm1, %v14645_v57 }
 0x367   :  { %10506 = vmatprep.subr.bf16.mxu1 %v14828_v11 }
 0x369   :  { %11118 = vmatmul.mubr.msk.bf16.vlgmr.msra.gmra.mrb[4].mxu0 %vm182_vm0, %v12403_v62 }
 0x36a   :  { %10464 = vmatpush1.bf16.msra.mxu0 %v14829_v24  ;;  %10495 = vmatprep.mubr.bf16.mxu0 %v14640_v48 }
 0x36b   :  { %10549 = vmatprep.subr.bf16.mxu0 %v14830_v26 }
 0x36d   :  { %11524 = vmatmul.mubr.msk.bf16.vlgmr.msra.gmra.mrb[4].mxu1 %vm182_vm0, %v12403_v62 }
 0x36e   :  { %10507 = vmatpush1.bf16.msra.mxu1 %v14831_v28  ;;  %10538 = vmatprep.mubr.bf16.mxu1 %v14640_v48 }
 0x36f   :  { %11527 = vmatprep.subr.bf16.mxu1 %v14645_v57 }
 0x371   :  { %11123 = vmatmul.mubr.msk.bf16.vlgmr.msra.gmra.mrb[0].mxu0 %vm182_vm0, %v12404_v19 }
 0x372   :  { %10550 = vmatpush1.bf16.msra.mxu0 %v14832_v32  ;;  %10581 = vmatprep.mubr.bf16.mxu0 %v14640_v48 }
 0x375   :  { %11124 = vmatmul.mubr.msk.bf16.vlgmr.msra.gmra.mrb[0].mxu1 %vm182_vm0, %v12404_v19 }
 0x376   :  { %11528 = vmatpush3.bf16.msra.mxu1 %v10458_v41  ;;  %11529 = vmatprep.mubr.msk.bf16.mxu1 %vm12468_vm1, %v14645_v57 }
 0x379   :  { %11125 = vmatmul.mubr.msk.bf16.vlgmr.msra.gmra.mrb[4].mxu0 %vm182_vm0, %v12404_v19 }
 0x37d   :  { %11530 = vmatmul.mubr.msk.bf16.vlgmr.msra.gmra.mrb[4].mxu1 %vm182_vm0, %v12404_v19 }
 0x444   :  { %v10497_v56 = vpop.f32.mrb[0].mxu0 }
 0x445   :  { %v11533_v59 = vadd.f32 %v10497_v56, %v168_v54  ;;  %v10499_v60 = vpop.f32.mrb[1].mxu0 }
 0x446   :  { %v11534_v48 = vadd.f32 %v10499_v60, %v168_v54  ;;  %v10501_v61 = vpop.f32.mrb[2].mxu0 }
 0x447   :  { %v11127_v10 = vmul.f32 -1.442695, %v11533_v59  ;;  %v11535_v27 = vadd.f32 %v10501_v61, %v14469_v58  ;;  %v10503_v38 = vpop.f32.mrb[3].mxu0 }
 0x448   :  { %v11128_v42 = vmul.f32 -1.442695, %v11534_v48  ;;  %v11536_v43 = vadd.f32 %v10503_v38, %v14469_v58  ;;  %v10540_v57 = vpop.f32.mrb[0].mxu1 }
 0x449   :  { %12405 = vpow2.f32 %v11127_v10  ;;  %v11134_v44 = vmul.f32 -1.442695, %v11535_v27  ;;  %v11537_v45 = vadd.f32 %v10540_v57, %v168_v54  ;;  %v10542_v21 = vpop.f32.mrb[1].mxu1 }
 0x44a   :  { %12407 = vpow2.f32 %v11128_v42  ;;  %v11135_v0 = vmul.f32 -1.442695, %v11536_v43  ;;  %v11538_v53 = vadd.f32 %v10542_v21, %v168_v54  ;;  %v10544_v40 = vpop.f32.mrb[2].mxu1 }
 0x44b   :  { %12409 = vpow2.f32 %v11134_v44  ;;  %v11129_v22 = vmul.f32 -1.442695, %v11537_v45  ;;  %v11539_v12 = vadd.f32 %v10544_v40, %v14469_v58  ;;  %v10546_v23 = vpop.f32.mrb[3].mxu1 }
 0x44c   :  { %12411 = vpow2.f32 %v11135_v0  ;;  %v11130_v7 = vmul.f32 -1.442695, %v11538_v53  ;;  %v11540_v8 = vadd.f32 %v10546_v23, %v14469_v58  ;;  %v10583_v17 = vpop.f32.mrb[4].mxu0 }
 0x44d   :  { %12413 = vpow2.f32 %v11129_v22  ;;  %v11136_v4 = vmul.f32 -1.442695, %v11539_v12  ;;  %v11541_v16 = vadd.f32 %v10583_v17, %v168_v54  ;;  %v10585_v14 = vpop.f32.mrb[5].mxu0 }
 0x44e   :  { %12415 = vpow2.f32 %v11130_v7  ;;  %v11137_v3 = vmul.f32 -1.442695, %v11540_v8  ;;  %v11542_v9 = vadd.f32 %v10585_v14, %v168_v54  ;;  %v10587_v13 = vpop.f32.mrb[6].mxu0 }
 0x44f   :  { %12417 = vpow2.f32 %v11136_v4  ;;  %v11131_v15 = vmul.f32 -1.442695, %v11541_v16  ;;  %v11543_v18 = vadd.f32 %v10587_v13, %v14469_v58  ;;  %v10589_v20 = vpop.f32.mrb[7].mxu0 }
 0x450   :  { %12419 = vpow2.f32 %v11137_v3  ;;  %v11132_v25 = vmul.f32 -1.442695, %v11542_v9  ;;  %v11544_v30 = vadd.f32 %v10589_v20, %v14469_v58  ;;  %v10626_v31 = vpop.f32.mrb[4].mxu1 }
 0x451   :  { %12421 = vpow2.f32 %v11131_v15  ;;  %v11138_v33 = vmul.f32 -1.442695, %v11543_v18  ;;  %v11545_v34 = vadd.f32 %v10626_v31, %v168_v54  ;;  %v11531_v35 = vpop.f32.mrb[5].mxu1 }
 0x452   :  { %12423 = vpow2.f32 %v11132_v25  ;;  %v11139_v36 = vmul.f32 -1.442695, %v11544_v30  ;;  %v10629_v39 = vpop.f32.mrb[6].mxu1 }
 0x453   :  { %v12406_v46 = vpop.eup %12405  ;;  %12425 = vpow2.f32 %v11138_v33  ;;  %v11133_v47 = vmul.f32 -1.442695, %v11545_v34  ;;  %v11532_v49 = vpop.f32.mrb[7].mxu1  ;;  %v11546_v32 = vadd.f32 %v10629_v39, %v14469_v58 }
 0x454   :  { %v12408_v50 = vpop.eup %12407  ;;  %v10689_v51 = vadd.f32 1.0, %v12406_v46  ;;  %12427 = vpow2.f32 %v11139_v36 }
 0x455   :  { %v12410_v52 = vpop.eup %12409  ;;  %v10690_v55 = vadd.f32 1.0, %v12408_v50  ;;  %12429 = vpow2.f32 %v11133_v47  ;;  %v11140_v10 = vmul.f32 -1.442695, %v11546_v32 }
 0x456   :  { %v12412_v62 = vpop.eup %12411  ;;  %12431 = vrcp.f32 %v10689_v51  ;;  %v10696_v63 = vadd.f32 1.0, %v12410_v52 }
 0x457   :  { %v12414_v1 = vpop.eup %12413  ;;  %12433 = vrcp.f32 %v10690_v55  ;;  %v10697_v2 = vadd.f32 1.0, %v12412_v62 }
 0x458   :  { %v12416_v5 = vpop.eup %12415  ;;  %12435 = vrcp.f32 %v10696_v63  ;;  %v10691_v6 = vadd.f32 1.0, %v12414_v1 }
 0x459   :  { %v12418_v11 = vpop.eup %12417  ;;  %12437 = vrcp.f32 %v10697_v2  ;;  %v10692_v24 = vadd.f32 1.0, %v12416_v5 }
 0x45a   :  { %v12420_v26 = vpop.eup %12419  ;;  %12439 = vrcp.f32 %v10691_v6  ;;  %v10698_v19 = vadd.f32 1.0, %v12418_v11 }
 0x45b   :  { %v12422_v28 = vpop.eup %12421  ;;  %12441 = vrcp.f32 %v10692_v24  ;;  %v10699_v29 = vadd.f32 1.0, %v12420_v26 }
 0x45c   :  { %v12424_v37 = vpop.eup %12423  ;;  %12443 = vrcp.f32 %v10698_v19  ;;  %v10693_v41 = vadd.f32 1.0, %v12422_v28 }
 0x45d   :  { %v12426_v54 = vpop.eup %12425  ;;  %12445 = vrcp.f32 %v10699_v29  ;;  %v10694_v56 = vadd.f32 1.0, %v12424_v37 }
 0x45e   :  { %v12428_v59 = vpop.eup %12427  ;;  %12447 = vrcp.f32 %v10693_v41  ;;  %v10700_v60 = vadd.f32 1.0, %v12426_v54 }
 0x45f   :  { %v12430_v48 = vpop.eup %12429  ;;  %12449 = vrcp.f32 %v10694_v56  ;;  %v10701_v61 = vadd.f32 1.0, %v12428_v59 }
 0x460   :  { %v12432_v27 = vpop.eup %12431  ;;  %12451 = vrcp.f32 %v10700_v60  ;;  %v10695_v38 = vadd.f32 1.0, %v12430_v48 }
 0x461   :  { %v12434_v42 = vpop.eup %12433  ;;  %10731 = vst [vmem:[%s14524_s4] sm:$0xff] %v12432_v27  ;;  %12453 = vrcp.f32 %v10701_v61 }
 0x462   :  { %v12436_v58 = vpop.eup %12435  ;;  %10732 = vst [vmem:[%s14524_s4 + $0x8] sm:$0xff] %v12434_v42  ;;  %12455 = vrcp.f32 %v10695_v38 }
 0x463   :  { %v12438_v43 = vpop.eup %12437  ;;  %10738 = vst [vmem:[%s14524_s4 + $0x38] sm:$0xff] %v12436_v58  ;;  %12457 = vpow2.f32 %v11140_v10 }
 0x464   :  { %v12440_v57 = vpop.eup %12439  ;;  %10739 = vst [vmem:[%s14524_s4 + $0x40] sm:$0xff] %v12438_v43 }
 0x465   :  { %v12442_v44 = vpop.eup %12441  ;;  %10733 = vst [vmem:[%s14524_s4 + $0x10] sm:$0xff] %v12440_v57 }
 0x466   :  { %v12444_v45 = vpop.eup %12443  ;;  %10734 = vst [vmem:[%s14524_s4 + $0x18] sm:$0xff] %v12442_v44 }
 0x467   :  { %v12446_v21 = vpop.eup %12445  ;;  %10740 = vst [vmem:[%s14524_s4 + $0x48] sm:$0xff] %v12444_v45 }
 0x468   :  { %v12448_v0 = vpop.eup %12447  ;;  %10741 = vst [vmem:[%s14524_s4 + $0x50] sm:$0xff] %v12446_v21 }
 0x469   :  { %v12450_v53 = vpop.eup %12449  ;;  %10735 = vst [vmem:[%s14524_s4 + $0x20] sm:$0xff] %v12448_v0 }
 0x46a   :  { %v12452_v40 = vpop.eup %12451  ;;  %10736 = vst [vmem:[%s14524_s4 + $0x28] sm:$0xff] %v12450_v53 }
 0x46b   :  { %v12454_v22 = vpop.eup %12453  ;;  %10742 = vst [vmem:[%s14524_s4 + $0x58] sm:$0xff] %v12452_v40 }
 0x46c   :  { %v12456_v12 = vpop.eup %12455  ;;  %10743 = vst [vmem:[%s14524_s4 + $0x60] sm:$0xff] %v12454_v22 }
 0x46d   :  { %v12458_v23 = vpop.eup %12457  ;;  %10737 = vst [vmem:[%s14524_s4 + $0x30] sm:$0xff] %v12456_v12 }
 0x46e   :  { %v10702_v7 = vadd.f32 1.0, %v12458_v23 }
 0x470   :  { %12459 = vrcp.f32 %v10702_v7 }
 0x47a   :  { %v12460_v8 = vpop.eup %12459 }
 0x47b   :  { %10744 = vst [vmem:[%s14524_s4 + $0x68] sm:$0xff] %v12460_v8 }

</bundles_post_ra>
